<compile_context>
chip_gen: v5e
topology: v5e:2x2
jax: 0.10.0
libtpu: 0.0.40
codegen_flags: <defaults>
</compile_context>

<pallas_src>
import functools
import numpy as np
import jax
import jax.numpy as jnp
from jax import lax
from jax.experimental import pallas as pl
from jax.experimental.pallas import tpu as pltpu

_LANE = 128
_SUPER = 8 * _LANE            # 1024 voters per (8, 128) sub-slab (moments kernel unit)
_BYTES_PER_VOTER = 8 * 4      # 8 packed f32 attributes per voter
_FAR = 1.0e8                  # padded / invalid voters pushed far apart -> never inliers


def _round_up(x, m):
    return ((x + m - 1) // m) * m


def _tpu_vmem_capacity_bytes():
    try:
        return int(pltpu.get_tpu_info().vmem_capacity_bytes)
    except Exception:
        return 64 * 1024 * 1024   # conservative fallback (v7x per-core VMEM)


def _hypo_tile(num_hypotheses):
    """Hypothesis (sublane) tile: 64 keeps the per-chunk working set under 64 vregs;
    for small H drop it so there are >= 2 blocks (v7x megacore)."""
    h8 = _round_up(max(num_hypotheses, 1), 8)
    if h8 <= 64:
        tile_h = max(8, _round_up(h8 // 2, 8))
    else:
        tile_h = 64
    return tile_h, _round_up(num_hypotheses, tile_h)


# --------------------------------------------------------------------------------------
# Pallas kernel 1: per-hypothesis inlier counts (lane-dense partial sums)
# --------------------------------------------------------------------------------------
def _rank_kernel(t_ref, pts_ref, cnt_ref, *, radius_sq, tile_h, chunks_per_block):
    """cnt[h, lane] += #inliers of hypothesis h among this V-block's voters (lane-partial)."""
    @pl.when(pl.program_id(1) == 0)
    def _():
        cnt_ref[...] = jnp.zeros_like(cnt_ref)

    # (3*tile_h, 8): rows = [x-rows | y-rows | z-rows] of the tile's 4x4s, each row is
    # [R_i0, R_i1, R_i2, t_i, 0, 0, 0, 0].  Loop-invariant; consumed only by the MXU.
    t8 = t_ref[...]

    def body(c, acc):
        chunk = pts_ref[c]                                            # (8, 128)
        # Affine transform on the MXU: the constant "ones" voter row supplies t.
        a = jnp.dot(t8, chunk, preferred_element_type=jnp.float32)    # (3*tile_h, 128)
        dx = chunk[4:5, :] - a[0:tile_h]
        dy = chunk[5:6, :] - a[tile_h:2 * tile_h]
        dz = chunk[6:7, :] - a[2 * tile_h:3 * tile_h]
        d2 = dx * dx + dy * dy + dz * dz                              # squared compare: no sqrt
        return acc + jnp.where(d2 < radius_sq, 1.0, 0.0)

    acc = lax.fori_loop(0, chunks_per_block, body,
                        jnp.zeros((tile_h, _LANE), jnp.float32))
    cnt_ref[...] += acc


def rank_hypotheses_pallas(transforms, packed_rank, v_pad, radius,
                           tile_h, tile_v, vmem_limit):
    """transforms: (H,4,4); packed_rank: (v_pad//128, 8, 128) -> inlier counts (H,)."""
    H = transforms.shape[0]
    H_pad = _round_up(H, tile_h)
    n_blk_h = H_pad // tile_h
    n_blk_v = v_pad // tile_v
    chunks_per_block = tile_v // _LANE

    # MXU-friendly transform matrix: block i holds [x|y|z] rows of its tile_h hypotheses,
    # each padded to 8 columns ([R, t, 0, 0, 0, 0]).
    t = transforms.astype(jnp.float32)
    if H_pad > H:
        pad_eye = jnp.tile(jnp.eye(4, dtype=jnp.float32)[None], (H_pad - H, 1, 1))
        t = jnp.concatenate([t, pad_eye], axis=0)
    rows3 = jnp.pad(t[:, :3, :], ((0, 0), (0, 0), (0, 4)))            # (H_pad, 3, 8)
    rows3 = rows3.reshape(n_blk_h, tile_h, 3, 8).transpose(0, 2, 1, 3)
    tmat8 = rows3.reshape(n_blk_h * 3 * tile_h, 8)

    out = pl.pallas_call(
        functools.partial(_rank_kernel, radius_sq=float(radius) ** 2,
                          tile_h=tile_h, chunks_per_block=chunks_per_block),
        out_shape=jax.ShapeDtypeStruct((H_pad, _LANE), jnp.float32),
        grid=(n_blk_h, n_blk_v),
        in_specs=[
            pl.BlockSpec((3 * tile_h, 8), lambda i, j: (i, 0)),
            pl.BlockSpec((chunks_per_block, 8, _LANE), lambda i, j: (j, 0, 0)),
        ],
        out_specs=pl.BlockSpec((tile_h, _LANE), lambda i, j: (i, 0)),
        compiler_params=pltpu.CompilerParams(
            dimension_semantics=("parallel", "arbitrary"),
            vmem_limit_bytes=vmem_limit),
    )(tmat8, packed_rank)
    return out.sum(axis=1)[:H]          # tiny (H_pad, 128) reduce in XLA


# --------------------------------------------------------------------------------------
# Pallas kernel 2: single-transform weighted-Procrustes moments (16 scalars)
# --------------------------------------------------------------------------------------
def _moments_kernel(t_ref, pts_ref, mom_ref, *, radius_sq, supers_per_block):
    """mom[m, lane] += lane-partial sums of the 16 weighted moments over this V-block."""
    @pl.when(pl.program_id(0) == 0)
    def _():
        mom_ref[...] = jnp.zeros_like(mom_ref)

    # Transform scalars live in SMEM; read once per grid step (hoisted out of the loop).
    t = [t_ref[i] for i in range(12)]

    def body(s, acc):
        slab = pts_ref[s]                 # (8 attrs, 8, 128): sublane-dense voter tiles
        sx, sy, sz = slab[0], slab[1], slab[2]
        rx, ry, rz = slab[4], slab[5], slab[6]
        ws = slab[7]
        ax = t[0] * sx + t[1] * sy + t[2] * sz + t[3]
        ay = t[4] * sx + t[5] * sy + t[6] * sz + t[7]
        az = t[8] * sx + t[9] * sy + t[10] * sz + t[11]
        dx = rx - ax
        dy = ry - ay
        dz = rz - az
        d2 = dx * dx + dy * dy + dz * dz
        w = jnp.where(d2 < radius_sq, ws, 0.0)        # (8, 128)
        wrx = w * rx
        wry = w * ry
        wrz = w * rz
        moms = (w, w * sx, w * sy, w * sz, wrx, wry, wrz,
                wrx * sx, wrx * sy, wrx * sz,
                wry * sx, wry * sy, wry * sz,
                wrz * sx, wrz * sy, wrz * sz)
        parts = jnp.concatenate(
            [jnp.sum(m, axis=0, keepdims=True) for m in moms], axis=0)   # (16, 128)
        return acc + parts

    acc = lax.fori_loop(0, supers_per_block, body,
                        jnp.zeros((16, _LANE), jnp.float32))
    mom_ref[...] += acc                    # single stacked accumulate per grid step


def procrustes_moments_pallas(transform, packed_mom, radius, tile_v, vmem_limit):
    """transform: (4,4); packed_mom: (v_pad//1024, 8, 8, 128) -> 16 weighted moments."""
    n_super = packed_mom.shape[0]
    supers_per_block = tile_v // _SUPER
    n_blk_v = n_super // supers_per_block
    t_flat = jnp.reshape(transform.astype(jnp.float32), (16,))
    out = pl.pallas_call(
        functools.partial(_moments_kernel, radius_sq=float(radius) ** 2,
                          supers_per_block=supers_per_block),
        out_shape=jax.ShapeDtypeStruct((16, _LANE), jnp.float32),
        grid=(n_blk_v,),
        in_specs=[
            pl.BlockSpec(memory_space=pltpu.MemorySpace.SMEM),
            pl.BlockSpec((supers_per_block, 8, 8, _LANE), lambda j: (j, 0, 0, 0)),
        ],
        out_specs=pl.BlockSpec((16, _LANE), lambda j: (0, 0)),
        compiler_params=pltpu.CompilerParams(
            dimension_semantics=("arbitrary",),
            vmem_limit_bytes=vmem_limit),
    )(t_flat, packed_mom)
    return out.sum(axis=1)                 # (16,)


def _build_packed_voters(src_pts, ref_pts, scores, valid, v_pad):
    """Rows: [sx, sy, sz, 1, rx, ry, rz, w]; invalid voters pushed to +/-_FAR with w=0.

    Returns two device layouts built once in XLA:
      packed_rank: (v_pad//128, 8, 128)   — chunk-major, consumed 1 lane-chunk at a time
      packed_mom : (v_pad//1024, 8, 8, 128) — attribute-major sublane-dense slabs
    """
    V = src_pts.shape[0]
    pad = v_pad - V
    src = jnp.pad(src_pts.astype(jnp.float32), ((0, pad), (0, 0)))
    ref = jnp.pad(ref_pts.astype(jnp.float32), ((0, pad), (0, 0)))
    w = jnp.pad(scores.astype(jnp.float32), (0, pad))
    vmask = jnp.pad(valid, (0, pad))
    src = jnp.where(vmask[:, None], src, _FAR)
    ref = jnp.where(vmask[:, None], ref, -_FAR)
    w = jnp.where(vmask, w, 0.0)
    ones = jnp.ones((v_pad,), jnp.float32)
    rows = jnp.concatenate([src.T, ones[None, :], ref.T, w[None, :]], axis=0)   # (8, v_pad)
    n_chunk = v_pad // _LANE
    n_super = v_pad // _SUPER
    packed_rank = rows.reshape(8, n_chunk, _LANE).transpose(1, 0, 2)
    packed_mom = rows.reshape(8, n_super, 8, _LANE).transpose(1, 0, 2, 3)
    return packed_rank, packed_mom


# --------------------------------------------------------------------------------------
# Plain-JAX helpers (3x3 SVDs have no clean Pallas equivalent)
# --------------------------------------------------------------------------------------
def _kabsch_rotation(src_vecs, ref_vecs):
    """Rotation R (batched) such that R @ src ~= ref, from paired vectors (..., D, 3)."""
    M = jnp.einsum('...da,...db->...ab', ref_vecs, src_vecs)          # (..., 3, 3)
    U, _, Vt = jnp.linalg.svd(M)
    det = jnp.linalg.det(U @ Vt)
    sign = jnp.where(det < 0, -1.0, 1.0)
    diag_vals = jnp.stack([jnp.ones_like(sign), jnp.ones_like(sign), sign], axis=-1)
    D = jnp.eye(3, dtype=M.dtype) * diag_vals[..., None, :]
    return U @ D @ Vt


def procrustes_from_moments(moments, eps=1e-8):
    """Weighted Kabsch from the 16 fused moments [W, Σw·s(3), Σw·r(3), Σw·r⊗s(9)]."""
    W = moments[0]
    s_sum = moments[1:4]
    r_sum = moments[4:7]
    rs_sum = moments[7:16].reshape(3, 3)      # rows: ref axis, cols: src axis
    denom = W + eps
    mu_s = s_sum / denom
    mu_r = r_sum / denom
    frac = W / denom
    # Σ ŵ_n (x_r - μ_r)(x_s - μ_s)^T with ŵ_n = w_n / (W + eps)
    M = rs_sum / denom - (2.0 - frac) * jnp.outer(mu_r, mu_s)
    U, _, Vt = jnp.linalg.svd(M)
    det = jnp.linalg.det(U @ Vt)
    sign = jnp.where(det < 0.0, -1.0, 1.0)
    D = jnp.diag(jnp.stack([jnp.ones_like(sign), jnp.ones_like(sign), sign]))
    R = U @ D @ Vt
    t = mu_r - R @ mu_s
    T = jnp.eye(4, dtype=jnp.float32)
    T = T.at[:3, :3].set(R).at[:3, 3].set(t)
    return T


def extract_fine_transforms(ref_corr_feats, src_corr_feats, ref_corr_points, src_corr_points):
    # TODO(synk): `solve_local_rotations` source is not provided; implemented as a
    # per-correspondence Kabsch rotation between the (D, 3) feature frames.
    R = _kabsch_rotation(src_corr_feats, ref_corr_feats)              # (C, 3, 3)
    aligned = jnp.einsum('bmn,bn->bm', R, src_corr_points)
    t = ref_corr_points - aligned
    C = R.shape[0]
    T = jnp.tile(jnp.eye(4, dtype=jnp.float32)[None], (C, 1, 1))
    T = T.at[:, :3, :3].set(R).at[:, :3, 3].set(t)
    return T


# --------------------------------------------------------------------------------------
# HypothesisProposer
# --------------------------------------------------------------------------------------
class HypothesisProposerPallas:
    def __init__(self, k, acceptance_radius, confidence_threshold=0.025,
                 num_hypotheses=1000, num_refinement_steps=5):
        self.k = k
        self.acceptance_radius = acceptance_radius
        self.confidence_threshold = confidence_threshold
        self.num_hypotheses = num_hypotheses
        self.num_refinement_steps = num_refinement_steps
        # Physical per-core VMEM of this chip generation (v7x 64 MiB vs v5e/v6e 128 MiB);
        # used to size the resident voter block / V tiling.
        self._vmem_cap = _tpu_vmem_capacity_bytes()

    def _voter_tile(self, v_max):
        # Double-buffered voter block kept around <= 1/3 of physical VMEM.
        block_budget = self._vmem_cap // 6
        cap_voters = max(_SUPER, (block_budget // _BYTES_PER_VOTER) // _SUPER * _SUPER)
        tile_v = min(cap_voters, _round_up(v_max, _SUPER))
        v_pad = _round_up(v_max, tile_v)
        return tile_v, v_pad

    def compute_correspondence_matrix(self, score_mat, ref_knn_masks, src_knn_masks):
        mask_mat = jnp.logical_and(ref_knn_masks[:, :, None], src_knn_masks[:, None, :])
        B, R, S = score_mat.shape

        # (The ref-side top-k score matrix in the reference module is dead code; omitted.)
        src_topk_vals, src_topk_idx = lax.top_k(jnp.swapaxes(score_mat, 1, 2), self.k)  # (B, S, k)
        bb = jnp.arange(B)[:, None, None]
        ss = jnp.arange(S)[None, :, None]
        src_score_mat = jnp.zeros_like(score_mat).at[bb, src_topk_idx, ss].set(src_topk_vals)
        # (sic) the reference OR's the same tensor with itself
        voter_corr_mat = jnp.logical_or(src_score_mat > self.confidence_threshold,
                                        src_score_mat > self.confidence_threshold)

        total = B * R * S
        k_static = min(self.num_hypotheses, total)
        num_corr = jnp.minimum(self.num_hypotheses, mask_mat.sum())
        _, corr_indices = lax.top_k(score_mat.reshape(-1), k_static)
        keep = jnp.arange(k_static) < num_corr
        corr_flat = jnp.zeros((total,), dtype=bool).at[corr_indices].set(keep)
        corr_mat = jnp.logical_and(corr_flat.reshape(B, R, S), mask_mat)
        voter_corr_mat = jnp.logical_and(voter_corr_mat, mask_mat)
        return corr_mat, voter_corr_mat

    def __call__(self, ref_knn_points, src_knn_points, re_ref_knn_feats, re_src_knn_feats,
                 ref_knn_masks, src_knn_masks, score_mat):
        corr_mat, voter_corr_mat = self.compute_correspondence_matrix(
            score_mat, ref_knn_masks, src_knn_masks)

        B, R, S = score_mat.shape
        C_max = min(self.num_hypotheses, B * R * S)   # padded hypothesis count
        # TODO(synk): V_max = B*R*S keeps reference semantics; the padded voter set grows
        # with the full score matrix (consider a top-k cap for very large inputs).
        V_max = B * R * S

        # hypothesis correspondences (padded, row-major order like torch.nonzero)
        bi, ri, si = jnp.nonzero(corr_mat, size=C_max, fill_value=0)
        valid_corr = jnp.arange(C_max) < corr_mat.sum()
        global_ref_corr_points = ref_knn_points[bi, ri]
        global_src_corr_points = src_knn_points[bi, si]
        global_corr_scores = jnp.where(valid_corr, score_mat[bi, ri, si], 0.0)
        ref_corr_feats = re_ref_knn_feats[bi, ri]
        src_corr_feats = re_src_knn_feats[bi, si]

        # voter correspondences (padded)
        bv, rv, sv = jnp.nonzero(voter_corr_mat, size=V_max, fill_value=0)
        valid_voter = jnp.arange(V_max) < voter_corr_mat.sum()
        ref_corr_points = ref_knn_points[bv, rv]
        src_corr_points = src_knn_points[bv, sv]
        corr_scores = score_mat[bv, rv, sv]

        hypotheses = extract_fine_transforms(
            ref_corr_feats, src_corr_feats, global_ref_corr_points, global_src_corr_points)

        # ---- static tiling decisions (gated on this chip's physical VMEM) ----
        tile_h, _ = _hypo_tile(C_max)
        tile_v, v_pad = self._voter_tile(V_max)
        vmem_limit = int(min(self._vmem_cap // 2, 128 * 1024 * 1024))

        # ---- pack voters once: shared by both Pallas hot paths ----
        packed_rank, packed_mom = _build_packed_voters(
            src_corr_points, ref_corr_points, corr_scores, valid_voter, v_pad)

        # ---- Pallas hot path 1: rank all hypotheses (in-kernel inlier-count reduction) ----
        counts = rank_hypotheses_pallas(hypotheses, packed_rank, v_pad,
                                        self.acceptance_radius, tile_h, tile_v, vmem_limit)
        num_voters = jnp.maximum(voter_corr_mat.sum(), 1).astype(jnp.float32)
        ir = counts / num_voters
        ir = jnp.where(valid_corr, ir, -1.0)          # padded hypotheses never win
        best_index = jnp.argmax(ir)
        estimated_transform = hypotheses[best_index]

        # ---- Pallas hot path 2: LGR (fused inlier-weighted moments, SVD in JAX) ----
        # First iteration reproduces the reference's initial Procrustes with the best
        # hypothesis's inlier weights; subsequent iterations are the refinement steps.
        for _ in range(self.num_refinement_steps):
            moments = procrustes_moments_pallas(
                estimated_transform, packed_mom, self.acceptance_radius, tile_v, vmem_limit)
            estimated_transform = procrustes_from_moments(moments)

        return (global_ref_corr_points, global_src_corr_points, global_corr_scores,
                estimated_transform, hypotheses, ref_corr_feats, src_corr_feats)


# --------------------------------------------------------------------------------------
if __name__ == "__main__":
    key = jax.random.PRNGKey(0)
    B, K, D = 2, 8, 4
    k1, k2, k3, k4, k5, k6, k7 = jax.random.split(key, 7)

    ref_knn_points = jax.random.normal(k1, (B, K, 3), dtype=jnp.float32)
    src_knn_points = jax.random.normal(k2, (B, K, 3), dtype=jnp.float32)
    re_ref_knn_feats = jax.random.normal(k3, (B, K, D, 3), dtype=jnp.float32)
    re_src_knn_feats = jax.random.normal(k4, (B, K, D, 3), dtype=jnp.float32)
    ref_knn_masks = jax.random.bernoulli(k5, 0.9, (B, K))
    src_knn_masks = jax.random.bernoulli(k6, 0.9, (B, K))
    score_mat = jax.random.uniform(k7, (B, K, K), dtype=jnp.float32)

    proposer = HypothesisProposerPallas(k=3, acceptance_radius=1.0,
                                        confidence_threshold=0.025,
                                        num_hypotheses=1000, num_refinement_steps=5)
    fwd = jax.jit(proposer.__call__)
    outs = fwd(ref_knn_points, src_knn_points, re_ref_knn_feats, re_src_knn_feats,
               ref_knn_masks, src_knn_masks, score_mat)
    outs = jax.block_until_ready(outs)

    # basic sanity: finite outputs, correct core shapes
    est = np.asarray(outs[3])
    assert est.shape == (4, 4) and np.isfinite(est).all()
    assert np.asarray(outs[4]).shape[1:] == (4, 4)
    assert np.isfinite(np.asarray(outs[2])).all()
    print("KERNEL_OK")
</pallas_src>

<mosaic_0001>
module attributes {stable_mosaic.version = 11 : i64} {
  func.func @_rank_kernel(%arg0: i32, %arg1: i32, %arg2: memref<192x8xf32, #tpu.memory_space<vmem>>, %arg3: memref<8x8x128xf32, #tpu.memory_space<vmem>>, %arg4: memref<64x128xf32, #tpu.memory_space<vmem>>) attributes {dimension_semantics = [#tpu.dimension_semantics<parallel>, #tpu.dimension_semantics<arbitrary>], iteration_bounds = array<i64: 2, 1>, scalar_prefetch = 0 : i64, scratch_operands = 0 : i64, tpu.core_type = #tpu.core_type<tc>, window_params = [{transform_indices = @transform_0, window_bounds = array<i64: 192, 8>}, {transform_indices = @transform_1, window_bounds = array<i64: 8, 8, 128>}, {transform_indices = @transform_2, window_bounds = array<i64: 64, 128>}]} {
    %c0_i32 = arith.constant 0 : i32
    %0 = arith.cmpi eq, %arg1, %c0_i32 : i32
    %1 = arith.extui %0 : i1 to i32
    %c0_i32_0 = arith.constant 0 : i32
    %2 = arith.cmpi ne, %1, %c0_i32_0 : i32
    scf.if %2 {
      %cst_8 = arith.constant 0.000000e+00 : f32
      %10 = vector.broadcast %cst_8 : f32 to vector<64x128xf32>
      %c0_9 = arith.constant 0 : index
      %c0_10 = arith.constant 0 : index
      %11 = vector.load %arg4[%c0_9, %c0_10] : memref<64x128xf32, #tpu.memory_space<vmem>>, vector<64x128xf32>
      tpu.vector_store %arg4[%c0_9, %c0_10], %10 {strides = array<i32>} : memref<64x128xf32, #tpu.memory_space<vmem>>, vector<64x128xf32>,
    } else {
    }
    %c0 = arith.constant 0 : index
    %c0_1 = arith.constant 0 : index
    %3 = vector.load %arg2[%c0, %c0_1] : memref<192x8xf32, #tpu.memory_space<vmem>>, vector<192x8xf32>
    %cst = arith.constant 0.000000e+00 : f32
    %4 = vector.broadcast %cst : f32 to vector<64x128xf32>
    %c0_i32_2 = arith.constant 0 : i32
    %c8_i32 = arith.constant 8 : i32
    %5 = arith.addi %c0_i32_2, %c8_i32 : i32
    %c1_i32 = arith.constant 1 : i32
    %6 = scf.for %arg5 = %c0_i32_2 to %5 step %c1_i32 iter_args(%arg6 = %4) -> (vector<64x128xf32>)  : i32 {
      %10 = arith.index_cast %arg5 : i32 to index
      %c0_8 = arith.constant 0 : index
      %c0_9 = arith.constant 0 : index
      %11 = vector.load %arg3[%10, %c0_8, %c0_9] : memref<8x8x128xf32, #tpu.memory_space<vmem>>, vector<1x8x128xf32>
      %12 = vector.shape_cast %11 : vector<1x8x128xf32> to vector<8x128xf32>
      %cst_10 = arith.constant dense<0.000000e+00> : vector<192x128xf32>
      %13 = tpu.matmul %3, %12, %cst_10 {dimension_numbers = #tpu.dot_dimension_numbers<[1], [0], [0], [1], [0, 0, 1, 1], [], []>} : vector<192x8xf32>, vector<8x128xf32>, vector<192x128xf32> -> vector<192x128xf32>
      %14 = vector.extract_strided_slice %12 {offsets = [4, 0], sizes = [1, 128], strides = [1, 1]} : vector<8x128xf32> to vector<1x128xf32>
      %15 = vector.extract_strided_slice %13 {offsets = [0, 0], sizes = [64, 128], strides = [1, 1]} : vector<192x128xf32> to vector<64x128xf32>
      %16 = vector.broadcast %14 : vector<1x128xf32> to vector<64x128xf32>
      %17 = arith.subf %16, %15 : vector<64x128xf32>
      %18 = vector.extract_strided_slice %12 {offsets = [5, 0], sizes = [1, 128], strides = [1, 1]} : vector<8x128xf32> to vector<1x128xf32>
      %19 = vector.extract_strided_slice %13 {offsets = [64, 0], sizes = [64, 128], strides = [1, 1]} : vector<192x128xf32> to vector<64x128xf32>
      %20 = vector.broadcast %18 : vector<1x128xf32> to vector<64x128xf32>
      %21 = arith.subf %20, %19 : vector<64x128xf32>
      %22 = vector.extract_strided_slice %12 {offsets = [6, 0], sizes = [1, 128], strides = [1, 1]} : vector<8x128xf32> to vector<1x128xf32>
      %23 = vector.extract_strided_slice %13 {offsets = [128, 0], sizes = [64, 128], strides = [1, 1]} : vector<192x128xf32> to vector<64x128xf32>
      %24 = vector.broadcast %22 : vector<1x128xf32> to vector<64x128xf32>
      %25 = arith.subf %24, %23 : vector<64x128xf32>
      %26 = arith.mulf %17, %17 : vector<64x128xf32>
      %27 = arith.mulf %21, %21 : vector<64x128xf32>
      %28 = arith.addf %26, %27 : vector<64x128xf32>
      %29 = arith.mulf %25, %25 : vector<64x128xf32>
      %30 = arith.addf %28, %29 : vector<64x128xf32>
      %cst_11 = arith.constant 1.000000e+00 : f32
      %31 = vector.broadcast %cst_11 : f32 to vector<64x128xf32>
      %32 = arith.cmpf olt, %30, %31 : vector<64x128xf32>
      %cst_12 = arith.constant 1.000000e+00 : f32
      %cst_13 = arith.constant 0.000000e+00 : f32
      %33 = vector.broadcast %cst_12 : f32 to vector<64x128xf32>
      %34 = vector.broadcast %cst_13 : f32 to vector<64x128xf32>
      %35 = arith.select %32, %33, %34 : vector<64x128xi1>, vector<64x128xf32>
      %36 = arith.addf %arg6, %35 : vector<64x128xf32>
      scf.yield %36 : vector<64x128xf32>
    }
    %c8_i32_3 = arith.constant 8 : i32
    %c0_4 = arith.constant 0 : index
    %c0_5 = arith.constant 0 : index
    %7 = vector.load %arg4[%c0_4, %c0_5] : memref<64x128xf32, #tpu.memory_space<vmem>>, vector<64x128xf32>
    %8 = arith.addf %7, %6 : vector<64x128xf32>
    %c0_6 = arith.constant 0 : index
    %c0_7 = arith.constant 0 : index
    %9 = vector.load %arg4[%c0_6, %c0_7] : memref<64x128xf32, #tpu.memory_space<vmem>>, vector<64x128xf32>
    tpu.vector_store %arg4[%c0_6, %c0_7], %8 {strides = array<i32>} : memref<64x128xf32, #tpu.memory_space<vmem>>, vector<64x128xf32>,
    return
  }
  func.func @transform_0(%arg0: i32, %arg1: i32) -> (i32, i32) {
    %c0_i32 = arith.constant 0 : i32
    %c0_i32_0 = arith.constant 0 : i32
    return %arg0, %c0_i32 : i32, i32
  }
  func.func @transform_1(%arg0: i32, %arg1: i32) -> (i32, i32, i32) {
    %c0_i32 = arith.constant 0 : i32
    %c0_i32_0 = arith.constant 0 : i32
    %c0_i32_1 = arith.constant 0 : i32
    return %arg1, %c0_i32, %c0_i32_0 : i32, i32, i32
  }
  func.func @transform_2(%arg0: i32, %arg1: i32) -> (i32, i32) {
    %c0_i32 = arith.constant 0 : i32
    %c0_i32_0 = arith.constant 0 : i32
    return %arg0, %c0_i32 : i32, i32
  }
}

module attributes {stable_mosaic.version = 11 : i64} {
  func.func @_moments_kernel(%arg0: i32, %arg1: memref<16xf32, #tpu.memory_space<smem>>, %arg2: memref<1x8x8x128xf32, #tpu.memory_space<vmem>>, %arg3: memref<16x128xf32, #tpu.memory_space<vmem>>) attributes {dimension_semantics = [#tpu.dimension_semantics<arbitrary>], iteration_bounds = array<i64: 1>, scalar_prefetch = 0 : i64, scratch_operands = 0 : i64, tpu.core_type = #tpu.core_type<tc>, window_params = [{transform_indices = @transform_0, window_bounds = array<i64: 16>}, {transform_indices = @transform_1, window_bounds = array<i64: 1, 8, 8, 128>}, {pipeline_mode = #tpu.pipeline_mode<synchronous>, transform_indices = @transform_2, window_bounds = array<i64: 16, 128>}]} {
    %c0_i32 = arith.constant 0 : i32
    %0 = arith.cmpi eq, %arg0, %c0_i32 : i32
    %1 = arith.extui %0 : i1 to i32
    %c0_i32_0 = arith.constant 0 : i32
    %2 = arith.cmpi ne, %1, %c0_i32_0 : i32
    scf.if %2 {
      %cst_27 = arith.constant 0.000000e+00 : f32
      %127 = vector.broadcast %cst_27 : f32 to vector<16x128xf32>
      %c0_28 = arith.constant 0 : index
      %c0_29 = arith.constant 0 : index
      %128 = vector.load %arg3[%c0_28, %c0_29] : memref<16x128xf32, #tpu.memory_space<vmem>>, vector<16x128xf32>
      tpu.vector_store %arg3[%c0_28, %c0_29], %127 {strides = array<i32>} : memref<16x128xf32, #tpu.memory_space<vmem>>, vector<16x128xf32>,
    } else {
    }
    %c0 = arith.constant 0 : index
    %3 = memref.load %arg1[%c0] : memref<16xf32, #tpu.memory_space<smem>>
    %c1 = arith.constant 1 : index
    %4 = memref.load %arg1[%c1] : memref<16xf32, #tpu.memory_space<smem>>
    %c2 = arith.constant 2 : index
    %5 = memref.load %arg1[%c2] : memref<16xf32, #tpu.memory_space<smem>>
    %c3 = arith.constant 3 : index
    %6 = memref.load %arg1[%c3] : memref<16xf32, #tpu.memory_space<smem>>
    %c4 = arith.constant 4 : index
    %7 = memref.load %arg1[%c4] : memref<16xf32, #tpu.memory_space<smem>>
    %c5 = arith.constant 5 : index
    %8 = memref.load %arg1[%c5] : memref<16xf32, #tpu.memory_space<smem>>
    %c6 = arith.constant 6 : index
    %9 = memref.load %arg1[%c6] : memref<16xf32, #tpu.memory_space<smem>>
    %c7 = arith.constant 7 : index
    %10 = memref.load %arg1[%c7] : memref<16xf32, #tpu.memory_space<smem>>
    %c8 = arith.constant 8 : index
    %11 = memref.load %arg1[%c8] : memref<16xf32, #tpu.memory_space<smem>>
    %c9 = arith.constant 9 : index
    %12 = memref.load %arg1[%c9] : memref<16xf32, #tpu.memory_space<smem>>
    %c10 = arith.constant 10 : index
    %13 = memref.load %arg1[%c10] : memref<16xf32, #tpu.memory_space<smem>>
    %c11 = arith.constant 11 : index
    %14 = memref.load %arg1[%c11] : memref<16xf32, #tpu.memory_space<smem>>
    %cst = arith.constant 0.000000e+00 : f32
    %15 = vector.broadcast %cst : f32 to vector<16x128xf32>
    %c0_i32_1 = arith.constant 0 : i32
    %16 = arith.index_cast %c0_i32_1 : i32 to index
    %c0_2 = arith.constant 0 : index
    %c0_3 = arith.constant 0 : index
    %c0_4 = arith.constant 0 : index
    %17 = vector.load %arg2[%16, %c0_2, %c0_3, %c0_4] : memref<1x8x8x128xf32, #tpu.memory_space<vmem>>, vector<1x8x8x128xf32>
    %18 = vector.shape_cast %17 : vector<1x8x8x128xf32> to vector<8x8x128xf32>
    %19 = vector.extract_strided_slice %18 {offsets = [0, 0, 0], sizes = [1, 8, 128], strides = [1, 1, 1]} : vector<8x8x128xf32> to vector<1x8x128xf32>
    %20 = vector.shape_cast %19 : vector<1x8x128xf32> to vector<8x128xf32>
    %21 = vector.extract_strided_slice %18 {offsets = [1, 0, 0], sizes = [1, 8, 128], strides = [1, 1, 1]} : vector<8x8x128xf32> to vector<1x8x128xf32>
    %22 = vector.shape_cast %21 : vector<1x8x128xf32> to vector<8x128xf32>
    %23 = vector.extract_strided_slice %18 {offsets = [2, 0, 0], sizes = [1, 8, 128], strides = [1, 1, 1]} : vector<8x8x128xf32> to vector<1x8x128xf32>
    %24 = vector.shape_cast %23 : vector<1x8x128xf32> to vector<8x128xf32>
    %25 = vector.extract_strided_slice %18 {offsets = [4, 0, 0], sizes = [1, 8, 128], strides = [1, 1, 1]} : vector<8x8x128xf32> to vector<1x8x128xf32>
    %26 = vector.shape_cast %25 : vector<1x8x128xf32> to vector<8x128xf32>
    %27 = vector.extract_strided_slice %18 {offsets = [5, 0, 0], sizes = [1, 8, 128], strides = [1, 1, 1]} : vector<8x8x128xf32> to vector<1x8x128xf32>
    %28 = vector.shape_cast %27 : vector<1x8x128xf32> to vector<8x128xf32>
    %29 = vector.extract_strided_slice %18 {offsets = [6, 0, 0], sizes = [1, 8, 128], strides = [1, 1, 1]} : vector<8x8x128xf32> to vector<1x8x128xf32>
    %30 = vector.shape_cast %29 : vector<1x8x128xf32> to vector<8x128xf32>
    %31 = vector.extract_strided_slice %18 {offsets = [7, 0, 0], sizes = [1, 8, 128], strides = [1, 1, 1]} : vector<8x8x128xf32> to vector<1x8x128xf32>
    %32 = vector.shape_cast %31 : vector<1x8x128xf32> to vector<8x128xf32>
    %33 = vector.broadcast %3 : f32 to vector<8x128xf32>
    %34 = arith.mulf %33, %20 : vector<8x128xf32>
    %35 = vector.broadcast %4 : f32 to vector<8x128xf32>
    %36 = arith.mulf %35, %22 : vector<8x128xf32>
    %37 = arith.addf %34, %36 : vector<8x128xf32>
    %38 = vector.broadcast %5 : f32 to vector<8x128xf32>
    %39 = arith.mulf %38, %24 : vector<8x128xf32>
    %40 = arith.addf %37, %39 : vector<8x128xf32>
    %41 = vector.broadcast %6 : f32 to vector<8x128xf32>
    %42 = arith.addf %40, %41 : vector<8x128xf32>
    %43 = vector.broadcast %7 : f32 to vector<8x128xf32>
    %44 = arith.mulf %43, %20 : vector<8x128xf32>
    %45 = vector.broadcast %8 : f32 to vector<8x128xf32>
    %46 = arith.mulf %45, %22 : vector<8x128xf32>
    %47 = arith.addf %44, %46 : vector<8x128xf32>
    %48 = vector.broadcast %9 : f32 to vector<8x128xf32>
    %49 = arith.mulf %48, %24 : vector<8x128xf32>
    %50 = arith.addf %47, %49 : vector<8x128xf32>
    %51 = vector.broadcast %10 : f32 to vector<8x128xf32>
    %52 = arith.addf %50, %51 : vector<8x128xf32>
    %53 = vector.broadcast %11 : f32 to vector<8x128xf32>
    %54 = arith.mulf %53, %20 : vector<8x128xf32>
    %55 = vector.broadcast %12 : f32 to vector<8x128xf32>
    %56 = arith.mulf %55, %22 : vector<8x128xf32>
    %57 = arith.addf %54, %56 : vector<8x128xf32>
    %58 = vector.broadcast %13 : f32 to vector<8x128xf32>
    %59 = arith.mulf %58, %24 : vector<8x128xf32>
    %60 = arith.addf %57, %59 : vector<8x128xf32>
    %61 = vector.broadcast %14 : f32 to vector<8x128xf32>
    %62 = arith.addf %60, %61 : vector<8x128xf32>
    %63 = arith.subf %26, %42 : vector<8x128xf32>
    %64 = arith.subf %28, %52 : vector<8x128xf32>
    %65 = arith.subf %30, %62 : vector<8x128xf32>
    %66 = arith.mulf %63, %63 : vector<8x128xf32>
    %67 = arith.mulf %64, %64 : vector<8x128xf32>
    %68 = arith.addf %66, %67 : vector<8x128xf32>
    %69 = arith.mulf %65, %65 : vector<8x128xf32>
    %70 = arith.addf %68, %69 : vector<8x128xf32>
    %cst_5 = arith.constant 1.000000e+00 : f32
    %71 = vector.broadcast %cst_5 : f32 to vector<8x128xf32>
    %72 = arith.cmpf olt, %70, %71 : vector<8x128xf32>
    %cst_6 = arith.constant 0.000000e+00 : f32
    %73 = vector.broadcast %cst_6 : f32 to vector<8x128xf32>
    %74 = arith.select %72, %32, %73 : vector<8x128xi1>, vector<8x128xf32>
    %75 = arith.mulf %74, %26 : vector<8x128xf32>
    %76 = arith.mulf %74, %28 : vector<8x128xf32>
    %77 = arith.mulf %74, %30 : vector<8x128xf32>
    %78 = arith.mulf %74, %20 : vector<8x128xf32>
    %79 = arith.mulf %74, %22 : vector<8x128xf32>
    %80 = arith.mulf %74, %24 : vector<8x128xf32>
    %81 = arith.mulf %75, %20 : vector<8x128xf32>
    %82 = arith.mulf %75, %22 : vector<8x128xf32>
    %83 = arith.mulf %75, %24 : vector<8x128xf32>
    %84 = arith.mulf %76, %20 : vector<8x128xf32>
    %85 = arith.mulf %76, %22 : vector<8x128xf32>
    %86 = arith.mulf %76, %24 : vector<8x128xf32>
    %87 = arith.mulf %77, %20 : vector<8x128xf32>
    %88 = arith.mulf %77, %22 : vector<8x128xf32>
    %89 = arith.mulf %77, %24 : vector<8x128xf32>
    %cst_7 = arith.constant dense<0.000000e+00> : vector<128xf32>
    %90 = vector.multi_reduction <add>, %74, %cst_7 [0] : vector<8x128xf32> to vector<128xf32>
    %91 = vector.shape_cast %90 : vector<128xf32> to vector<1x128xf32>
    %cst_8 = arith.constant dense<0.000000e+00> : vector<128xf32>
    %92 = vector.multi_reduction <add>, %78, %cst_8 [0] : vector<8x128xf32> to vector<128xf32>
    %93 = vector.shape_cast %92 : vector<128xf32> to vector<1x128xf32>
    %cst_9 = arith.constant dense<0.000000e+00> : vector<128xf32>
    %94 = vector.multi_reduction <add>, %79, %cst_9 [0] : vector<8x128xf32> to vector<128xf32>
    %95 = vector.shape_cast %94 : vector<128xf32> to vector<1x128xf32>
    %cst_10 = arith.constant dense<0.000000e+00> : vector<128xf32>
    %96 = vector.multi_reduction <add>, %80, %cst_10 [0] : vector<8x128xf32> to vector<128xf32>
    %97 = vector.shape_cast %96 : vector<128xf32> to vector<1x128xf32>
    %cst_11 = arith.constant dense<0.000000e+00> : vector<128xf32>
    %98 = vector.multi_reduction <add>, %75, %cst_11 [0] : vector<8x128xf32> to vector<128xf32>
    %99 = vector.shape_cast %98 : vector<128xf32> to vector<1x128xf32>
    %cst_12 = arith.constant dense<0.000000e+00> : vector<128xf32>
    %100 = vector.multi_reduction <add>, %76, %cst_12 [0] : vector<8x128xf32> to vector<128xf32>
    %101 = vector.shape_cast %100 : vector<128xf32> to vector<1x128xf32>
    %cst_13 = arith.constant dense<0.000000e+00> : vector<128xf32>
    %102 = vector.multi_reduction <add>, %77, %cst_13 [0] : vector<8x128xf32> to vector<128xf32>
    %103 = vector.shape_cast %102 : vector<128xf32> to vector<1x128xf32>
    %cst_14 = arith.constant dense<0.000000e+00> : vector<128xf32>
    %104 = vector.multi_reduction <add>, %81, %cst_14 [0] : vector<8x128xf32> to vector<128xf32>
    %105 = vector.shape_cast %104 : vector<128xf32> to vector<1x128xf32>
    %cst_15 = arith.constant dense<0.000000e+00> : vector<128xf32>
    %106 = vector.multi_reduction <add>, %82, %cst_15 [0] : vector<8x128xf32> to vector<128xf32>
    %107 = vector.shape_cast %106 : vector<128xf32> to vector<1x128xf32>
    %cst_16 = arith.constant dense<0.000000e+00> : vector<128xf32>
    %108 = vector.multi_reduction <add>, %83, %cst_16 [0] : vector<8x128xf32> to vector<128xf32>
    %109 = vector.shape_cast %108 : vector<128xf32> to vector<1x128xf32>
    %cst_17 = arith.constant dense<0.000000e+00> : vector<128xf32>
    %110 = vector.multi_reduction <add>, %84, %cst_17 [0] : vector<8x128xf32> to vector<128xf32>
    %111 = vector.shape_cast %110 : vector<128xf32> to vector<1x128xf32>
    %cst_18 = arith.constant dense<0.000000e+00> : vector<128xf32>
    %112 = vector.multi_reduction <add>, %85, %cst_18 [0] : vector<8x128xf32> to vector<128xf32>
    %113 = vector.shape_cast %112 : vector<128xf32> to vector<1x128xf32>
    %cst_19 = arith.constant dense<0.000000e+00> : vector<128xf32>
    %114 = vector.multi_reduction <add>, %86, %cst_19 [0] : vector<8x128xf32> to vector<128xf32>
    %115 = vector.shape_cast %114 : vector<128xf32> to vector<1x128xf32>
    %cst_20 = arith.constant dense<0.000000e+00> : vector<128xf32>
    %116 = vector.multi_reduction <add>, %87, %cst_20 [0] : vector<8x128xf32> to vector<128xf32>
    %117 = vector.shape_cast %116 : vector<128xf32> to vector<1x128xf32>
    %cst_21 = arith.constant dense<0.000000e+00> : vector<128xf32>
    %118 = vector.multi_reduction <add>, %88, %cst_21 [0] : vector<8x128xf32> to vector<128xf32>
    %119 = vector.shape_cast %118 : vector<128xf32> to vector<1x128xf32>
    %cst_22 = arith.constant dense<0.000000e+00> : vector<128xf32>
    %120 = vector.multi_reduction <add>, %89, %cst_22 [0] : vector<8x128xf32> to vector<128xf32>
    %121 = vector.shape_cast %120 : vector<128xf32> to vector<1x128xf32>
    %122 = tpu.concatenate %91, %93, %95, %97, %99, %101, %103, %105, %107, %109, %111, %113, %115, %117, %119, %121 in 0 : vector<1x128xf32>, vector<1x128xf32>, vector<1x128xf32>, vector<1x128xf32>, vector<1x128xf32>, vector<1x128xf32>, vector<1x128xf32>, vector<1x128xf32>, vector<1x128xf32>, vector<1x128xf32>, vector<1x128xf32>, vector<1x128xf32>, vector<1x128xf32>, vector<1x128xf32>, vector<1x128xf32>, vector<1x128xf32> -> vector<16x128xf32>
    %123 = arith.addf %15, %122 : vector<16x128xf32>
    %c1_i32 = arith.constant 1 : i32
    %c0_23 = arith.constant 0 : index
    %c0_24 = arith.constant 0 : index
    %124 = vector.load %arg3[%c0_23, %c0_24] : memref<16x128xf32, #tpu.memory_space<vmem>>, vector<16x128xf32>
    %125 = arith.addf %124, %123 : vector<16x128xf32>
    %c0_25 = arith.constant 0 : index
    %c0_26 = arith.constant 0 : index
    %126 = vector.load %arg3[%c0_25, %c0_26] : memref<16x128xf32, #tpu.memory_space<vmem>>, vector<16x128xf32>
    tpu.vector_store %arg3[%c0_25, %c0_26], %125 {strides = array<i32>} : memref<16x128xf32, #tpu.memory_space<vmem>>, vector<16x128xf32>,
    return
  }
  func.func @transform_0(%arg0: i32) -> i32 {
    %c0_i32 = arith.constant 0 : i32
    %c0_i32_0 = arith.constant 0 : i32
    return %c0_i32 : i32
  }
  func.func @transform_1(%arg0: i32) -> (i32, i32, i32, i32) {
    %c0_i32 = arith.constant 0 : i32
    %c0_i32_0 = arith.constant 0 : i32
    %c0_i32_1 = arith.constant 0 : i32
    %c0_i32_2 = arith.constant 0 : i32
    return %arg0, %c0_i32, %c0_i32_0, %c0_i32_1 : i32, i32, i32, i32
  }
  func.func @transform_2(%arg0: i32) -> (i32, i32) {
    %c0_i32 = arith.constant 0 : i32
    %c0_i32_0 = arith.constant 0 : i32
    %c0_i32_1 = arith.constant 0 : i32
    return %c0_i32, %c0_i32_0 : i32, i32
  }
}

</mosaic_0001>

<bundles_post_ra>
// kernel: custom-call.214
= control target key start
LH: loop header
LB: loop body
LE: loop exit
PB: predicated region body
PF: predicated region fallthrough
CT: control target
= control target key end

     0   :  { %s6_s0 = inlined_call_operand.hbm [shape: pred[128], index: 0, kind: output, shape index: {}]  }

// kernel: custom-call.251
= control target key start
LH: loop header
LB: loop body
LE: loop exit
PB: predicated region body
PF: predicated region fallthrough
CT: control target
= control target key end

     0   :  { %s559_s0 = inlined_call_operand.vmem [shape: f32[128,6,3], index: 0, kind: input, shape index: {}]   ;;  %s560_s1 = inlined_call_operand.vmem [shape: f32[128,6,3], index: 1, kind: output, shape index: {0}]   ;;  %s561_s2 = inlined_call_operand.vmem [shape: f32[128,3], index: 2, kind: output, shape index: {1}]  }
   0x1   :  { %v36_v0 = vld [vmem:[%s559_s0] sm:$0xff]  ;;  %v38_v1 = vld [vmem:[%s559_s0 + $0x8] sm:$0xff]  ;;  %v40_v2 = vld [vmem:[%s559_s0 + $0x10] sm:$0xff] }
   0x2   :  { %46 = vst [vmem:[#allocation1] sm:$0xff] %v36_v0 }
   0x3   :  { %50 = vst [vmem:[#allocation1 + $0x8] sm:$0xff] %v38_v1 }
   0x4   :  { %54 = vst [vmem:[#allocation1 + $0x10] sm:$0xff] %v40_v2 }
   0x5   :  { %v447_v3 = vmov 0.0   ;;  %s473_s15 = smov 0  }
   0x6   :  { %55 = vst [vmem:[#allocation2] sm:$0xff] %v447_v3 }
   0x7 LB: > { %v65_v4 = vlaneseq  ;;  %s397_s16 = sshll.u32 %s441_s15, 3  ;;  %v482_v6 = vstv %s441_s15  ;;  %s491_s17 = sadd.s32 1, %s441_s15   ;;  %s441_s15 = sphi %s473_s15, %s562_s15  }
   0x8   : > { %s484_s0 = scalar_lea.vmem [#allocation1], %s397_s16  ;;  %s224_s19 = scalar_lea.vmem [#allocation2], %s441_s15 }
   0x9   : > { %v479_v5 = vshrl.u32 %v65_v4, 7  ;;  %s97_s18 = scalar_lea.vmem %s484_s0, %s441_s15 [#allocation1]  ;;  %s218_s20 = scalar_lea.vmem [#allocation4], %s441_s15 }
   0xa   : > { %p388_p0 = scmp.ge.s32.totalorder %s491_s17, 3 }
   0xb   : > { %v64_v7 = vld [vmem:[%s484_s0] sm:$0xff]  ;;  %vm69_vm0 = vcmp.gt.s32.totalorder %v479_v5, %v482_v6  ;;  %vm70_vm1 = vcmp.lt.s32.totalorder %v479_v5, 6  ;;  %v193_v5 = vmov %v479_v5  ;;  %s190_s0 = smov %s484_s0  ;;  %s443_s21 = smov (!%p388_p0), %s491_s17  }
   0xc   : > { %vm71_vm2 = vmand %vm69_vm0, %vm70_vm1  ;;  %v499_v20 = vld [vmem:[%s97_s18] ss:$0 sm:$0xff]  ;;  %vm197_vm15 = vcmp.gt.s32.totalorder %v193_v5, %v482_v6  ;;  %vm198_vm0 = vcmp.lt.s32.totalorder %v193_v5, 6 }
   0xd   : > { %v72_v8 = vsel %vm71_vm2, %v64_v7, 0.0  ;;  %v99_v23 = vand.u32 2147483647, %v499_v20  ;;  %vm168_vm12 = vcmp.lt.f32.partialorder %v499_v20, 0.0 }
   0xe   : > { %v73_v9 = vmul.f32 %v72_v8, %v72_v8 }
   0xf   : > { %v100_v27 = vmax.f32 %v99_v23, 0.0 }
  0x10   : > { %v74_v10 = vrot.slane %v73_v9, 4 }
  0x12   : > { %v75_v11 = vadd.f32 %v74_v10, %v73_v9 }
  0x14   : > { %v76_v12 = vrot.slane %v75_v11, 2 }
  0x16   : > { %v77_v13 = vadd.f32 %v76_v12, %v75_v11 }
  0x18   : > { %v78_v14 = vrot.slane %v77_v13, 1 }
  0x1a   : > { %v493_v15 = vadd.f32 %v78_v14, %v77_v13 }
  0x1c   : > { %421 = vrsqrt.f32 %v493_v15  ;;  %vm87_vm3 = vcmp.eq.f32.partialorder %v493_v15, inf  ;;  %v90_v24 = vand.u32 2147483648, %v493_v15  ;;  %vm89_vm4 = vcmp.eq.f32.partialorder %v493_v15, 0.0 }
  0x22   : > { %v422_v16 = vpop.eup %421 }
  0x23   : > { %v81_v17 = vmul.f32 %v422_v16, %v493_v15 }
  0x25   : > { %v82_v18 = vmul.f32 %v422_v16, %v81_v17 }
  0x27   : > { %v83_v19 = vmul.f32 0.5, %v82_v18 }
  0x29   : > { %v84_v21 = vsub.f32 1.5, %v83_v19  ;;  %v194_v19 = vld [vmem:[%s190_s0] sm:$0xff] }
  0x2b   : > { %v85_v22 = vmul.f32 %v422_v16, %v84_v21 }
  0x2d   : > { %v86_v25 = vmul.f32 %v85_v22, %v493_v15 }
  0x2f   : > { %v88_v26 = vsel %vm87_vm3, %v493_v15, %v86_v25 }
  0x30   : > { %v91_v28 = vsel %vm89_vm4, %v90_v24, %v88_v26 }
  0x31   : > { %v101_v29 = vand.u32 2147483647, %v91_v28 }
  0x33   : > { %v102_v30 = vmax.f32 %v100_v27, %v101_v29 }
  0x35   : > { %423 = vrcp.f32 %v102_v30  ;;  %v114_v33 = vand.u32 2147483648, %v102_v30  ;;  %vm108_vm5 = vweird.f32 %v102_v30  ;;  %v112_v35 = vand.u32 2147483647, %v102_v30 }
  0x36   : > { %vm153_vm11 = vcmp.eq.f32.partialorder %v102_v30, 0.0 }
  0x37   : > { %v115_v37 = vor.u32 1.1754944e-38, %v114_v33  ;;  %vm113_vm8 = vcmp.eq.f32.partialorder %v112_v35, 8.507059e+37 }
  0x3b   : > { %v424_v31 = vpop.eup %423 }
  0x3c   : > { %v104_v32 = vmul.f32 %v424_v31, %v102_v30  ;;  %vm109_vm6 = vweird.f32 %v424_v31 }
  0x3d   : > { %vm110_vm7 = vmor %vm108_vm5, %vm109_vm6 }
  0x3e   : > { %v105_v34 = vsub.f32 1.0, %v104_v32  ;;  %vm199_vm6 = vmand %vm197_vm15, %vm198_vm0 }
  0x3f   : > { %v200_v25 = vsel %vm199_vm6, %v194_v19, 0.0 }
  0x40   : > { %v106_v36 = vmul.f32 %v424_v31, %v105_v34 }
  0x42   : > { %v107_v38 = vadd.f32 %v424_v31, %v106_v36 }
  0x44   : > { %v111_v39 = vsel %vm110_vm7, %v424_v31, %v107_v38  ;;  %v448_v31 = vmov 1.0  }
  0x45   : > { %v116_v40 = vsel %vm113_vm8, %v115_v37, %v111_v39 }
  0x46   : > { %v117_v41 = vmul.f32 %v116_v40, %v99_v23  ;;  %v133_v42 = vmul.f32 0.0, %v116_v40  ;;  %v150_v43 = vmul.f32 %v116_v40, %v101_v29 }
  0x48   : > { %v118_v44 = vmul.f32 %v117_v41, %v117_v41  ;;  %v134_v45 = vmul.f32 %v133_v42, %v133_v42  ;;  %v151_v46 = vmul.f32 %v150_v43, %v150_v43 }
  0x4a   : > { %v135_v47 = vadd.f32 %v134_v45, %v118_v44 }
  0x4c   : > { %v152_v48 = vadd.f32 %v151_v46, %v135_v47 }
  0x4e   : > { %425 = vrsqrt.f32 %v152_v48  ;;  %vm161_vm9 = vcmp.eq.f32.partialorder %v152_v48, inf  ;;  %v164_v55 = vand.u32 2147483648, %v152_v48  ;;  %vm163_vm10 = vcmp.eq.f32.partialorder %v152_v48, 0.0 }
  0x54   : > { %v426_v49 = vpop.eup %425 }
  0x55   : > { %v155_v50 = vmul.f32 %v426_v49, %v152_v48 }
  0x57   : > { %v156_v51 = vmul.f32 %v426_v49, %v155_v50 }
  0x59   : > { %v157_v52 = vmul.f32 0.5, %v156_v51 }
  0x5b   : > { %v158_v53 = vsub.f32 1.5, %v157_v52 }
  0x5d   : > { %v159_v54 = vmul.f32 %v426_v49, %v158_v53 }
  0x5f   : > { %v160_v56 = vmul.f32 %v159_v54, %v152_v48 }
  0x61   : > { %v162_v57 = vsel %vm161_vm9, %v152_v48, %v160_v56 }
  0x62   : > { %v165_v58 = vsel %vm163_vm10, %v164_v55, %v162_v57 }
  0x63   : > { %v166_v59 = vmul.f32 %v165_v58, %v102_v30 }
  0x65   : > { %v167_v60 = vsel %vm153_vm11, 0.0, %v166_v59 }
  0x66   : > { %v169_v61 = vxor.u32 2147483648, %v167_v60 }
  0x68   : > { %v170_v62 = vsel %vm168_vm12, %v167_v60, %v169_v61 }
  0x69   : > { %427 = vrcp.f32 %v170_v62  ;;  %v513_v63 = vsel %vm89_vm4, %v499_v20, %v170_v62  ;;  %v181_v3 = vand.u32 2147483647, %v170_v62  ;;  %v183_v4 = vand.u32 2147483648, %v170_v62 }
  0x6a   : > { %v189_v0 = vsub.f32 %v499_v20, %v513_v63  ;;  %vm177_vm13 = vweird.f32 %v170_v62  ;;  %v171_v9 = vsub.f32 %v170_v62, %v499_v20 }
  0x6b   : > { %vm182_vm2 = vcmp.eq.f32.partialorder %v181_v3, 8.507059e+37  ;;  %v184_v12 = vor.u32 1.1754944e-38, %v183_v4 }
  0x6c   : > { %429 = vrcp.f32 %v189_v0  ;;  %vm206_vm3 = vweird.f32 %v189_v0  ;;  %v212_v13 = vand.u32 2147483648, %v189_v0  ;;  %v210_v17 = vand.u32 2147483647, %v189_v0 }
  0x6e   : > { %v213_v22 = vor.u32 1.1754944e-38, %v212_v13  ;;  %vm211_vm8 = vcmp.eq.f32.partialorder %v210_v17, 8.507059e+37 }
  0x6f   : > { %v428_v1 = vpop.eup %427 }
  0x70   : > { %v173_v2 = vmul.f32 %v428_v1, %v170_v62  ;;  %vm178_vm14 = vweird.f32 %v428_v1 }
  0x71   : > { %vm179_vm1 = vmor %vm177_vm13, %vm178_vm14 }
  0x72   : > { %v174_v7 = vsub.f32 1.0, %v173_v2  ;;  %v430_v8 = vpop.eup %429 }
  0x73   : > { %v202_v11 = vmul.f32 %v430_v8, %v189_v0  ;;  %vm207_vm5 = vweird.f32 %v430_v8 }
  0x74   : > { %v175_v10 = vmul.f32 %v428_v1, %v174_v7  ;;  %vm208_vm7 = vmor %vm206_vm3, %vm207_vm5 }
  0x75   : > { %v203_v16 = vsub.f32 1.0, %v202_v11 }
  0x76   : > { %v176_v14 = vadd.f32 %v428_v1, %v175_v10 }
  0x77   : > { %v204_v20 = vmul.f32 %v430_v8, %v203_v16 }
  0x78   : > { %v180_v18 = vsel %vm179_vm1, %v428_v1, %v176_v14 }
  0x79   : > { %v185_v21 = vsel %vm182_vm2, %v184_v12, %v180_v18  ;;  %v205_v24 = vadd.f32 %v430_v8, %v204_v20 }
  0x7a   : > { %v186_v23 = vmul.f32 %v185_v21, %v171_v9 }
  0x7b   : > { %v209_v27 = vsel %vm208_vm7, %v430_v8, %v205_v24 }
  0x7c   : > { %v188_v26 = vsel %vm89_vm4, 0.0, %v186_v23  ;;  %v214_v28 = vsel %vm211_vm8, %v213_v22, %v209_v27 }
  0x7d   : > { %225 = vst [vmem:[%s224_s19] sm:$0x1] %v188_v26  ;;  %v215_v29 = vmul.f32 %v214_v28, %v200_v25  ;;  %389 = sbr.rel (%p388_p0) target bundleno = 160 (0xa0), region = 141 }
  0x7f   : > { %v216_v30 = vsel %vm89_vm4, 0.0, %v215_v29 }
  0x80   : > { %217 = vst [vmem:[#allocation4] sm:$0xff] %v216_v30 }
  0x81   : > { %219 = vst [vmem:[%s218_s20] sm:$0x1] %v448_v31 }
  0x82 LB: >> { %v235_v5 = vmov %v479_v5  ;;  %s400_s22 = sshll.u32 %s445_s21, 3  ;;  %s230_s21 = sadd.s32 1, %s445_s21   ;;  %s445_s21 = sphi %s443_s21, %s230_s21  }
  0x83   : >> { %s239_s23 = scalar_lea.vmem [#allocation1], %s400_s22  ;;  %vm242_vm4 = vcmp.lt.s32.totalorder %v235_v5, 6  ;;  %v252_v5 = vmov %v479_v5  ;;  %p229_p1 = scmp.ge.s32.totalorder %s230_s21, 3 }
  0x84   : >> { %v240_v15 = vld [vmem:[%s239_s23] sm:$0xff]  ;;  %vm261_vm9 = vcmp.ge.s32.totalorder %v252_v5, %v482_v6 }
  0x88   : >> { %v237_v32 = vld [vmem:[#allocation4] sm:$0xff] }
  0x89   : >> { %v241_v33 = vmul.f32 %v240_v15, %v237_v32 }
  0x8b   : >> { %v243_v34 = vsel %vm242_vm4, %v241_v33, 0.0 }
  0x8c   : >> { %v244_v35 = vrot.slane %v243_v34, 4 }
  0x8e   : >> { %v245_v36 = vadd.f32 %v244_v35, %v243_v34 }
  0x90   : >> { %v246_v37 = vrot.slane %v245_v36, 2 }
  0x92   : >> { %v247_v38 = vadd.f32 %v246_v37, %v245_v36 }
  0x94   : >> { %v248_v39 = vrot.slane %v247_v38, 1 }
  0x96   : >> { %v249_v40 = vadd.f32 %v248_v39, %v247_v38 }
  0x98   : >> { %v253_v41 = vmul.f32 %v249_v40, %v188_v26 }
  0x9a   : >> { %v256_v42 = vmul.f32 %v253_v41, %v237_v32 }
  0x9b   : > { %232 = sbr.rel (!%p229_p1) target bundleno = 130 (0x82), region = 147 }
  0x9c   : >> { %v262_v43 = vsub.f32 %v240_v15, %v256_v42 }
  0x9e   : >> { %v263_v44 = vsel %vm261_vm9, %v262_v43, %v240_v15 }
  0x9f   : >> { %264 = vst [vmem:[%s239_s23] sm:$0xff] %v263_v44 }
  0xa0 PF: > { %v267_v5 = vmov %v479_v5  ;;  %s562_s15 = smov %s491_s17 }
  0xa1   : > { %vm274_vm10 = vcmp.gt.s32.totalorder %v267_v5, %v482_v6  ;;  %vm277_vm11 = vcmp.eq.s32.totalorder %v267_v5, %v482_v6 }
  0xa2   :  { %v282_v49 = vld [vmem:[#allocation2] sm:$0xf] (%p388_p0) }
  0xa3   :  { %285 = vst [vmem:[#allocation3] sm:$0xf] (%p388_p0), %v282_v49 }
  0xa6   : > { %v269_v45 = vld [vmem:[#allocation4] sm:$0xff]  ;;  %60 = sbr.rel (!%p388_p0) target bundleno = 7 (0x7), region = 158 }
  0xa7   : > { %v272_v46 = vld [vmem:[%s484_s0] sm:$0xff] }
  0xa8   : > { %v275_v47 = vsel %vm274_vm10, %v269_v45, %v272_v46 }
  0xa9   : > { %v278_v48 = vsel %vm277_vm11, %v513_v63, %v275_v47 }
  0xaa   : > { %279 = vst [vmem:[%s484_s0] sm:$0xff] %v278_v48  ;;  %v343_v5 = vld [vmem:[#allocation3] sm:$0xf] (%p388_p0) }
  0xab   :  { %344 = vst [vmem:[%s561_s2] sm:$0xf] %v343_v5 }
  0xb1   :  { %v318_v50 = vld [vmem:[#allocation1] sm:$0xff]  ;;  %v320_v51 = vld [vmem:[#allocation1 + $0x8] sm:$0xff]  ;;  %v322_v52 = vld [vmem:[#allocation1 + $0x10] sm:$0xff] }
  0xb2   :  { %319 = vst [vmem:[%s560_s1] sm:$0xff] %v318_v50 }
  0xb3   :  { %321 = vst [vmem:[%s560_s1 + $0x8] sm:$0xff] %v320_v51 }
  0xb4   :  { %323 = vst [vmem:[%s560_s1 + $0x10] sm:$0xff] %v322_v52 }

// kernel: custom-call.252
= control target key start
LH: loop header
LB: loop body
LE: loop exit
PB: predicated region body
PF: predicated region fallthrough
CT: control target
= control target key end

     0   :  { %s240_s6 = smov 0   ;;  %s267_s0 = inlined_call_operand.vmem [shape: f32[128,3,3], index: 0, kind: input, shape index: {}]   ;;  %s268_s1 = inlined_call_operand.vmem [shape: f32[128,3,3], index: 1, kind: output, shape index: {}]  }
   0x1 LB: > { %s202_s7 = sadd.s32 4294967295, %s228_s6   ;;  %p204_p0 = scmp.ge.s32.totalorder %s228_s6, 128  ;;  %s228_s6 = sphi %s240_s6, %s7_s6  }
   0x2   : > { %s23_s8 = sand.u32 (!%p204_p0), 1, %s228_s6   ;;  %s206_s9 = sshll.u32 (!%p204_p0), %s228_s6, 2 }
   0x3   : > { %21 = sbr.rel (%p204_p0) target bundleno = 10 (0xa), region = 16  ;;  %s205_s10 = sshll.u32 (!%p204_p0), %s23_s8, 2 }
   0x4   : > { %s27_s13 = scalar_lea.vmem (!%p204_p0), %s267_s0, %s206_s9  ;;  %s25_s14 = scalar_lea.vmem (!%p204_p0), [#allocation1], %s205_s10 }
   0x8   : > { %v44_v0 = vld [vmem:[%s27_s13] sm:$0xf] }
   0x9   : > { %45 = vst [vmem:[%s25_s14] sm:$0xf] %v44_v0 }
   0xa PF: > { %p207_p1 = scmp.ge.s32.totalorder %s228_s6, 1  ;;  %p62_p2 = scmp.lt.s32.totalorder %s228_s6, 129 }
   0xc   : > { %p63_p3 = pnand %p207_p1, %p62_p2 }
   0xd   : > { %s256_s15 = sand.u32 (!%p63_p3), 1, %s202_s7   ;;  %s211_s19 = sshll.u32 (!%p63_p3), %s202_s7, 2 }
   0xe   : > { %66 = sbr.rel (%p63_p3) target bundleno = 285 (0x11d), region = 50  ;;  %s208_s16 = sshll.u32 (!%p63_p3), %s256_s15, 2 }
   0xf   : > { %s75_s17 = scalar_lea.vmem (!%p63_p3), [#allocation1], %s208_s16  ;;  %s79_s18 = scalar_lea.vmem (!%p63_p3), [#allocation3], %s208_s16 }
  0x10   : > { %s130_s22 = scalar_lea.vmem (!%p63_p3), %s268_s1, %s211_s19 }
  0x13   : > { %v84_v1 = vlaneseq  ;;  %v82_v2 = vld [vmem:[%s75_s17] sm:$0xf]  ;;  %vm98_vm1 = vcmask 23552  }
  0x14   : > { %83 = vst [vmem:[#allocation0] sm:$0xf] %v82_v2 }
  0x15   : > { %v85_v3 = vand.u32 127, %v84_v1  ;;  %v87_v4 = vshrl.u32 %v84_v1, 7 }
  0x17   : > { %vm93_vm0 = vcmp.eq.s32.totalorder %v85_v3, 0  ;;  %vm89_vm2 = vcmp.eq.s32.totalorder %v85_v3, %v87_v4  ;;  %vm102_vm3 = vcmp.eq.s32.totalorder %v85_v3, 1  ;;  %vm113_vm4 = vcmp.eq.s32.totalorder %v85_v3, 2 }
  0x1b   : > { %v90_v5 = vld [vmem:[#allocation0] sm:$0xff] }
  0x1c   : > { %v97_v6 = vld [vmem:[#allocation0 + $0x1] ss:$0 sm:$0xff]  ;;  %v94_v7 = vsel %vm93_vm0, %v90_v5, 1.0  ;;  %v108_v11 = vld [vmem:[#allocation0 + $0x2] ss:$0 sm:$0xff] }
  0x1d   : > { %v99_v8 = vsel %vm98_vm1, %v97_v6, 0.0  ;;  %v95_v9 = vsel %vm89_vm2, %v94_v7, 0.0  ;;  %v110_v12 = vsel %vm98_vm1, %v108_v11, 0.0 }
  0x1e   : > { %v103_v10 = vmul.f32 %v99_v8, %v95_v9 }
  0x20   : > { %104 = vadd.xlane.f32.xlu0 %v103_v10 }
  0x93   : > { %v105_v13 = vpop.xlane.xlu0 %104 }
  0x94   : > { %v106_v14 = vsel %vm102_vm3, %v105_v13, %v95_v9 }
  0x95   : > { %v114_v15 = vmul.f32 %v110_v12, %v106_v14 }
  0x97   : > { %115 = vadd.xlane.f32.xlu0 %v114_v15 }
 0x10a   : > { %v116_v16 = vpop.xlane.xlu0 %115 }
 0x10b   : > { %v117_v17 = vsel %vm113_vm4, %v116_v16, %v106_v14 }
 0x10c   : > { %118 = vst [vmem:[#allocation2] sm:$0xff] %v117_v17 }
 0x113   : > { %v121_v18 = vld [vmem:[#allocation2] sm:$0xf] }
 0x114   : > { %124 = vst [vmem:[%s79_s18] sm:$0xf] %v121_v18 }
 0x11b   : > { %v147_v19 = vld [vmem:[%s79_s18] sm:$0xf] }
 0x11c   : > { %148 = vst [vmem:[%s130_s22] sm:$0xf] %v147_v19 }
 0x11d PF: > { %s7_s6 = sadd.s32 1, %s228_s6  }
 0x11e   : > { %p4_p4 = scmp.ge.s32.totalorder %s7_s6, 130  }
 0x120   :  { %6 = sbr.rel (!%p4_p4) target bundleno = 1 (0x1), region = 112 }

// kernel: custom-call.249
= control target key start
LH: loop header
LB: loop body
LE: loop exit
PB: predicated region body
PF: predicated region fallthrough
CT: control target
= control target key end

     0   :  { %s374_s6 = smov 0   ;;  %s376_s7 = smov 0   ;;  %s426_s0 = inlined_call_operand.vmem [shape: f32[128,3,3], index: 0, kind: input, shape index: {}]   ;;  %s427_s1 = inlined_call_operand.vmem [shape: f32[128,3,3], index: 1, kind: output, shape index: {}]  }
   0x1   :  { %s378_s8 = smov 0  }
   0x2 LB: > { %s296_s9 = sadd.s32 4294967295, %s361_s8   ;;  %s26_s10 = sadd.s32 1, %s357_s7  ;;  %s361_s8 = sphi %s378_s8, %s7_s8   ;;  %s357_s7 = sphi %s376_s7, %s429_s7   ;;  %s353_s6 = sphi %s374_s6, %s428_s6  }
   0x3   : > { %p28_p0 = scmp.ge.s32.totalorder %s26_s10, 128  ;;  %p298_p1 = scmp.ge.s32.totalorder %s361_s8, 128 }
   0x4   : > { %s42_s11 = sand.u32 (!%p298_p1), 1, %s361_s8   ;;  %s300_s12 = sshll.u32 (!%p298_p1), %s357_s7, 2 }
   0x5   : > { %s431_s10 = smov (%p28_p0, %s26_s10), 0  ;;  %40 = sbr.rel (%p298_p1) target bundleno = 12 (0xc), region = 16 }
   0x6   : > { %s299_s13 = sshll.u32 (!%p298_p1), %s42_s11, 2  ;;  %s48_s16 = scalar_lea.vmem (!%p298_p1), %s426_s0, %s300_s12 }
   0x7   : > { %s44_s17 = scalar_lea.vmem (!%p298_p1), [#allocation1], %s299_s13 }
   0xa   : > { %v65_v0 = vld [vmem:[%s48_s16] sm:$0xf] }
   0xb   : > { %66 = vst [vmem:[%s44_s17] sm:$0xf] %v65_v0 }
   0xc PF: > { %p301_p2 = scmp.ge.s32.totalorder %s361_s8, 1  ;;  %p83_p3 = scmp.lt.s32.totalorder %s361_s8, 129 }
   0xe   : > { %p84_p4 = pnand %p301_p2, %p83_p3 }
   0xf   : > { %s401_s18 = sand.u32 (!%p84_p4), 1, %s296_s9   ;;  %s305_s22 = sshll.u32 (!%p84_p4), %s353_s6, 2 }
  0x10   : > { %87 = sbr.rel (%p84_p4) target bundleno = 490 (0x1ea), region = 50  ;;  %s302_s19 = sshll.u32 (!%p84_p4), %s401_s18, 2 }
  0x11   : > { %s96_s20 = scalar_lea.vmem (!%p84_p4), [#allocation1], %s302_s19  ;;  %s100_s21 = scalar_lea.vmem (!%p84_p4), [#allocation3], %s302_s19 }
  0x12   : > { %s208_s25 = scalar_lea.vmem (!%p84_p4), %s427_s1, %s305_s22 }
  0x15   : > { %v363_v1 = vmov 0.0   ;;  %v103_v5 = vld [vmem:[%s96_s20] sm:$0xf]  ;;  %vm106_vm3 = vcmask 7168   ;;  %vm133_vm5 = vcmask 15368   ;;  %vm159_vm6 = vcmask 1047553  }
  0x16   : > { %105 = vst [vmem:[#allocation2] sm:$0xff] %v363_v1  ;;  %vm160_vm9 = vmand %vm133_vm5, %vm159_vm6  ;;  %vm164_vm11 = vcmask 23568   ;;  %vm190_vm12 = vcmask 1047554  }
  0x17   : > { %104 = vst [vmem:[#allocation0] sm:$0xf] %v103_v5  ;;  %vm191_vm15 = vmand %vm164_vm11, %vm190_vm12 }
  0x1d   : > { %v107_v2 = vld [vmem:[#allocation2] ss:$0 sm:$0xff] }
  0x1e   : > { %v109_v3 = vmul.f32 %v107_v2, %v107_v2  ;;  %v125_v4 = vmul.f32 0.0, %v107_v2  ;;  %v108_v6 = vld [vmem:[#allocation0] ss:$0 sm:$0xff]  ;;  %v137_v24 = vld [vmem:[#allocation0 + $0x1] ss:$0 sm:$0xff] }
  0x1f   : > { %v406_v14 = vld [vmem:[#allocation0] sm:$0xff] }
  0x20   : > { %110 = vadd.xlane.f32.xlu0 %v109_v3  ;;  %v168_v42 = vld [vmem:[#allocation0 + $0x2] ss:$0 sm:$0xff] }
  0x28   : > { %126 = vadd.xlane.f32.xlu0 %v125_v4 }
  0x93   : > { %v111_v7 = vpop.xlane.xlu0 %110 }
  0x94   : > { %v112_v8 = vsub.f32 %v108_v6, %v111_v7 }
  0x96   : > { %333 = vrsqrt.f32 %v112_v8  ;;  %vm119_vm1 = vweird.f32 %v112_v8 }
  0x9b   : > { %v127_v13 = vpop.xlane.xlu0 %126 }
  0x9c   : > { %v334_v9 = vpop.eup %333  ;;  %v128_v16 = vsub.f32 %v406_v14, %v127_v13 }
  0x9d   : > { %v114_v10 = vmul.f32 %v334_v9, %v112_v8  ;;  %vm120_vm0 = vweird.f32 %v334_v9 }
  0x9e   : > { %vm121_vm2 = vmor %vm119_vm1, %vm120_vm0 }
  0x9f   : > { %v115_v11 = vmul.f32 %v334_v9, %v114_v10 }
  0xa1   : > { %v116_v12 = vmul.f32 0.5, %v115_v11 }
  0xa3   : > { %v117_v15 = vsub.f32 1.5, %v116_v12 }
  0xa5   : > { %v118_v17 = vmul.f32 %v334_v9, %v117_v15 }
  0xa7   : > { %v122_v18 = vsel %vm121_vm2, %v334_v9, %v118_v17 }
  0xa8   : > { %v129_v19 = vmul.f32 %v128_v16, %v122_v18 }
  0xaa   : > { %v130_v20 = vsel %vm106_vm3, %v129_v19, 0.0 }
  0xab   : > { %132 = vst [vmem:[#allocation2] sm:$0xff] %v130_v20 }
  0xb2   : > { %v135_v21 = vld [vmem:[#allocation2 + $0x1] ss:$0 sm:$0xff] }
  0xb3   : > { %v138_v22 = vmul.f32 %v135_v21, %v135_v21  ;;  %v154_v23 = vmul.f32 %v135_v21, %v130_v20 }
  0xb5   : > { %139 = vadd.xlane.f32.xlu1 %v138_v22 }
  0xbd   : > { %155 = vadd.xlane.f32.xlu1 %v154_v23 }
 0x128   : > { %v140_v25 = vpop.xlane.xlu1 %139 }
 0x129   : > { %v141_v26 = vsub.f32 %v137_v24, %v140_v25 }
 0x12b   : > { %335 = vrsqrt.f32 %v141_v26  ;;  %vm148_vm7 = vweird.f32 %v141_v26 }
 0x130   : > { %v156_v32 = vpop.xlane.xlu1 %155 }
 0x131   : > { %v336_v27 = vpop.eup %335  ;;  %v157_v34 = vsub.f32 %v406_v14, %v156_v32 }
 0x132   : > { %v143_v28 = vmul.f32 %v336_v27, %v141_v26  ;;  %vm149_vm4 = vweird.f32 %v336_v27 }
 0x133   : > { %vm150_vm8 = vmor %vm148_vm7, %vm149_vm4 }
 0x134   : > { %v144_v29 = vmul.f32 %v336_v27, %v143_v28 }
 0x136   : > { %v145_v30 = vmul.f32 0.5, %v144_v29 }
 0x138   : > { %v146_v31 = vsub.f32 1.5, %v145_v30 }
 0x13a   : > { %v147_v33 = vmul.f32 %v336_v27, %v146_v31 }
 0x13c   : > { %v151_v35 = vsel %vm150_vm8, %v336_v27, %v147_v33 }
 0x13d   : > { %v158_v36 = vmul.f32 %v157_v34, %v151_v35 }
 0x13f   : > { %v161_v37 = vsel %vm160_vm9, %v158_v36, 0.0 }
 0x140   : > { %v162_v38 = vadd.f32 %v161_v37, %v130_v20 }
 0x142   : > { %163 = vst [vmem:[#allocation2] sm:$0xff] %v162_v38 }
 0x149   : > { %v166_v39 = vld [vmem:[#allocation2 + $0x2] ss:$0 sm:$0xff] }
 0x14a   : > { %v169_v40 = vmul.f32 %v166_v39, %v166_v39  ;;  %v185_v41 = vmul.f32 %v166_v39, %v162_v38 }
 0x14c   : > { %170 = vadd.xlane.f32.xlu2 %v169_v40 }
 0x154   : > { %186 = vadd.xlane.f32.xlu2 %v185_v41 }
 0x1bf   : > { %v171_v43 = vpop.xlane.xlu2 %170 }
 0x1c0   : > { %v172_v44 = vsub.f32 %v168_v42, %v171_v43 }
 0x1c2   : > { %337 = vrsqrt.f32 %v172_v44  ;;  %vm179_vm13 = vweird.f32 %v172_v44 }
 0x1c7   : > { %v187_v50 = vpop.xlane.xlu2 %186 }
 0x1c8   : > { %v338_v45 = vpop.eup %337  ;;  %v188_v52 = vsub.f32 %v406_v14, %v187_v50 }
 0x1c9   : > { %v174_v46 = vmul.f32 %v338_v45, %v172_v44  ;;  %vm180_vm10 = vweird.f32 %v338_v45 }
 0x1ca   : > { %vm181_vm14 = vmor %vm179_vm13, %vm180_vm10 }
 0x1cb   : > { %v175_v47 = vmul.f32 %v338_v45, %v174_v46 }
 0x1cd   : > { %v176_v48 = vmul.f32 0.5, %v175_v47 }
 0x1cf   : > { %v177_v49 = vsub.f32 1.5, %v176_v48 }
 0x1d1   : > { %v178_v51 = vmul.f32 %v338_v45, %v177_v49 }
 0x1d3   : > { %v182_v53 = vsel %vm181_vm14, %v338_v45, %v178_v51 }
 0x1d4   : > { %v189_v54 = vmul.f32 %v188_v52, %v182_v53 }
 0x1d6   : > { %v192_v55 = vsel %vm191_vm15, %v189_v54, 0.0 }
 0x1d7   : > { %v193_v56 = vadd.f32 %v192_v55, %v162_v38 }
 0x1d9   : > { %194 = vst [vmem:[#allocation2] sm:$0xff] %v193_v56 }
 0x1e0   : > { %v197_v57 = vld [vmem:[#allocation2] sm:$0xf] }
 0x1e1   : > { %200 = vst [vmem:[%s100_s21] sm:$0xf] %v197_v57 }
 0x1e8   : > { %v225_v58 = vld [vmem:[%s100_s21] sm:$0xf] }
 0x1e9   : > { %226 = vst [vmem:[%s208_s25] sm:$0xf] %v225_v58 }
 0x1ea PF: > { %s7_s8 = sadd.s32 1, %s361_s8   ;;  %s428_s6 = smov %s357_s7 }
 0x1eb   : > { %p4_p5 = scmp.ge.s32.totalorder %s7_s8, 130   ;;  %s429_s7 = smov %s431_s10 }
 0x1ed   :  { %6 = sbr.rel (!%p4_p5) target bundleno = 2 (0x2), region = 114 }

// kernel: custom-call.250
= control target key start
LH: loop header
LB: loop body
LE: loop exit
PB: predicated region body
PF: predicated region fallthrough
CT: control target
= control target key end

     0   :  { %s414_s10 = smov 0   ;;  %s452_s0 = inlined_call_operand.vmem [shape: f32[128,1,3,3], index: 0, kind: input, shape index: {}]   ;;  %s453_s1 = inlined_call_operand.vmem [shape: f32[128,1,3,3], index: 1, kind: output, shape index: {}]  }
   0x1   :  { %v18_v0 = vld [vmem:[%s452_s0] sm:$0xff]   ;;  %v22_v1 = vld [vmem:[%s452_s0 + $0x8] sm:$0xf] }
   0x2   :  { %19 = vst [vmem:[#allocation1] sm:$0xff] %v18_v0  }
   0x3   :  { %23 = vst [vmem:[#allocation1 + $0x8] sm:$0xf] %v22_v1 }
   0x9   :  { %v58_v2 = vld [vmem:[#allocation1 + $0x4] sm:$0xf]  ;;  %v61_v3 = vld [vmem:[#allocation1] sm:$0xf] }
   0xa   :  { %v54_v4 = vld [vmem:[#allocation1 + $0x8] sm:$0xf]  ;;  %60 = vst [vmem:[#allocation0 + $0x8] sm:$0xf] %v58_v2 }
   0xb   :  { %56 = vst [vmem:[#allocation0 + $0x10] sm:$0xf] %v54_v4 }
   0xc   :  { %62 = vst [vmem:[#allocation0] sm:$0xf] %v61_v3 }
   0xd LB: > { %s420_s0 = sshll.u32 %s382_s10, 3  ;;  %s73_s13 = scalar_lea.vmem [#allocation5], %s382_s10  ;;  %v79_v6 = vlaneseq  ;;  %v82_v8 = vstv %s382_s10  ;;  %s382_s10 = sphi %s414_s10, %s68_s10  }
   0xe   : > { %s70_s11 = sadd.s32 %s382_s10, %s420_s0  ;;  %s76_s14 = scalar_lea.vmem [#allocation0], %s420_s0 }
   0xf   : > { %s71_s12 = scalar_lea.vmem [#allocation0], %s70_s11  ;;  %v80_v7 = vshrl.u32 %v79_v6, 7  ;;  %s77_s15 = scalar_lea.vmem [#allocation4], %s420_s0 }
  0x10   : > { %s68_s10 = sadd.s32 1, %s382_s10  }
  0x11   : > { %vm83_vm0 = vcmp.ge.s32.totalorder %v82_v8, %v80_v7  ;;  %vm84_vm1 = vcmp.lt.s32.totalorder %v80_v7, 3  ;;  %p65_p0 = scmp.ge.s32.totalorder %s68_s10, 3  }
  0x12   : > { %vm85_vm4 = vmand %vm83_vm0, %vm84_vm1  ;;  %s384_s16 = smov (%p65_p0), 0  }
  0x13   : > { %v72_v5 = vld [vmem:[%s71_s12] ss:$0 sm:$0xff] }
  0x14   : > { %74 = vst [vmem:[%s73_s13] sm:$0x1] %v72_v5  ;;  %360 = vrcp.f32 %v72_v5  ;;  %v98_v11 = vand.u32 2147483648, %v72_v5  ;;  %vm92_vm2 = vweird.f32 %v72_v5  ;;  %v96_v13 = vand.u32 2147483647, %v72_v5  ;;  %v78_v14 = vld [vmem:[%s76_s14] sm:$0xff] }
  0x15   : > { %v86_v18 = vsel %vm85_vm4, %v78_v14, 0.0 }
  0x16   : > { %v99_v16 = vor.u32 1.1754944e-38, %v98_v11  ;;  %vm97_vm6 = vcmp.eq.f32.partialorder %v96_v13, 8.507059e+37 }
  0x1a   : > { %v361_v9 = vpop.eup %360 }
  0x1b   : > { %v88_v10 = vmul.f32 %v361_v9, %v72_v5  ;;  %vm93_vm3 = vweird.f32 %v361_v9 }
  0x1c   : > { %vm94_vm5 = vmor %vm92_vm2, %vm93_vm3 }
  0x1d   : > { %v89_v12 = vsub.f32 1.0, %v88_v10 }
  0x1f   : > { %v90_v15 = vmul.f32 %v361_v9, %v89_v12 }
  0x21   : > { %v91_v17 = vadd.f32 %v361_v9, %v90_v15 }
  0x23   : > { %v95_v19 = vsel %vm94_vm5, %v361_v9, %v91_v17 }
  0x24   : > { %v100_v20 = vsel %vm97_vm6, %v99_v16, %v95_v19 }
  0x25   : > { %v101_v21 = vmul.f32 %v100_v20, %v86_v18  ;;  %67 = sbr.rel (!%p65_p0) target bundleno = 13 (0xd), region = 144 }
  0x27   : > { %v102_v22 = vxor.u32 2147483648, %v101_v21 }
  0x29   : > { %103 = vst [vmem:[%s77_s15] sm:$0xff] %v102_v22 }
  0x2a LB: > { %v110_v23 = vstv %s386_s16  ;;  %s319_s17 = sshll.u32 %s386_s16, 3  ;;  %v396_v24 = vmov 0.0   ;;  %s109_s16 = sadd.s32 1, %s386_s16   ;;  %s386_s16 = sphi %s384_s16, %s109_s16  }
  0x2b   : > { %vm114_vm7 = vcmp.eq.s32.totalorder %v110_v23, %v80_v7  ;;  %s116_s18 = scalar_lea.vmem [#allocation2], %s319_s17  ;;  %p106_p1 = scmp.ge.s32.totalorder %s109_s16, 3  }
  0x2c   : > { %v117_v25 = vsel %vm114_vm7, -1.0, %v396_v24  ;;  %v397_v26 = vmov (%p106_p1), 1.0   ;;  %s431_s19 = smov (%p106_p1), 1  }
  0x2d   : > { %118 = vst [vmem:[%s116_s18] sm:$0xff] %v117_v25  ;;  %108 = sbr.rel (!%p106_p1) target bundleno = 42 (0x2a), region = 155 }
  0x2e   :  { %119 = vst [vmem:[#allocation2] sm:$0x1] (%p106_p1), %v397_v26 }
  0x32 LB: > { %s320_s20 = sshll.u32 %s390_s19, 3  ;;  %s131_s22 = scalar_lea.vmem [#allocation2], %s390_s19  ;;  %s390_s19 = sphi %s431_s19, %s125_s19  }
  0x33   : > { %s127_s21 = scalar_lea.vmem [#allocation4], %s320_s20  ;;  %s125_s19 = sadd.s32 1, %s390_s19  }
  0x34   : > { %v128_v28 = vld [vmem:[%s127_s21] sm:$0xff]  ;;  %p122_p2 = scmp.ge.s32.totalorder %s125_s19, 3  }
  0x35   : > { %v129_v27 = vld [vmem:[#allocation2] sm:$0xff]  ;;  %s441_s23 = smov (%p122_p2), 0  }
  0x36   : > { %v130_v29 = vmul.f32 %v129_v27, %v128_v28 }
  0x38   : > { %v132_v30 = vrot.slane %v130_v29, 4 }
  0x3a   : > { %v133_v31 = vadd.f32 %v132_v30, %v130_v29 }
  0x3c   : > { %v134_v32 = vrot.slane %v133_v31, 2 }
  0x3e   : > { %v135_v33 = vadd.f32 %v134_v32, %v133_v31 }
  0x40   : > { %v136_v34 = vrot.slane %v135_v33, 1 }
  0x42   : > { %v137_v35 = vadd.f32 %v136_v34, %v135_v33 }
  0x44   : > { %138 = vst [vmem:[%s131_s22] sm:$0x1] %v137_v35 }
  0x4b   : > { %v143_v36 = vld [vmem:[#allocation2 + $0x8] sm:$0xff] }
  0x4c   : > { %v144_v37 = vmul.f32 %v143_v36, %v128_v28 }
  0x4e   : > { %v147_v38 = vrot.slane %v144_v37, 4 }
  0x50   : > { %v148_v39 = vadd.f32 %v147_v38, %v144_v37 }
  0x52   : > { %v149_v40 = vrot.slane %v148_v39, 2 }
  0x54   : > { %v150_v41 = vadd.f32 %v149_v40, %v148_v39 }
  0x56   : > { %v151_v42 = vrot.slane %v150_v41, 1 }
  0x58   : > { %v152_v43 = vadd.f32 %v151_v42, %v150_v41 }
  0x5a   : > { %322 = vst [vmem:[%s131_s22 + $0x8] sm:$0x1] %v152_v43 }
  0x61   : > { %v158_v44 = vld [vmem:[#allocation2 + $0x10] sm:$0xff] }
  0x62   : > { %v159_v45 = vmul.f32 %v158_v44, %v128_v28 }
  0x64   : > { %v162_v46 = vrot.slane %v159_v45, 4 }
  0x66   : > { %v163_v47 = vadd.f32 %v162_v46, %v159_v45 }
  0x68   : > { %v164_v48 = vrot.slane %v163_v47, 2 }
  0x6a   : > { %v165_v49 = vadd.f32 %v164_v48, %v163_v47 }
  0x6c   : > { %v166_v50 = vrot.slane %v165_v49, 1  ;;  %124 = sbr.rel (!%p122_p2) target bundleno = 50 (0x32), region = 166 }
  0x6e   : > { %v167_v51 = vadd.f32 %v166_v50, %v165_v49 }
  0x70   : > { %324 = vst [vmem:[%s131_s22 + $0x10] sm:$0x1] %v167_v51 }
  0x71 LB: > { %s175_s24 = scalar_lea.vmem [#allocation5], %s394_s23  ;;  %s325_s25 = sshll.u32 %s394_s23, 3  ;;  %s394_s23 = sphi %s441_s23, %s174_s23  }
  0x72   : > { %v176_v52 = vld [vmem:[%s175_s24] ss:$0 sm:$0xff]  ;;  %s178_s26 = scalar_lea.vmem [#allocation2], %s325_s25  ;;  %s174_s23 = sadd.s32 1, %s394_s23  }
  0x73   : > { %362 = vrcp.f32 %v176_v52  ;;  %v191_v55 = vand.u32 2147483648, %v176_v52  ;;  %vm185_vm8 = vweird.f32 %v176_v52  ;;  %v189_v57 = vand.u32 2147483647, %v176_v52  ;;  %p171_p3 = scmp.ge.s32.totalorder %s174_s23, 3  }
  0x75   : > { %v192_v59 = vor.u32 1.1754944e-38, %v191_v55  ;;  %vm190_vm11 = vcmp.eq.f32.partialorder %v189_v57, 8.507059e+37 }
  0x77   : > { %v179_v61 = vld [vmem:[%s178_s26] sm:$0xff] }
  0x79   : > { %v363_v53 = vpop.eup %362 }
  0x7a   : > { %v181_v54 = vmul.f32 %v363_v53, %v176_v52  ;;  %vm186_vm9 = vweird.f32 %v363_v53 }
  0x7b   : > { %vm187_vm10 = vmor %vm185_vm8, %vm186_vm9 }
  0x7c   : > { %v182_v56 = vsub.f32 1.0, %v181_v54 }
  0x7e   : > { %v183_v58 = vmul.f32 %v363_v53, %v182_v56 }
  0x80   : > { %v184_v60 = vadd.f32 %v363_v53, %v183_v58 }
  0x82   : > { %v188_v62 = vsel %vm187_vm10, %v363_v53, %v184_v60 }
  0x83   : > { %v193_v63 = vsel %vm190_vm11, %v192_v59, %v188_v62  ;;  %173 = sbr.rel (!%p171_p3) target bundleno = 113 (0x71), region = 177 }
  0x84   : > { %v194_v0 = vmul.f32 %v193_v63, %v179_v61 }
  0x86   : > { %v196_v1 = vsel %vm185_vm8, %v179_v61, %v194_v0 }
  0x87   : > { %197 = vst [vmem:[%s178_s26] sm:$0xff] %v196_v1 }
  0x8e   :  { %v200_v2 = vld [vmem:[#allocation2] sm:$0xf]  ;;  %v205_v3 = vld [vmem:[#allocation2 + $0x8] sm:$0xf]  ;;  %v211_v4 = vld [vmem:[#allocation2 + $0x10] sm:$0xf] }
  0x8f   :  { %203 = vst [vmem:[#allocation3] sm:$0xf] %v200_v2 }
  0x90   :  { %209 = vst [vmem:[#allocation3 + $0x4] sm:$0xf] %v205_v3 }
  0x91   :  { %215 = vst [vmem:[#allocation3 + $0x8] sm:$0xf] %v211_v4 }
  0x97   :  { %v232_v5 = vld [vmem:[#allocation3] sm:$0xff]  }
  0x98   :  { %233 = vst [vmem:[%s453_s1] sm:$0xff] %v232_v5   ;;  %v236_v6 = vld [vmem:[#allocation3 + $0x8] sm:$0xf] }
  0x99   :  { %237 = vst [vmem:[%s453_s1 + $0x8] sm:$0xf] %v236_v6 }

// kernel: custom-call.44
= control target key start
LH: loop header
LB: loop body
LE: loop exit
PB: predicated region body
PF: predicated region fallthrough
CT: control target
= control target key end

     0   :  { %s1752_s30 = smov 0   ;;  %s1754_s10 = smov 0   ;;  %s2085_s0 = inlined_call_operand.vmem [shape: f32[128,2,2], index: 0, kind: input, shape index: {}]   ;;  %s2086_s1 = inlined_call_operand.vmem [shape: f32[128,2,2], index: 1, kind: input, shape index: {}]   ;;  %s2087_s2 = inlined_call_operand.vmem [shape: f32[128,2,2], index: 2, kind: input, shape index: {}]   ;;  %s2088_s3 = inlined_call_operand.vmem [shape: f32[128,2,2], index: 3, kind: input, shape index: {}]   ;;  %s2089_s4 = inlined_call_operand.vmem [shape: f32[128,2], index: 4, kind: output, shape index: {0}]   ;;  %s2090_s5 = inlined_call_operand.vmem [shape: f32[128,2], index: 5, kind: output, shape index: {1}]   ;;  %s2091_s6 = inlined_call_operand.vmem [shape: f32[128,2,2], index: 6, kind: output, shape index: {2}]   ;;  %s2092_s7 = inlined_call_operand.vmem [shape: f32[128,2,2], index: 7, kind: output, shape index: {3}]   ;;  %s2093_s8 = inlined_call_operand.vmem [shape: f32[128,2,2], index: 8, kind: output, shape index: {4}]   ;;  %s2094_s9 = inlined_call_operand.vmem [shape: f32[128,2,2], index: 9, kind: output, shape index: {5}]  }
   0x1   :  { %s1756_s11 = smov 0  }
   0x2 LB: > { %s1768_s12 = sadd.s32 4294967295, %s1689_s11   ;;  %s1771_s13 = sadd.s32 1, %s1689_s11   ;;  %s1689_s11 = sphi %s1756_s11, %s2111_s11   ;;  %s1685_s10 = sphi %s1754_s10, %s2110_s10   ;;  %s1681_s30 = sphi %s1752_s30, %s2109_s30  }
   0x3   : > { %s20_s14 = sshrl.u32 %s1689_s11, 3  ;;  %s21_s15 = sshrl.u32 %s1771_s13, 3 }
   0x4   : > { %s22_s16 = ssub.s32 %s20_s14, %s21_s15  ;;  %s25_s17 = sadd.s32 1, %s1685_s10 }
   0x5   : > { %p23_p0 = scmp.eq.s32.totalorder %s22_s16, 0  ;;  %p35_p1 = scmp.ne.s32.totalorder %s1685_s10, %s1681_s30 }
   0x6   : > { %p36_p2 = scmp.eq.s32.totalorder %s1768_s12, 127  ;;  %p1550_p4 = scmp.ge.s32.totalorder %s1689_s11, 128 }
   0x7   : > { %s1780_s18 = scalar_select %p23_p0, %s1685_s10, %s25_s17  }
   0x8   : > { %p1782_p3 = por %p36_p2, %p35_p1  ;;  %86 = sbr.rel (%p1550_p4) target bundleno = 18 (0x12), region = 16 }
   0x9   : > { %2095 = sst [smem:[#allocation31_spill]] %s1780_s18  ;;  %s88_s20 = sand.u32 (!%p1550_p4), 1, %s1689_s11  }
   0xa   : > { %s1552_s21 = sshll.u32 (!%p1550_p4), %s1689_s11, 1  ;;  %s1551_s22 = sshll.u32 (!%p1550_p4), %s88_s20, 1 }
   0xb   : > { %s92_s25 = scalar_lea.vmem (!%p1550_p4), %s2085_s0, %s1552_s21  ;;  %s90_s26 = scalar_lea.vmem (!%p1550_p4), [#allocation1], %s1551_s22 }
   0xc   : > { %s131_s29 = scalar_lea.vmem (!%p1550_p4), %s2086_s1, %s1552_s21  ;;  %s170_s16 = scalar_lea.vmem (!%p1550_p4), %s2087_s2, %s1552_s21 }
   0xd   : > { %v109_v0 = vld [vmem:[%s92_s25] sm:$0x3]  ;;  %s129_s17 = scalar_lea.vmem [#allocation3], %s1551_s22  ;;  %s209_s23 = scalar_lea.vmem %s2088_s3, %s1552_s21 }
   0xe   : > { %110 = vst [vmem:[%s90_s26] sm:$0x3] %v109_v0  ;;  %v148_v1 = vld [vmem:[%s131_s29] sm:$0x3]  ;;  %s168_s24 = scalar_lea.vmem [#allocation5], %s1551_s22  ;;  %s207_s25 = scalar_lea.vmem [#allocation7], %s1551_s22 }
   0xf   : > { %149 = vst [vmem:[%s129_s17] sm:$0x3] %v148_v1  ;;  %v187_v2 = vld [vmem:[%s170_s16] sm:$0x3] }
  0x10   : > { %188 = vst [vmem:[%s168_s24] sm:$0x3] %v187_v2  ;;  %v226_v3 = vld [vmem:[%s209_s23] sm:$0x3] }
  0x11   : > { %227 = vst [vmem:[%s207_s25] sm:$0x3] %v226_v3 }
  0x12 PF: > { %p1559_p5 = scmp.ge.s32.totalorder %s1689_s11, 1  ;;  %p244_p6 = scmp.lt.s32.totalorder %s1689_s11, 129 }
  0x14   : > { %p245_p7 = pnand %p1559_p5, %p244_p6 }
  0x16   : > { %248 = sbr.rel (%p245_p7) target bundleno = 944 (0x3b0), region = 140 }
  0x1b   : > { %s267_s26 = sand.u32 1, %s1768_s12   ;;  %s285_s27 = sand.u32 1, %s1681_s30   ;;  %v345_v4 = vlaneseq  ;;  %v1699_v5 = vmov 0.0  }
  0x1c   : > { %s1805_s28 = sshll.u32 %s267_s26, 1  ;;  %s1807_s18 = sshll.u32 %s285_s27, 3  ;;  %340 = vst [vmem:[#allocation10] sm:$0xff] %v1699_v5 }
  0x1d   : > { %341 = vst [vmem:[#allocation12] sm:$0xff] %v1699_v5  ;;  %v1809_v6 = vand.u32 127, %v345_v4  ;;  %v1811_v7 = vshrl.u32 %v345_v4, 7  ;;  %s269_s11 = scalar_lea.vmem [#allocation1], %s1805_s28  ;;  %s273_s21 = scalar_lea.vmem [#allocation3], %s1805_s28 }
  0x1e   : > { %v312_v8 = vld [vmem:[%s269_s11] sm:$0x3]  ;;  %v316_v9 = vld [vmem:[%s273_s21] sm:$0x3]  ;;  %s277_s30 = scalar_lea.vmem [#allocation5], %s1805_s28  ;;  %s281_s22 = scalar_lea.vmem [#allocation7], %s1805_s28 }
  0x1f   : > { %313 = vst [vmem:[#allocation0] sm:$0x3] %v312_v8  ;;  %v320_v10 = vld [vmem:[%s277_s30] sm:$0x3]  ;;  %v324_v11 = vld [vmem:[%s281_s22] sm:$0x3]  ;;  %v347_v6 = vmov %v1809_v6  ;;  %v350_v7 = vmov %v1811_v7 }
  0x20   : > { %317 = vst [vmem:[#allocation2] sm:$0x3] %v316_v9  ;;  %s328_s29 = smov [#allocation18]  ;;  %s344_s14 = smov [#allocation10]  ;;  %vm354_vm0 = vcmp.eq.s32.totalorder %v350_v7, %v347_v6  ;;  %v360_v6 = vmov %v1809_v6  ;;  %v363_v7 = vmov %v1811_v7  ;;  %vm1439_vm2 = vcmp.lt.s32.totalorder %v1809_v6, 2 }
  0x21   : > { %321 = vst [vmem:[#allocation4] sm:$0x3] %v320_v10  ;;  %s331_s15 = smov [#allocation19]  ;;  %s334_s16 = smov [#allocation20]  ;;  %vm367_vm1 = vcmp.eq.s32.totalorder %v363_v7, %v360_v6  ;;  %v1431_v6 = vmov %v1809_v6  ;;  %v1434_v7 = vmov %v1811_v7 }
  0x22   : > { %325 = vst [vmem:[#allocation6] sm:$0x3] %v324_v11  ;;  %s337_s17 = smov [#allocation21]  ;;  %s357_s20 = smov [#allocation16]  ;;  %v1448_v6 = vmov %v1809_v6  ;;  %v1451_v7 = vmov %v1811_v7  ;;  %vm1444_vm3 = vcmp.eq.s32.totalorder %v1434_v7, %v1431_v6 }
  0x23   : > { %342 = vst [vmem:[#allocation14] sm:$0xff] %v1699_v5  ;;  %v351_v12 = vld [vmem:[%s344_s14] sm:$0x3]  ;;  %s297_s25 = scalar_lea.vmem [#allocation11], %s1805_s28  ;;  %s1435_s21 = smov [#allocation18]  ;;  %v1465_v6 = vmov %v1809_v6  ;;  %v1468_v7 = vmov %v1811_v7 }
  0x24   : > { %343 = vst [vmem:[#allocation16] sm:$0xff] %v1699_v5  ;;  %v355_v16 = vsel %vm354_vm0, 1.0, %v351_v12  ;;  %s1452_s30 = smov [#allocation19]  ;;  %s1469_s22 = smov [#allocation20]  ;;  %v1482_v6 = vmov %v1809_v6  ;;  %v1485_v7 = vmov %v1811_v7 }
  0x25   : > { %356 = vst [vmem:[%s344_s14] sm:$0x3] %v355_v16  ;;  %vm1495_vm4 = vcmp.eq.s32.totalorder %v1485_v7, %v1482_v6 }
  0x26   : > { %v329_v13 = vld [vmem:[#allocation0] sm:$0xff] }
  0x27   : > { %330 = vst [vmem:[%s328_s29] sm:$0xff] %v329_v13  ;;  %v332_v14 = vld [vmem:[#allocation2] sm:$0xff]  ;;  %s1486_s29 = smov [#allocation21] }
  0x28   : > { %333 = vst [vmem:[%s331_s15] sm:$0xff] %v332_v14  ;;  %v335_v15 = vld [vmem:[#allocation4] sm:$0xff] }
  0x29   : > { %336 = vst [vmem:[%s334_s16] sm:$0xff] %v335_v15  ;;  %v338_v17 = vld [vmem:[#allocation6] sm:$0xff] }
  0x2a   : > { %339 = vst [vmem:[%s337_s17] sm:$0xff] %v338_v17 }
  0x2b   : > { %v364_v18 = vld [vmem:[%s357_s20] sm:$0x3] }
  0x2c   : > { %v368_v19 = vsel %vm367_vm1, 1.0, %v364_v18 }
  0x2d   : > { %369 = vst [vmem:[%s357_s20] sm:$0x3] %v368_v19 }
  0x2e   : > { %v1441_v20 = vld [vmem:[%s1435_s21] sm:$0x3] }
  0x2f   : > { %v1458_v21 = vld [vmem:[%s1452_s30] sm:$0x3]  ;;  %v1442_v22 = vsel %vm1439_vm2, %v1441_v20, 0.0 }
  0x30   : > { %v1459_v23 = vsel %vm1439_vm2, %v1458_v21, 0.0  ;;  %v1475_v24 = vld [vmem:[%s1469_s22] sm:$0x3]  ;;  %v1443_v26 = vmul.f32 %v1442_v22, %v1442_v22 }
  0x31   : > { %v1492_v25 = vld [vmem:[%s1486_s29] sm:$0x3]  ;;  %v1460_v27 = vmul.f32 %v1459_v23, %v1459_v23  ;;  %v1476_v28 = vsel %vm1439_vm2, %v1475_v24, 0.0 }
  0x32   : > { %v1493_v29 = vsel %vm1439_vm2, %v1492_v25, 0.0  ;;  %v1477_v30 = vmul.f32 %v1476_v28, %v1476_v28  ;;  %v1445_v33 = vsel %vm1444_vm3, 0.0, %v1443_v26 }
  0x33   : > { %v1462_v31 = vadd.f32 %v1460_v27, %v1443_v26  ;;  %v1494_v32 = vmul.f32 %v1493_v29, %v1493_v29  ;;  %v1461_v35 = vadd.f32 %v1460_v27, %v1445_v33 }
  0x35   : > { %v1479_v34 = vadd.f32 %v1477_v30, %v1462_v31  ;;  %v1478_v37 = vadd.f32 %v1477_v30, %v1461_v35  ;;  %v1496_v38 = vsel %vm1495_vm4, 0.0, %v1494_v32 }
  0x37   : > { %v1498_v36 = vadd.f32 %v1494_v32, %v1479_v34  ;;  %v1497_v39 = vadd.f32 %v1496_v38, %v1478_v37 }
  0x39   : > { %1499 = vadd.xlane.f32.xlu0 %v1498_v36 }
  0x41   : > { %1507 = vadd.xlane.f32.xlu0 %v1497_v39 }
  0xac   : > { %v1500_v40 = vpop.xlane.xlu0 %1499 }
  0xad   : > { %v1501_v41 = vrot.slane %v1500_v40, 4 }
  0xaf   : > { %v1502_v42 = vadd.f32 %v1501_v41, %v1500_v40 }
  0xb1   : > { %v1503_v43 = vrot.slane %v1502_v42, 2 }
  0xb3   : > { %v1504_v47 = vadd.f32 %v1503_v43, %v1502_v42 }
  0xb4   : > { %v1508_v44 = vpop.xlane.xlu0 %1507 }
  0xb5   : > { %v1509_v45 = vrot.slane %v1508_v44, 4  ;;  %v1505_v50 = vrot.slane %v1504_v47, 1 }
  0xb7   : > { %v1510_v46 = vadd.f32 %v1509_v45, %v1508_v44  ;;  %v1506_v53 = vadd.f32 %v1505_v50, %v1504_v47 }
  0xb9   : > { %v1511_v48 = vrot.slane %v1510_v46, 2 }
  0xbb   : > { %v1512_v49 = vadd.f32 %v1511_v48, %v1510_v46 }
  0xbd   : > { %v1513_v51 = vrot.slane %v1512_v49, 1 }
  0xbf   : > { %v1514_v52 = vadd.f32 %v1513_v51, %v1512_v49 }
  0xc1   : > { %1600 = vpush %v1514_v52 }
  0xc2   : > { %1602 = vpush %v1506_v53 }
  0xf2   : > { %s1601_s14 = spop %1600 }
  0xf3   : > { %s1603_s15 = spop %1602 }
  0xf4   : > { %s1517_s16 = smul.f32 1e-10, %s1603_s15 }
  0xf6   : > { %p1518_p8 = scmp.le.f32.partialorder %s1601_s14, %s1517_s16 }
  0xf7   : > { %s1844_s17 = smov (!%p1518_p8), 0  }
  0xf8   : > { %1521 = sbr.rel (%p1518_p8) target bundleno = 906 (0x38a), region = 475 }
  0xfd LB: >> { %s1849_s20 = smov 0   ;;  %s1693_s17 = sphi %s1844_s17, %s2097_s17  }
  0xfe LB: >>> { %s474_s21 = smov [#allocation18]  ;;  %v478_v6 = vmov %v1809_v6  ;;  %v481_v7 = vmov %v1811_v7  ;;  %s494_s30 = smov [#allocation19]  ;;  %s1697_s20 = sphi %s1849_s20, %s473_s20  }
  0xff   : >>> { %v498_v6 = vmov %v1809_v6  ;;  %v501_v7 = vmov %v1811_v7  ;;  %v482_v54 = vld [vmem:[%s474_s21] sm:$0x3]  ;;  %vm485_vm5 = vcmp.eq.s32.totalorder %v481_v7, %v478_v6  ;;  %s514_s22 = smov [#allocation21]  ;;  %s475_s29 = smov [#allocation22] }
 0x100   : >>> { %vm505_vm6 = vcmp.eq.s32.totalorder %v501_v7, %v498_v6  ;;  %v518_v6 = vmov %v1809_v6  ;;  %v521_v7 = vmov %v1811_v7  ;;  %v486_v55 = vsel %vm485_vm5, %v482_v54, 0.0  ;;  %v502_v56 = vld [vmem:[%s494_s30] sm:$0x3]  ;;  %s495_s14 = smov [#allocation23]  ;;  %s515_s15 = smov [#allocation24] }
 0x101   : >>> { %vm525_vm7 = vcmp.eq.s32.totalorder %v521_v7, %v518_v6  ;;  %v487_v57 = vrot.slane %v486_v55, 4  ;;  %v506_v58 = vsel %vm505_vm6, %v502_v56, 0.0  ;;  %v522_v59 = vld [vmem:[%s514_s22] sm:$0x3]  ;;  %s538_s16 = smov [#allocation23]  ;;  %s536_s21 = smov [#allocation22]  ;;  %v627_v6 = vmov %v1809_v6 }
 0x102   : >>> { %v507_v60 = vrot.slane %v506_v58, 4  ;;  %v526_v61 = vsel %vm525_vm7, %v522_v59, 0.0  ;;  %s540_s30 = smov [#allocation24]  ;;  %s615_s22 = smov [#allocation25]  ;;  %v630_v7 = vmov %v1811_v7 }
 0x103   : >>> { %v488_v62 = vadd.f32 %v487_v57, %v486_v55  ;;  %v527_v63 = vrot.slane %v526_v61, 4  ;;  %s1875_s24 = smov [#allocation10]  ;;  %s1877_s23 = smov [#allocation12] }
 0x104   : >>> { %v508_v0 = vadd.f32 %v507_v60, %v506_v58  ;;  %s1882_s11 = smov [#allocation14]  ;;  %s879_s27 = smov [#allocation30] }
 0x105   : >>> { %v489_v1 = vrot.slane %v488_v62, 2  ;;  %v528_v2 = vadd.f32 %v527_v63, %v526_v61  ;;  %s1885_s26 = smov [#allocation16]  ;;  %s473_s20 = sadd.s32 1, %s1697_s20  }
 0x106   : >>> { %v509_v3 = vrot.slane %v508_v0, 2  ;;  %p470_p9 = scmp.ge.s32.totalorder %s473_s20, 3  }
 0x107   : >>> { %v490_v4 = vadd.f32 %v489_v1, %v488_v62  ;;  %v529_v5 = vrot.slane %v528_v2, 2 }
 0x108   : >>> { %v510_v8 = vadd.f32 %v509_v3, %v508_v0 }
 0x109   : >>> { %v491_v9 = vrot.slane %v490_v4, 1  ;;  %v530_v10 = vadd.f32 %v529_v5, %v528_v2 }
 0x10a   : >>> { %v511_v11 = vrot.slane %v510_v8, 1 }
 0x10b   : >>> { %v492_v12 = vadd.f32 %v491_v9, %v490_v4  ;;  %v531_v13 = vrot.slane %v530_v10, 1 }
 0x10c   : >>> { %v512_v14 = vadd.f32 %v511_v11, %v510_v8 }
 0x10d   : >>> { %493 = vst [vmem:[%s475_s29] sm:$0x1] %v492_v12  ;;  %v532_v15 = vadd.f32 %v531_v13, %v530_v10  ;;  %s617_s29 = smov [#allocation26] }
 0x10e   : >>> { %513 = vst [vmem:[%s495_s14] sm:$0x1] %v512_v14  ;;  %s534_s14 = smov [#allocation27] }
 0x10f   : >>> { %533 = vst [vmem:[%s515_s15] sm:$0x1] %v532_v15  ;;  %s535_s15 = smov [#allocation28]  ;;  %s619_s14 = smov %s534_s14 }
 0x110   : >>> { %s621_s15 = smov %s535_s15 }
 0x114   : >>> { %v537_v23 = vld [vmem:[%s536_s21] sm:$0xff]  ;;  %s638_s21 = smov [#allocation28] }
 0x115   : >>> { %v1860_v16 = vld [vmem:[%s538_s16] sm:$0xff]  ;;  %v591_v47 = vand.u32 2147483647, %v537_v23  ;;  %s623_s16 = smov [#allocation27] }
 0x116   : >>> { %v543_v17 = vmul.f32 2.0, %v1860_v16  ;;  %v541_v24 = vld [vmem:[%s540_s30] sm:$0xff]  ;;  %v592_v55 = vand.u32 2147483647, %v1860_v16  ;;  %s636_s30 = smov [#allocation29] }
 0x117   : >>> { %v542_v27 = vsub.f32 %v541_v24, %v537_v23  ;;  %v593_v48 = vand.u32 2147483647, %v541_v24 }
 0x118   : >>> { %1651 = vrcp.f32 %v543_v17  ;;  %v555_v20 = vand.u32 2147483648, %v543_v17  ;;  %vm549_vm8 = vweird.f32 %v543_v17  ;;  %v553_v22 = vand.u32 2147483647, %v543_v17 }
 0x119   : >>> { %v594_v50 = vmin.f32 %v591_v47, %v593_v48 }
 0x11a   : >>> { %v556_v26 = vor.u32 1.1754944e-38, %v555_v20  ;;  %vm554_vm11 = vcmp.eq.f32.partialorder %v553_v22, 8.507059e+37 }
 0x11b   : >>> { %v595_v56 = vmul.f32 1.1920929e-08, %v594_v50 }
 0x11d   : >>> { %vm596_vm4 = vcmp.le.f32.partialorder %v592_v55, %v595_v56 }
 0x11e   : >>> { %v1652_v18 = vpop.eup %1651 }
 0x11f   : >>> { %v545_v19 = vmul.f32 %v1652_v18, %v543_v17  ;;  %vm550_vm9 = vweird.f32 %v1652_v18 }
 0x120   : >>> { %vm551_vm10 = vmor %vm549_vm8, %vm550_vm9  ;;  %vm632_vm8 = vcmp.eq.s32.totalorder %v630_v7, %v627_v6  ;;  %v642_v6 = vmov %v1809_v6  ;;  %v645_v7 = vmov %v1811_v7 }
 0x121   : >>> { %v546_v21 = vsub.f32 1.0, %v545_v19  ;;  %vm647_vm9 = vcmp.eq.s32.totalorder %v645_v7, %v642_v6  ;;  %v713_v6 = vmov %v1809_v6 }
 0x122   : >>> { %v754_v6 = vmov %v1809_v6 }
 0x123   : >>> { %v547_v25 = vmul.f32 %v1652_v18, %v546_v21  ;;  %v740_v6 = vmov %v1809_v6 }
 0x125   : >>> { %v548_v28 = vadd.f32 %v1652_v18, %v547_v25 }
 0x127   : >>> { %v552_v29 = vsel %vm551_vm10, %v1652_v18, %v548_v28  ;;  %v887_v28 = vld [vmem:[%s1882_s11] sm:$0x3]  ;;  %vm837_vm10 = vcmp.eq.s32.totalorder %v1811_v7, 0 }
 0x128   : >>> { %v557_v30 = vsel %vm554_vm11, %v556_v26, %v552_v29  ;;  %vm849_vm11 = vcmp.eq.s32.totalorder %v1811_v7, 1  ;;  %v716_v7 = vmov %v1811_v7 }
 0x129   : >>> { %v558_v31 = vmul.f32 %v557_v30, %v542_v27  ;;  %v757_v7 = vmov %v1811_v7 }
 0x12a   : >>> { %v743_v7 = vmov %v1811_v7 }
 0x12b   : >>> { %v560_v32 = vmul.f32 %v558_v31, %v558_v31  ;;  %vm559_vm14 = vcmp.ge.f32.partialorder %v558_v31, 0.0 }
 0x12d   : >>> { %v561_v33 = vadd.f32 1.0, %v560_v32 }
 0x12f   : >>> { %1653 = vrsqrt.f32 %v561_v33  ;;  %vm569_vm12 = vcmp.eq.f32.partialorder %v561_v33, inf  ;;  %v572_v40 = vand.u32 2147483648, %v561_v33  ;;  %vm571_vm13 = vcmp.eq.f32.partialorder %v561_v33, 0.0 }
 0x135   : >>> { %v1654_v34 = vpop.eup %1653 }
 0x136   : >>> { %v563_v35 = vmul.f32 %v1654_v34, %v561_v33 }
 0x138   : >>> { %v564_v36 = vmul.f32 %v1654_v34, %v563_v35 }
 0x13a   : >>> { %v565_v37 = vmul.f32 0.5, %v564_v36 }
 0x13c   : >>> { %v566_v38 = vsub.f32 1.5, %v565_v37 }
 0x13e   : >>> { %v567_v39 = vmul.f32 %v1654_v34, %v566_v38 }
 0x140   : >>> { %v568_v41 = vmul.f32 %v567_v39, %v561_v33 }
 0x142   : >>> { %v570_v42 = vsel %vm569_vm12, %v561_v33, %v568_v41  ;;  %v888_v33 = vld [vmem:[%s1885_s26] sm:$0x3]  ;;  %vm721_vm12 = vcmp.eq.s32.totalorder %v716_v7, %v713_v6  ;;  %v727_v6 = vmov %v1809_v6  ;;  %v730_v7 = vmov %v1811_v7 }
 0x143   : >>> { %v573_v43 = vsel %vm571_vm13, %v572_v40, %v570_v42  ;;  %vm762_vm13 = vcmp.eq.s32.totalorder %v757_v7, %v754_v6 }
 0x144   : >>> { %v574_v44 = vxor.u32 2147483648, %v573_v43 }
 0x146   : >>> { %v575_v45 = vsel %vm559_vm14, %v573_v43, %v574_v44  ;;  %vm747_vm14 = vcmp.eq.s32.totalorder %v743_v7, %v740_v6 }
 0x147   : >>> { %v576_v46 = vadd.f32 %v575_v45, %v558_v31 }
 0x149   : >>> { %1655 = vrcp.f32 %v576_v46  ;;  %v588_v52 = vand.u32 2147483648, %v576_v46  ;;  %vm582_vm15 = vweird.f32 %v576_v46  ;;  %v586_v54 = vand.u32 2147483647, %v576_v46 }
 0x14b   : >>> { %v589_v58 = vor.u32 1.1754944e-38, %v588_v52  ;;  %vm587_vm3 = vcmp.eq.f32.partialorder %v586_v54, 8.507059e+37 }
 0x14f   : >>> { %v1656_v49 = vpop.eup %1655 }
 0x150   : >>> { %v578_v51 = vmul.f32 %v1656_v49, %v576_v46  ;;  %vm583_vm0 = vweird.f32 %v1656_v49 }
 0x151   : >>> { %vm584_vm1 = vmor %vm582_vm15, %vm583_vm0  ;;  %vm734_vm15 = vcmp.eq.s32.totalorder %v730_v7, %v727_v6  ;;  %vm780_vm0 = vcmp.eq.s32.totalorder %v1809_v6, 1  ;;  %v377_v7 = vmov (%p470_p9), %v1811_v7 }
 0x152   : >>> { %v579_v53 = vsub.f32 1.0, %v578_v51 }
 0x154   : >>> { %v580_v57 = vmul.f32 %v1656_v49, %v579_v53 }
 0x156   : >>> { %v581_v59 = vadd.f32 %v1656_v49, %v580_v57 }
 0x158   : >>> { %v585_v60 = vsel %vm584_vm1, %v1656_v49, %v581_v59  ;;  %vm776_vm1 = vcmp.eq.s32.totalorder %v1809_v6, 0  ;;  %v374_v6 = vmov (%p470_p9), %v1809_v6 }
 0x159   : >>> { %v590_v61 = vsel %vm587_vm3, %v589_v58, %v585_v60  ;;  %vm389_vm3 = vcmp.eq.s32.totalorder (%p470_p9), %v377_v7, %v374_v6  ;;  %v393_v6 = vmov (%p470_p9), %v1809_v6  ;;  %v396_v7 = vmov (%p470_p9), %v1811_v7 }
 0x15a   : >>> { %v597_v62 = vsel %vm596_vm4, 0.0, %v590_v61  ;;  %v410_v6 = vmov (%p470_p9), %v1809_v6  ;;  %v413_v7 = vmov (%p470_p9), %v1811_v7 }
 0x15b   : >>> { %v598_v63 = vmul.f32 %v597_v62, %v597_v62  ;;  %v611_v0 = vmul.f32 %v597_v62, %v1860_v16  ;;  %v427_v6 = vmov (%p470_p9), %v1809_v6  ;;  %v430_v7 = vmov (%p470_p9), %v1811_v7 }
 0x15c   : >> { %vm442_vm4 = vcmp.eq.s32.totalorder (%p470_p9), %v430_v7, %v427_v6 }
 0x15d   : >>> { %v599_v1 = vadd.f32 1.0, %v598_v63  ;;  %v612_v2 = vsub.f32 %v537_v23, %v611_v0  ;;  %v614_v3 = vadd.f32 %v611_v0, %v541_v24  ;;  %v885_v23 = vld [vmem:[%s1875_s24] sm:$0x3] }
 0x15e   : >>> { %v886_v24 = vld [vmem:[%s1877_s23] sm:$0x3] }
 0x15f   : >>> { %1657 = vrsqrt.f32 %v599_v1  ;;  %616 = vst [vmem:[%s615_s22] sm:$0xff] %v612_v2  ;;  %vm606_vm5 = vweird.f32 %v599_v1  ;;  %s651_s22 = smov [#allocation30] }
 0x160   : >>> { %618 = vst [vmem:[%s617_s29] sm:$0xff] %v614_v3  ;;  %s653_s29 = smov [#allocation29] }
 0x165   : >>> { %v1658_v4 = vpop.eup %1657 }
 0x166   : >>> { %v601_v5 = vmul.f32 %v1658_v4, %v599_v1  ;;  %vm607_vm6 = vweird.f32 %v1658_v4 }
 0x167   : >>> { %vm608_vm7 = vmor %vm606_vm5, %vm607_vm6 }
 0x168   : >>> { %v602_v8 = vmul.f32 %v1658_v4, %v601_v5 }
 0x16a   : >>> { %v603_v9 = vmul.f32 0.5, %v602_v8 }
 0x16c   : >>> { %v604_v10 = vsub.f32 1.5, %v603_v9 }
 0x16e   : >>> { %v605_v11 = vmul.f32 %v1658_v4, %v604_v10 }
 0x170   : >>> { %v609_v12 = vsel %vm608_vm7, %v1658_v4, %v605_v11 }
 0x171   : >>> { %620 = vst [vmem:[%s619_s14] sm:$0xff] %v609_v12  ;;  %v610_v13 = vmul.f32 %v609_v12, %v597_v62  ;;  %s1869_s14 = smov [#allocation18] }
 0x172   : >>> { %v661_v26 = vld [vmem:[%s1869_s14] sm:$0x3] }
 0x173   : >>> { %622 = vst [vmem:[%s621_s15] sm:$0xff] %v610_v13  ;;  %s1871_s15 = smov [#allocation19] }
 0x174   : >>> { %v662_v20 = vld [vmem:[%s1871_s15] sm:$0x3] }
 0x178   : >>> { %v624_v14 = vld [vmem:[%s623_s16] ss:$0 sm:$0xff]  ;;  %s1873_s16 = smov [#allocation20] }
 0x179   : >>> { %v633_v15 = vsel %vm632_vm8, %v624_v14, 0.0  ;;  %v663_v21 = vld [vmem:[%s1873_s16] sm:$0x3] }
 0x17a   : >>> { %634 = vadd.xlane.f32.xlu0 %v633_v15  ;;  %v639_v16 = vld [vmem:[%s638_s21] ss:$0 sm:$0xff]  ;;  %s877_s21 = smov [#allocation29] }
 0x17b   : >>> { %v648_v17 = vsel %vm647_vm9, %v639_v16, 0.0 }
 0x182   : >>> { %649 = vadd.xlane.f32.xlu0 %v648_v17 }
 0x1ed   : >>> { %v635_v18 = vpop.xlane.xlu0 %634 }
 0x1ee   : >>> { %637 = vst [vmem:[%s636_s30] sm:$0xff] %v635_v18  ;;  %s1879_s30 = smov [#allocation21] }
 0x1ef   : >>> { %v664_v27 = vld [vmem:[%s1879_s30] sm:$0x3] }
 0x1f5   : >>> { %v650_v19 = vpop.xlane.xlu0 %649  ;;  %v654_v22 = vld [vmem:[%s653_s29] sm:$0xff]  ;;  %s681_s29 = smov [#allocation27] }
 0x1f6   : >>> { %652 = vst [vmem:[%s651_s22] sm:$0xff] %v650_v19  ;;  %s655_s22 = smov [#allocation30]  ;;  %v878_v25 = vld [vmem:[%s877_s21] sm:$0xff]  ;;  %v668_v29 = vmul.f32 %v662_v20, %v654_v22  ;;  %v672_v30 = vmul.f32 %v663_v21, %v654_v22  ;;  %v665_v50 = vmul.f32 %v661_v26, %v654_v22  ;;  %v675_v52 = vmul.f32 %v664_v27, %v654_v22  ;;  %s683_s21 = smov [#allocation28] }
 0x1f7   : >>> { %v889_v34 = vmul.f32 %v885_v23, %v878_v25  ;;  %v892_v35 = vmul.f32 %v886_v24, %v878_v25  ;;  %v896_v42 = vmul.f32 %v887_v28, %v878_v25  ;;  %v899_v46 = vmul.f32 %v888_v33, %v878_v25  ;;  %v682_v56 = vld [vmem:[%s681_s29] ss:$0 sm:$0xff]  ;;  %s750_s29 = smov [#allocation21] }
 0x1f8   : >>> { %v684_v57 = vld [vmem:[%s683_s21] ss:$0 sm:$0xff]  ;;  %s737_s21 = smov [#allocation20] }
 0x1fd   : >>> { %v656_v31 = vld [vmem:[%s655_s22] sm:$0xff]  ;;  %s1901_s22 = smov [#allocation20] }
 0x1fe   : >>> { %v880_v32 = vld [vmem:[%s879_s27] sm:$0xff]  ;;  %v669_v36 = vmul.f32 %v664_v27, %v656_v31  ;;  %v671_v37 = vmul.f32 %v661_v26, %v656_v31  ;;  %v666_v43 = vmul.f32 %v663_v21, %v656_v31  ;;  %v674_v47 = vmul.f32 %v662_v20, %v656_v31  ;;  %s1896_s27 = smov [#allocation10] }
 0x1ff   : >>> { %v890_v38 = vmul.f32 %v887_v28, %v880_v32  ;;  %v893_v39 = vmul.f32 %v888_v33, %v880_v32  ;;  %v895_v40 = vmul.f32 %v885_v23, %v880_v32  ;;  %v898_v41 = vmul.f32 %v886_v24, %v880_v32 }
 0x200   : >>> { %v670_v44 = vsub.f32 %v668_v29, %v669_v36  ;;  %v673_v45 = vadd.f32 %v672_v30, %v671_v37  ;;  %v667_v54 = vsub.f32 %v665_v50, %v666_v43  ;;  %v676_v55 = vadd.f32 %v675_v52, %v674_v47 }
 0x201   : >>> { %v891_v48 = vsub.f32 %v889_v34, %v890_v38  ;;  %v894_v49 = vsub.f32 %v892_v35, %v893_v39  ;;  %v897_v51 = vadd.f32 %v896_v42, %v895_v40  ;;  %v900_v53 = vadd.f32 %v899_v46, %v898_v41 }
 0x202   : >>> { %678 = vst [vmem:[%s1871_s15] sm:$0x3] %v670_v44  ;;  %s1903_s15 = smov [#allocation19] }
 0x203   : >>> { %679 = vst [vmem:[%s1873_s16] sm:$0x3] %v673_v45  ;;  %s906_s16 = smov [#allocation14] }
 0x204   : >>> { %901 = vst [vmem:[%s1875_s24] sm:$0x3] %v891_v48  ;;  %s1905_s24 = smov [#allocation12] }
 0x205   : >>> { %902 = vst [vmem:[%s1877_s23] sm:$0x3] %v894_v49  ;;  %s1910_s23 = smov [#allocation16] }
 0x206   : >>> { %903 = vst [vmem:[%s1882_s11] sm:$0x3] %v897_v51  ;;  %s688_s11 = smov [#allocation21] }
 0x207   : >>> { %904 = vst [vmem:[%s1885_s26] sm:$0x3] %v900_v53  ;;  %s1913_s26 = smov [#allocation18] }
 0x208   : >>> { %677 = vst [vmem:[%s1869_s14] sm:$0x3] %v667_v54  ;;  %s710_s14 = smov [#allocation25] }
 0x209   : >>> { %680 = vst [vmem:[%s1879_s30] sm:$0x3] %v676_v55  ;;  %v690_v59 = vld [vmem:[%s1903_s15] sm:$0x3]  ;;  %s751_s30 = smov [#allocation26] }
 0x20a   : >>> { %v691_v58 = vld [vmem:[%s1901_s22] sm:$0x3]  ;;  %v694_v10 = vmul.f32 %v690_v59, %v684_v57  ;;  %v697_v16 = vmul.f32 %v690_v59, %v682_v56 }
 0x20b   : >>> { %v907_v60 = vld [vmem:[%s1896_s27] ss:$0 sm:$0xff]  ;;  %v1579_v62 = vld [vmem:[%s1896_s27 + $0x1] ss:$0 sm:$0xff]  ;;  %v702_v13 = vmul.f32 %v691_v58, %v684_v57  ;;  %v699_v14 = vmul.f32 %v691_v58, %v682_v56 }
 0x20c   : >>> { %v1578_v61 = vld [vmem:[%s1896_s27 - $0x1] sm:$0x2]  ;;  %v1583_v2 = vld [vmem:[%s1905_s24 + $0x1] ss:$0 sm:$0xff] }
 0x20d   : >>> { %v914_v63 = vsel %vm837_vm10, %v907_v60, %v1578_v61  ;;  %v931_v0 = vld [vmem:[%s1905_s24] ss:$0 sm:$0xff]  ;;  %v1581_v4 = vld [vmem:[%s906_s16 + $0x1] sm:$0x1] }
 0x20e   : >>> { %v1582_v1 = vld [vmem:[%s1905_s24 - $0x1] sm:$0x2]  ;;  %917 = vst [vmem:[%s1896_s27] sm:$0x3] %v914_v63  ;;  %v926_v8 = vsel %vm849_vm11, %v1579_v62, %v1581_v4  ;;  %v1585_v9 = vld [vmem:[%s1910_s23 + $0x1] sm:$0x1] }
 0x20f   : >>> { %v918_v3 = vld [vmem:[%s906_s16] ss:$0 sm:$0xff]  ;;  %v938_v5 = vsel %vm837_vm10, %v931_v0, %v1582_v1  ;;  %v950_v12 = vsel %vm849_vm11, %v1583_v2, %v1585_v9 }
 0x210   : >>> { %1580 = vst [vmem:[%s1896_s27 + $0x1] sm:$0x1] %v918_v3  ;;  %v942_v11 = vld [vmem:[%s1910_s23] ss:$0 sm:$0xff]  ;;  %s709_s27 = smov [#allocation18] }
 0x211   : >>> { %928 = vst [vmem:[%s906_s16] sm:$0x3] %v926_v8  ;;  %v689_v15 = vld [vmem:[%s1913_s26] sm:$0x3]  ;;  %s1952_s16 = smov [#allocation21] }
 0x212   : >>> { %941 = vst [vmem:[%s1905_s24] sm:$0x3] %v938_v5  ;;  %v692_v17 = vld [vmem:[%s688_s11] sm:$0x3]  ;;  %v693_v18 = vmul.f32 %v689_v15, %v682_v56  ;;  %v696_v19 = vmul.f32 %v689_v15, %v684_v57 }
 0x213   : >>> { %1584 = vst [vmem:[%s1905_s24 + $0x1] sm:$0x1] %v942_v11  ;;  %v703_v20 = vmul.f32 %v692_v17, %v682_v56  ;;  %v700_v21 = vmul.f32 %v692_v17, %v684_v57  ;;  %v717_v26 = vld [vmem:[%s710_s14] ss:$0 sm:$0xff]  ;;  %s1954_s24 = smov [#allocation20]  ;;  %s1964_s14 = smov [#allocation19] }
 0x214   : >>> { %952 = vst [vmem:[%s1910_s23] sm:$0x3] %v950_v12  ;;  %v695_v22 = vsub.f32 %v693_v18, %v694_v10  ;;  %v698_v25 = vadd.f32 %v697_v16, %v696_v19  ;;  %v758_v27 = vld [vmem:[%s751_s30] ss:$0 sm:$0xff]  ;;  %s1700_s23 = smov 1   ;;  %s830_s30 = smov [#allocation20] }
 0x215   : >>> { %v704_v23 = vadd.f32 %v703_v20, %v702_v13  ;;  %v701_v24 = vsub.f32 %v699_v14, %v700_v21 }
 0x216   : >>> { %705 = vst [vmem:[%s1913_s26] sm:$0x3] %v695_v22  ;;  %s766_s26 = smov [#allocation19] }
 0x217   : >>> { %708 = vst [vmem:[%s688_s11] sm:$0x3] %v704_v23  ;;  %s1701_s11 = smov 127  }
 0x218   : >>> { %707 = vst [vmem:[%s1901_s22] sm:$0x3] %v701_v24  ;;  %s724_s22 = smov [#allocation19] }
 0x219   : >>> { %706 = vst [vmem:[%s1903_s15] sm:$0x3] %v698_v25  ;;  %s1950_s15 = smov [#allocation18] }
 0x21d   : >>> { %v718_v28 = vld [vmem:[%s709_s27] sm:$0x3] }
 0x21e   : >>> { %v759_v29 = vld [vmem:[%s750_s29] sm:$0x3]  ;;  %v722_v30 = vsel %vm721_vm12, %v717_v26, %v718_v28 }
 0x21f   : >>> { %v763_v31 = vsel %vm762_vm13, %v758_v27, %v759_v29  ;;  %v744_v32 = vld [vmem:[%s737_s21] sm:$0x3]  ;;  %723 = vst [vmem:[%s709_s27] sm:$0x3] %v722_v30  ;;  %s829_s27 = smov [#allocation18] }
 0x220   : >>> { %764 = vst [vmem:[%s750_s29] sm:$0x3] %v763_v31  ;;  %v748_v33 = vsel %vm747_vm14, 0.0, %v744_v32  ;;  %v731_v34 = vld [vmem:[%s724_s22] sm:$0x3]  ;;  %s854_s29 = smov [#allocation21] }
 0x221   : >>> { %749 = vst [vmem:[%s737_s21] sm:$0x3] %v748_v33  ;;  %v735_v35 = vsel %vm734_vm15, 0.0, %v731_v34  ;;  %s953_s21 = sadd.s32 (%p470_p9), 1, %s1693_s17  }
 0x222   : >>> { %736 = vst [vmem:[%s724_s22] sm:$0x3] %v735_v35  ;;  %s378_s22 = smov (%p470_p9), [#allocation18]  ;;  %p466_p10 = scmp.ge.s32.totalorder (%p470_p9), %s953_s21, 15 }
 0x223   : >> { %s2097_s17 = smov (%p470_p9), %s953_s21 }
 0x226   : >>> { %v771_v36 = vld [vmem:[%s1950_s15] sm:$0x3] }
 0x227   : >>> { %v799_v37 = vld [vmem:[%s1952_s16] sm:$0x3]  ;;  %772 = vrot.lane.b32.xlu1 %v771_v36, %s1700_s23 }
 0x228   : >>> { %800 = vrot.lane.b32.xlu0 %v799_v37, %s1700_s23  ;;  %v803_v38 = vld [vmem:[%s1954_s24] sm:$0x3] }
 0x229   : >>> { %804 = vrot.lane.b32.xlu2 %v803_v38, %s1700_s23  ;;  %v767_v39 = vld [vmem:[%s766_s26] sm:$0x3] }
 0x22a   : >>> { %v788_v40 = vld [vmem:[%s766_s26] sm:$0x3] }
 0x22b   : >>> { %v820_v41 = vld [vmem:[%s1952_s16] sm:$0x3] }
 0x22c   : >>> { %v770_v44 = vld [vmem:[%s1950_s15] sm:$0x3] }
 0x22d   : >>> { %v802_v55 = vld [vmem:[%s1954_s24] sm:$0x3] }
 0x22f   : >>> { %768 = vrot.lane.b32.xlu1 %v767_v39, %s1700_s23 }
 0x231   : >>> { %789 = vrot.lane.b32.xlu2 %v788_v40, %s1701_s11 }
 0x237   : >>> { %821 = vrot.lane.b32.xlu1 %v820_v41, %s1701_s11 }
 0x283   : >>> { %v805_v42 = vpop.permute.xlu2 %804 }
 0x284   : >>> { %v809_v51 = vsel %vm776_vm1, %v803_v38, %v805_v42 }
 0x28b   : >>> { %v790_v43 = vpop.permute.xlu2 %789 }
 0x28c   : >>> { %v794_v45 = vsel %vm780_vm0, %v770_v44, %v790_v43 }
 0x28d   : >>> { %796 = vst [vmem:[%s766_s26] sm:$0x3] %v794_v45 }
 0x294   : >>> { %v855_v46 = vld [vmem:[%s1964_s14] ss:$0 sm:$0xff]  ;;  %v1575_v48 = vld [vmem:[%s1964_s14 + $0x1] ss:$0 sm:$0xff] }
 0x295   : >>> { %v1574_v47 = vld [vmem:[%s1964_s14 - $0x1] sm:$0x2] }
 0x296   : >>> { %v862_v49 = vsel %vm837_vm10, %v855_v46, %v1574_v47 }
 0x297   : >>> { %865 = vst [vmem:[%s1964_s14] sm:$0x3] %v862_v49 }
 0x299   : >>> { %v773_v50 = vpop.permute.xlu1 %772 }
 0x29a   : >>> { %v801_v52 = vpop.permute.xlu0 %800  ;;  %v777_v56 = vsel %vm776_vm1, %v771_v36, %v773_v50 }
 0x29b   : >>> { %v813_v53 = vsel %vm780_vm0, %v801_v52, %v809_v51 }
 0x29c   : >>> { %v819_v54 = vsel %vm1439_vm2, %v813_v53, 0.0 }
 0x29d   : >>> { %827 = vst [vmem:[%s1954_s24] sm:$0x3] %v819_v54  ;;  %s431_s24 = smov (%p470_p9), [#allocation21] }
 0x2a1   : >>> { %v769_v57 = vpop.permute.xlu1 %768 }
 0x2a2   : >>> { %v781_v58 = vsel %vm780_vm0, %v769_v57, %v777_v56 }
 0x2a3   : >>> { %v787_v59 = vsel %vm1439_vm2, %v781_v58, 0.0 }
 0x2a4   : >>> { %795 = vst [vmem:[%s1950_s15] sm:$0x3] %v787_v59  ;;  %v1573_v61 = vld [vmem:[%s830_s30 + $0x1] sm:$0x1]  ;;  %v842_v4 = vld [vmem:[%s830_s30] ss:$0 sm:$0xff]  ;;  %s397_s15 = smov (%p470_p9), [#allocation19] }
 0x2a9   : >>> { %v822_v60 = vpop.permute.xlu1 %821 }
 0x2aa   : >>> { %v826_v62 = vsel %vm780_vm0, %v802_v55, %v822_v60 }
 0x2ab   : >>> { %v831_v63 = vld [vmem:[%s829_s27] ss:$0 sm:$0xff]  ;;  %v1571_v1 = vld [vmem:[%s829_s27 + $0x1] ss:$0 sm:$0xff]  ;;  %828 = vst [vmem:[%s1952_s16] sm:$0x3] %v826_v62  ;;  %s414_s16 = smov (%p470_p9), [#allocation20] }
 0x2ac   : >>> { %v1570_v0 = vld [vmem:[%s829_s27 - $0x1] sm:$0x2]  ;;  %v850_v3 = vsel %vm849_vm11, %v1571_v1, %v1573_v61 }
 0x2ad   : >>> { %v838_v2 = vsel %vm837_vm10, %v831_v63, %v1570_v0  ;;  %852 = vst [vmem:[%s830_s30] sm:$0x3] %v850_v3 }
 0x2ae   : >>> { %841 = vst [vmem:[%s829_s27] sm:$0x3] %v838_v2 }
 0x2af   : >>> { %1572 = vst [vmem:[%s829_s27 + $0x1] sm:$0x1] %v842_v4 }
 0x2b2   : >>> { %v866_v5 = vld [vmem:[%s854_s29] ss:$0 sm:$0xff]  ;;  %v1577_v8 = vld [vmem:[%s854_s29 + $0x1] sm:$0x1] }
 0x2b3   : >>> { %1576 = vst [vmem:[%s1964_s14 + $0x1] sm:$0x1] %v866_v5  ;;  %v874_v9 = vsel %vm849_vm11, %v1575_v48, %v1577_v8  ;;  %472 = sbr.rel (!%p470_p9) target bundleno = 254 (0xfe), region = 470 }
 0x2b4   : >>> { %876 = vst [vmem:[%s854_s29] sm:$0x3] %v874_v9  ;;  %v420_v14 = vld [vmem:[%s414_s16] sm:$0x3] (%p470_p9) }
 0x2b5   : >> { %v421_v18 = vsel (%p470_p9), %vm1439_vm2, %v420_v14, 0.0 }
 0x2b6   : >> { %v384_v10 = vld [vmem:[%s378_s22] sm:$0x3] (%p470_p9)  ;;  %v422_v20 = vmul.f32 (%p470_p9), %v421_v18, %v421_v18 }
 0x2b7   : >> { %v385_v12 = vsel (%p470_p9), %vm1439_vm2, %v384_v10, 0.0 }
 0x2b8   : >> { %v386_v16 = vmul.f32 %v385_v12, %v385_v12 }
 0x2ba   : >> { %v403_v11 = vld [vmem:[%s397_s15] sm:$0x3]  ;;  %v390_v23 = vsel %vm389_vm3, 0.0, %v386_v16 }
 0x2bb   : >> { %v404_v13 = vsel %vm1439_vm2, %v403_v11, 0.0  ;;  %v437_v15 = vld [vmem:[%s431_s24] sm:$0x3] }
 0x2bc   : >> { %v405_v17 = vmul.f32 %v404_v13, %v404_v13  ;;  %v438_v19 = vsel %vm1439_vm2, %v437_v15, 0.0 }
 0x2bd   : >> { %v439_v22 = vmul.f32 %v438_v19, %v438_v19 }
 0x2be   : >> { %v407_v21 = vadd.f32 %v405_v17, %v386_v16  ;;  %v406_v25 = vadd.f32 %v405_v17, %v390_v23 }
 0x2bf   : >> { %v443_v28 = vsel %vm442_vm4, 0.0, %v439_v22 }
 0x2c0   : >> { %v424_v24 = vadd.f32 %v422_v20, %v407_v21  ;;  %v423_v27 = vadd.f32 %v422_v20, %v406_v25 }
 0x2c2   : >> { %v445_v26 = vadd.f32 %v439_v22, %v424_v24  ;;  %v444_v29 = vadd.f32 %v443_v28, %v423_v27 }
 0x2c4   : >> { %446 = vadd.xlane.f32.xlu0 %v445_v26 }
 0x2cc   : >> { %454 = vadd.xlane.f32.xlu0 %v444_v29 }
 0x337   : >> { %v447_v30 = vpop.xlane.xlu0 %446 }
 0x338   : >> { %v448_v31 = vrot.slane %v447_v30, 4 }
 0x33a   : >> { %v449_v32 = vadd.f32 %v448_v31, %v447_v30 }
 0x33c   : >> { %v450_v33 = vrot.slane %v449_v32, 2 }
 0x33e   : >> { %v451_v37 = vadd.f32 %v450_v33, %v449_v32 }
 0x33f   : >> { %v455_v34 = vpop.xlane.xlu0 %454 }
 0x340   : >> { %v456_v35 = vrot.slane %v455_v34, 4  ;;  %v452_v40 = vrot.slane %v451_v37, 1 }
 0x342   : >> { %v457_v36 = vadd.f32 %v456_v35, %v455_v34  ;;  %v453_v43 = vadd.f32 %v452_v40, %v451_v37 }
 0x344   : >> { %v458_v38 = vrot.slane %v457_v36, 2 }
 0x346   : >> { %v459_v39 = vadd.f32 %v458_v38, %v457_v36 }
 0x348   : >> { %v460_v41 = vrot.slane %v459_v39, 1 }
 0x34a   : >> { %v461_v42 = vadd.f32 %v460_v41, %v459_v39 }
 0x34c   : >> { %1604 = vpush %v461_v42 }
 0x34d   : >> { %1606 = vpush %v453_v43 }
 0x37d   : >> { %s1605_s20 = spop %1604 }
 0x37e   : >> { %s1607_s23 = spop %1606 }
 0x37f   : >> { %s464_s26 = smul.f32 1e-10, %s1607_s23 }
 0x381   : >> { %p465_p11 = scmp.le.f32.partialorder %s1605_s20, %s464_s26 }
 0x383   : >> { %p467_p12 = por %p466_p10, %p465_p11 }
 0x385   : > { %955 = sbr.rel (!%p467_p12) target bundleno = 253 (0xfd), region = 481 }
 0x38a PF: > { %s960_s11 = smov [#allocation18]  ;;  %v964_v6 = vmov %v1809_v6  ;;  %v967_v7 = vmov %v1811_v7  ;;  %v1002_v44 = vld [vmem:[#allocation10] sm:$0x3]  ;;  %v1008_v45 = vld [vmem:[#allocation12] sm:$0x3]  ;;  %s980_s17 = smov [#allocation21] }
 0x38b   : > { %v984_v6 = vmov %v1809_v6  ;;  %v987_v7 = vmov %v1811_v7  ;;  %v968_v46 = vld [vmem:[%s960_s11] sm:$0x3]  ;;  %vm971_vm5 = vcmp.eq.s32.totalorder %v967_v7, %v964_v6  ;;  %1005 = vst [vmem:[%s297_s25] sm:$0x3] %v1002_v44  ;;  %v1014_v47 = vld [vmem:[#allocation14] sm:$0x3]  ;;  %s2098_s14 = scalar_lea.vmem [#allocation13], %s1805_s28 }
 0x38c   : > { %vm991_vm6 = vcmp.eq.s32.totalorder %v987_v7, %v984_v6  ;;  %v972_v48 = vsel %vm971_vm5, %v968_v46, 0.0  ;;  %1011 = vst [vmem:[%s2098_s14] sm:$0x3] %v1008_v45  ;;  %v1020_v49 = vld [vmem:[#allocation16] sm:$0x3]  ;;  %v988_v51 = vld [vmem:[%s980_s17] sm:$0x3] }
 0x38d   : > { %v973_v50 = vrot.slane %v972_v48, 4  ;;  %s2099_s30 = scalar_lea.vmem [#allocation15], %s1805_s28  ;;  %v992_v52 = vsel %vm991_vm6, %v988_v51, 0.0  ;;  %s2100_s27 = scalar_lea.vmem [#allocation17], %s1805_s28 }
 0x38e   : > { %1017 = vst [vmem:[%s2099_s30] sm:$0x3] %v1014_v47  ;;  %v993_v54 = vrot.slane %v992_v52, 4  ;;  %s956_s29 = sand.u32 7, %s1768_s12   ;;  %s2101_s21 = scalar_lea.vmem [#allocation8], %s1807_s18 }
 0x38f   : > { %1023 = vst [vmem:[%s2100_s27] sm:$0x3] %v1020_v49  ;;  %v974_v53 = vadd.f32 %v973_v50, %v972_v48  ;;  %s957_s22 = scalar_lea.vmem %s2101_s21, %s956_s29 [#allocation8]  ;;  %s2102_s15 = scalar_lea.vmem [#allocation9], %s1807_s18 }
 0x390   : > { %v994_v7 = vadd.f32 %v993_v54, %v992_v52  ;;  %s959_s16 = scalar_lea.vmem %s2102_s15, %s956_s29 [#allocation9]  ;;  %s961_s22 = smov %s957_s22 }
 0x391   : > { %v975_v6 = vrot.slane %v974_v53, 2  ;;  %s981_s16 = smov %s959_s16  ;;  %s1051_s24 = sshrl.u32 (%p1782_p3), %s1768_s12, 3 }
 0x392   : > { %v995_v56 = vrot.slane %v994_v7, 2  ;;  %s2103_s20 = scalar_lea.vmem (%p1782_p3), [#allocation8], %s1807_s18  ;;  %s1592_s23 = sshll.u32 (%p1782_p3), %s1051_s24, 3 }
 0x393   : > { %v976_v55 = vadd.f32 %v975_v6, %v974_v53  ;;  %s1053_s17 = scalar_lea.vmem (%p1782_p3), %s2089_s4, %s1592_s23 }
 0x394   : > { %v996_v58 = vadd.f32 %v995_v56, %v994_v7 }
 0x395   : > { %v977_v57 = vrot.slane %v976_v55, 1 }
 0x396   : > { %v997_v60 = vrot.slane %v996_v58, 1  ;;  %1050 = sbr.rel (!%p1782_p3) target bundleno = 930 (0x3a2), region = 158 }
 0x397   : > { %v978_v59 = vadd.f32 %v977_v57, %v976_v55 }
 0x398   : > { %v998_v61 = vadd.f32 %v997_v60, %v996_v58 }
 0x399   : > { %979 = vst [vmem:[%s961_s22] sm:$0x1] %v978_v59 }
 0x39a   : > { %999 = vst [vmem:[%s981_s16] sm:$0x1] %v998_v61 }
 0x3a0   : > { %v1082_v62 = vld [vmem:[%s2103_s20] sm:$0xff] }
 0x3a1   : > { %1083 = vst [vmem:[%s1053_s17] sm:$0xff] %v1082_v62 }
 0x3a2 PF: > { %1089 = sbr.rel (!%p1782_p3) target bundleno = 938 (0x3aa), region = 196  ;;  %s1090_s14 = sshrl.u32 (%p1782_p3), %s1768_s12, 3 }
 0x3a3   : > { %s2104_s30 = scalar_lea.vmem (%p1782_p3), [#allocation9], %s1807_s18  ;;  %s1593_s27 = sshll.u32 (%p1782_p3), %s1090_s14, 3 }
 0x3a4   : > { %s1092_s22 = scalar_lea.vmem (%p1782_p3), %s2090_s5, %s1593_s27 }
 0x3a8   : > { %v1121_v63 = vld [vmem:[%s2104_s30] sm:$0xff] }
 0x3a9   : > { %1122 = vst [vmem:[%s1092_s22] sm:$0xff] %v1121_v63 }
 0x3aa PF: > { %s1594_s15 = sshll.u32 %s1768_s12, 1  ;;  %v1144_v0 = vld [vmem:[%s297_s25] sm:$0x3]  ;;  %s2105_s19 = scalar_lea.vmem [#allocation13], %s1805_s28 }
 0x3ab   : > { %v1179_v1 = vld [vmem:[%s2105_s19] sm:$0x3]  ;;  %s1127_s24 = scalar_lea.vmem %s2091_s6, %s1594_s15  ;;  %s1162_s26 = scalar_lea.vmem %s2092_s7, %s1594_s15 }
 0x3ac   : > { %s2106_s11 = scalar_lea.vmem [#allocation15], %s1805_s28  ;;  %1145 = vst [vmem:[%s1127_s24] sm:$0x3] %v1144_v0  ;;  %s1197_s30 = scalar_lea.vmem %s2093_s8, %s1594_s15 }
 0x3ad   : > { %v1214_v2 = vld [vmem:[%s2106_s11] sm:$0x3]  ;;  %s1232_s25 = scalar_lea.vmem %s2094_s9, %s1594_s15  ;;  %s2107_s29 = scalar_lea.vmem [#allocation17], %s1805_s28  ;;  %1180 = vst [vmem:[%s1162_s26] sm:$0x3] %v1179_v1 }
 0x3ae   : > { %v1249_v3 = vld [vmem:[%s2107_s29] sm:$0x3]  ;;  %1215 = vst [vmem:[%s1197_s30] sm:$0x3] %v1214_v2 }
 0x3af   : > { %1250 = vst [vmem:[%s1232_s25] sm:$0x3] %v1249_v3 }
 0x3b0 PF: > { %s2108_s21 = sld [smem:[#allocation31_spill]]  ;;  %p13_p13 = scmp.ge.s32.totalorder %s1771_s13, 130  }
 0x3b1   : > { %s2109_s30 = smov %s1685_s10  ;;  %s2111_s11 = smov %s1771_s13 }
 0x3b2   :  { %15 = sbr.rel (!%p13_p13) target bundleno = 2 (0x2), region = 492 }
 0x3b6   : > { %s2110_s10 = smov %s2108_s21 }

// kernel: reverse.1
= control target key start
LH: loop header
LB: loop body
LE: loop exit
PB: predicated region body
PF: predicated region fallthrough
CT: control target
= control target key end

     0   :  { %v2_v0 = vlaneseq  ;;  %s401_s0 = inlined_call_operand.vmem [shape: f32[128,3], index: 0, kind: input, shape index: {}]   ;;  %s402_s1 = inlined_call_operand.vmem [shape: f32[128,3], index: 1, kind: output, shape index: {}]  }
   0x1   :  { %v71_v2 = vld [vmem:[%s401_s0 + $0x20] sm:$0xff]  ;;  %v67_v3 = vld [vmem:[%s401_s0 + $0x10] sm:$0xff]  ;;  %v73_v5 = vld [vmem:[%s401_s0 + $0x28] sm:$0xff] }
   0x2   :  { %v3_v1 = vsub.s32 2, %v2_v0  ;;  %v63_v4 = vld [vmem:[%s401_s0] sm:$0xff]  ;;  %v69_v6 = vld [vmem:[%s401_s0 + $0x18] sm:$0xff]  ;;  %v65_v7 = vld [vmem:[%s401_s0 + $0x8] sm:$0xff] }
   0x3   :  { %v79_v8 = vld [vmem:[%s401_s0 + $0x40] sm:$0xff]  ;;  %v77_v9 = vld [vmem:[%s401_s0 + $0x38] sm:$0xff]  ;;  %v75_v10 = vld [vmem:[%s401_s0 + $0x30] sm:$0xff] }
   0x4   :  { %4 = vset.pattern.permute.xlu0 %v3_v1  ;;  %294 = vset.pattern.permute.xlu2 %v3_v1  ;;  %v85_v11 = vld [vmem:[%s401_s0 + $0x58] sm:$0xff]  ;;  %v83_v12 = vld [vmem:[%s401_s0 + $0x50] sm:$0xff]  ;;  %v81_v13 = vld [vmem:[%s401_s0 + $0x48] sm:$0xff] }
   0x5   :  { %293 = vset.pattern.permute.xlu1 %v3_v1  ;;  %123 = vperm.xlu2 %294, %v71_v2   ;;  %v91_v14 = vld [vmem:[%s401_s0 + $0x70] sm:$0xff]  ;;  %v89_v15 = vld [vmem:[%s401_s0 + $0x68] sm:$0xff]  ;;  %v87_v16 = vld [vmem:[%s401_s0 + $0x60] sm:$0xff] }
   0x6   :  { %111 = vperm.xlu1 %293, %v67_v3   ;;  %99 = vperm.xlu0 %4, %v63_v4   ;;  %v93_v17 = vld [vmem:[%s401_s0 + $0x78] sm:$0xff] }
   0xd   :  { %129 = vperm.xlu2 %294, %v73_v5  }
   0xe   :  { %117 = vperm.xlu1 %293, %v69_v6   ;;  %105 = vperm.xlu0 %4, %v65_v7  }
  0x15   :  { %147 = vperm.xlu2 %294, %v79_v8  }
  0x16   :  { %141 = vperm.xlu1 %293, %v77_v9   ;;  %135 = vperm.xlu0 %4, %v75_v10  }
  0x1d   :  { %165 = vperm.xlu2 %294, %v85_v11  }
  0x1e   :  { %159 = vperm.xlu1 %293, %v83_v12   ;;  %153 = vperm.xlu0 %4, %v81_v13  }
  0x25   :  { %183 = vperm.xlu2 %294, %v91_v14  }
  0x26   :  { %177 = vperm.xlu1 %293, %v89_v15   ;;  %171 = vperm.xlu0 %4, %v87_v16  }
  0x2e   :  { %189 = vperm.xlu0 %4, %v93_v17  }
  0x5f   :  { %v124_v18 = vpop.permute.xlu2 %123 }
  0x60   :  { %259 = vst [vmem:[%s402_s1 + $0x20] sm:$0xff] %v124_v18 }
  0x67   :  { %v130_v19 = vpop.permute.xlu2 %129 }
  0x68   :  { %261 = vst [vmem:[%s402_s1 + $0x28] sm:$0xff] %v130_v19 }
  0x6f   :  { %v148_v20 = vpop.permute.xlu2 %147 }
  0x70   :  { %267 = vst [vmem:[%s402_s1 + $0x40] sm:$0xff] %v148_v20 }
  0x77   :  { %v166_v21 = vpop.permute.xlu2 %165 }
  0x78   :  { %v112_v22 = vpop.permute.xlu1 %111  ;;  %273 = vst [vmem:[%s402_s1 + $0x58] sm:$0xff] %v166_v21  ;;  %v100_v23 = vpop.permute.xlu0 %99 }
  0x79   :  { %255 = vst [vmem:[%s402_s1 + $0x10] sm:$0xff] %v112_v22 }
  0x7a   :  { %251 = vst [vmem:[%s402_s1] sm:$0xff] %v100_v23 }
  0x7f   :  { %v184_v24 = vpop.permute.xlu2 %183 }
  0x80   :  { %v118_v25 = vpop.permute.xlu1 %117  ;;  %279 = vst [vmem:[%s402_s1 + $0x70] sm:$0xff] %v184_v24  ;;  %v106_v26 = vpop.permute.xlu0 %105 }
  0x81   :  { %257 = vst [vmem:[%s402_s1 + $0x18] sm:$0xff] %v118_v25 }
  0x82   :  { %253 = vst [vmem:[%s402_s1 + $0x8] sm:$0xff] %v106_v26 }
  0x88   :  { %v142_v27 = vpop.permute.xlu1 %141  ;;  %v136_v28 = vpop.permute.xlu0 %135 }
  0x89   :  { %265 = vst [vmem:[%s402_s1 + $0x38] sm:$0xff] %v142_v27 }
  0x8a   :  { %263 = vst [vmem:[%s402_s1 + $0x30] sm:$0xff] %v136_v28 }
  0x90   :  { %v160_v29 = vpop.permute.xlu1 %159  ;;  %v154_v30 = vpop.permute.xlu0 %153 }
  0x91   :  { %271 = vst [vmem:[%s402_s1 + $0x50] sm:$0xff] %v160_v29 }
  0x92   :  { %269 = vst [vmem:[%s402_s1 + $0x48] sm:$0xff] %v154_v30 }
  0x98   :  { %v178_v31 = vpop.permute.xlu1 %177  ;;  %v172_v32 = vpop.permute.xlu0 %171 }
  0x99   :  { %277 = vst [vmem:[%s402_s1 + $0x68] sm:$0xff] %v178_v31 }
  0x9a   :  { %275 = vst [vmem:[%s402_s1 + $0x60] sm:$0xff] %v172_v32 }
  0xa0   :  { %v190_v33 = vpop.permute.xlu0 %189 }
  0xa1   :  { %281 = vst [vmem:[%s402_s1 + $0x78] sm:$0xff] %v190_v33 }

// kernel: custom-call.26
= control target key start
LH: loop header
LB: loop body
LE: loop exit
PB: predicated region body
PF: predicated region fallthrough
CT: control target
= control target key end

     0   :  { %s599_s0 = inlined_call_operand.vmem [shape: f32[128,3,3], index: 0, kind: input, shape index: {}]   ;;  %s600_s1 = inlined_call_operand.vmem [shape: f32[128,3,3], index: 1, kind: output, shape index: {0}]   ;;  %s601_s2 = inlined_call_operand.vmem [shape: f32[128,3], index: 2, kind: output, shape index: {1}]  }
   0x1   :  { %v20_v0 = vld [vmem:[%s599_s0] sm:$0xff]   ;;  %v24_v1 = vld [vmem:[%s599_s0 + $0x8] sm:$0xf] }
   0x2   :  { %21 = vst [vmem:[#allocation1] sm:$0xff] %v20_v0  }
   0x3   :  { %25 = vst [vmem:[#allocation1 + $0x8] sm:$0xf] %v24_v1 }
   0x9   :  { %v60_v2 = vld [vmem:[#allocation1 + $0x4] sm:$0xf]  ;;  %v63_v3 = vld [vmem:[#allocation1] sm:$0xf] }
   0xa   :  { %v56_v4 = vld [vmem:[#allocation1 + $0x8] sm:$0xf]  ;;  %62 = vst [vmem:[#allocation0 + $0x10] sm:$0xf] %v60_v2 }
   0xb   :  { %58 = vst [vmem:[#allocation0] sm:$0xf] %v56_v4 }
   0xc   :  { %64 = vst [vmem:[#allocation0 + $0x8] sm:$0xf] %v63_v3 }
  0x11   :  { %v69_v5 = vld [vmem:[#allocation0 + $0x10] sm:$0xff] }
  0x12   :  { %70 = vst [vmem:[#allocation2 + $0x8] sm:$0xff] %v69_v5  ;;  %v73_v6 = vld [vmem:[#allocation0] sm:$0xff] }
  0x13   :  { %v65_v7 = vld [vmem:[#allocation0 + $0x8] sm:$0xff]  ;;  %74 = vst [vmem:[#allocation2 + $0x10] sm:$0xff] %v73_v6 }
  0x14   :  { %66 = vst [vmem:[#allocation2] sm:$0xff] %v65_v7 }
  0x15   :  { %v493_v8 = vmov 0.0   ;;  %s516_s13 = smov 0  }
  0x16   :  { %75 = vst [vmem:[#allocation4] sm:$0xff] %v493_v8 }
  0x17 LB: > { %v85_v9 = vlaneseq  ;;  %s443_s0 = sshll.u32 %s487_s13, 3  ;;  %v525_v11 = vstv %s487_s13  ;;  %s534_s15 = sadd.s32 1, %s487_s13   ;;  %s487_s13 = sphi %s516_s13, %s602_s13  }
  0x18   : > { %s527_s14 = scalar_lea.vmem [#allocation2], %s443_s0  ;;  %s244_s17 = scalar_lea.vmem [#allocation4], %s487_s13 }
  0x19   : > { %v522_v10 = vshrl.u32 %v85_v9, 7  ;;  %s117_s16 = scalar_lea.vmem %s527_s14, %s487_s13 [#allocation2]  ;;  %s238_s18 = scalar_lea.vmem [#allocation6], %s487_s13 }
  0x1a   : > { %p434_p0 = scmp.ge.s32.totalorder %s534_s15, 3 }
  0x1b   : > { %v84_v12 = vld [vmem:[%s527_s14] sm:$0xff]  ;;  %vm89_vm0 = vcmp.gt.s32.totalorder %v522_v10, %v525_v11  ;;  %vm90_vm1 = vcmp.lt.s32.totalorder %v522_v10, 3  ;;  %v213_v10 = vmov %v522_v10  ;;  %s210_s14 = smov %s527_s14  ;;  %s489_s19 = smov (!%p434_p0), %s534_s15  }
  0x1c   : > { %vm91_vm2 = vmand %vm89_vm0, %vm90_vm1  ;;  %v542_v25 = vld [vmem:[%s117_s16] ss:$0 sm:$0xff]  ;;  %vm217_vm15 = vcmp.gt.s32.totalorder %v213_v10, %v525_v11  ;;  %vm218_vm0 = vcmp.lt.s32.totalorder %v213_v10, 3 }
  0x1d   : > { %v92_v13 = vsel %vm91_vm2, %v84_v12, 0.0  ;;  %v119_v28 = vand.u32 2147483647, %v542_v25  ;;  %vm188_vm12 = vcmp.lt.f32.partialorder %v542_v25, 0.0 }
  0x1e   : > { %v93_v14 = vmul.f32 %v92_v13, %v92_v13 }
  0x1f   : > { %v120_v32 = vmax.f32 %v119_v28, 0.0 }
  0x20   : > { %v94_v15 = vrot.slane %v93_v14, 4 }
  0x22   : > { %v95_v16 = vadd.f32 %v94_v15, %v93_v14 }
  0x24   : > { %v96_v17 = vrot.slane %v95_v16, 2 }
  0x26   : > { %v97_v18 = vadd.f32 %v96_v17, %v95_v16 }
  0x28   : > { %v98_v19 = vrot.slane %v97_v18, 1 }
  0x2a   : > { %v536_v20 = vadd.f32 %v98_v19, %v97_v18 }
  0x2c   : > { %467 = vrsqrt.f32 %v536_v20  ;;  %vm107_vm3 = vcmp.eq.f32.partialorder %v536_v20, inf  ;;  %v110_v29 = vand.u32 2147483648, %v536_v20  ;;  %vm109_vm4 = vcmp.eq.f32.partialorder %v536_v20, 0.0 }
  0x32   : > { %v468_v21 = vpop.eup %467 }
  0x33   : > { %v101_v22 = vmul.f32 %v468_v21, %v536_v20 }
  0x35   : > { %v102_v23 = vmul.f32 %v468_v21, %v101_v22 }
  0x37   : > { %v103_v24 = vmul.f32 0.5, %v102_v23 }
  0x39   : > { %v104_v26 = vsub.f32 1.5, %v103_v24  ;;  %v214_v24 = vld [vmem:[%s210_s14] sm:$0xff] }
  0x3b   : > { %v105_v27 = vmul.f32 %v468_v21, %v104_v26 }
  0x3d   : > { %v106_v30 = vmul.f32 %v105_v27, %v536_v20 }
  0x3f   : > { %v108_v31 = vsel %vm107_vm3, %v536_v20, %v106_v30 }
  0x40   : > { %v111_v33 = vsel %vm109_vm4, %v110_v29, %v108_v31 }
  0x41   : > { %v121_v34 = vand.u32 2147483647, %v111_v33 }
  0x43   : > { %v122_v35 = vmax.f32 %v120_v32, %v121_v34 }
  0x45   : > { %469 = vrcp.f32 %v122_v35  ;;  %v134_v38 = vand.u32 2147483648, %v122_v35  ;;  %vm128_vm5 = vweird.f32 %v122_v35  ;;  %v132_v40 = vand.u32 2147483647, %v122_v35 }
  0x46   : > { %vm173_vm11 = vcmp.eq.f32.partialorder %v122_v35, 0.0 }
  0x47   : > { %v135_v42 = vor.u32 1.1754944e-38, %v134_v38  ;;  %vm133_vm8 = vcmp.eq.f32.partialorder %v132_v40, 8.507059e+37 }
  0x4b   : > { %v470_v36 = vpop.eup %469 }
  0x4c   : > { %v124_v37 = vmul.f32 %v470_v36, %v122_v35  ;;  %vm129_vm6 = vweird.f32 %v470_v36 }
  0x4d   : > { %vm130_vm7 = vmor %vm128_vm5, %vm129_vm6 }
  0x4e   : > { %v125_v39 = vsub.f32 1.0, %v124_v37  ;;  %vm219_vm6 = vmand %vm217_vm15, %vm218_vm0 }
  0x4f   : > { %v220_v30 = vsel %vm219_vm6, %v214_v24, 0.0 }
  0x50   : > { %v126_v41 = vmul.f32 %v470_v36, %v125_v39 }
  0x52   : > { %v127_v43 = vadd.f32 %v470_v36, %v126_v41 }
  0x54   : > { %v131_v44 = vsel %vm130_vm7, %v470_v36, %v127_v43  ;;  %v494_v36 = vmov 1.0  }
  0x55   : > { %v136_v45 = vsel %vm133_vm8, %v135_v42, %v131_v44 }
  0x56   : > { %v137_v46 = vmul.f32 %v136_v45, %v119_v28  ;;  %v153_v47 = vmul.f32 0.0, %v136_v45  ;;  %v170_v48 = vmul.f32 %v136_v45, %v121_v34 }
  0x58   : > { %v138_v49 = vmul.f32 %v137_v46, %v137_v46  ;;  %v154_v50 = vmul.f32 %v153_v47, %v153_v47  ;;  %v171_v51 = vmul.f32 %v170_v48, %v170_v48 }
  0x5a   : > { %v155_v52 = vadd.f32 %v154_v50, %v138_v49 }
  0x5c   : > { %v172_v53 = vadd.f32 %v171_v51, %v155_v52 }
  0x5e   : > { %471 = vrsqrt.f32 %v172_v53  ;;  %vm181_vm9 = vcmp.eq.f32.partialorder %v172_v53, inf  ;;  %v184_v60 = vand.u32 2147483648, %v172_v53  ;;  %vm183_vm10 = vcmp.eq.f32.partialorder %v172_v53, 0.0 }
  0x64   : > { %v472_v54 = vpop.eup %471 }
  0x65   : > { %v175_v55 = vmul.f32 %v472_v54, %v172_v53 }
  0x67   : > { %v176_v56 = vmul.f32 %v472_v54, %v175_v55 }
  0x69   : > { %v177_v57 = vmul.f32 0.5, %v176_v56 }
  0x6b   : > { %v178_v58 = vsub.f32 1.5, %v177_v57 }
  0x6d   : > { %v179_v59 = vmul.f32 %v472_v54, %v178_v58 }
  0x6f   : > { %v180_v61 = vmul.f32 %v179_v59, %v172_v53 }
  0x71   : > { %v182_v62 = vsel %vm181_vm9, %v172_v53, %v180_v61 }
  0x72   : > { %v185_v63 = vsel %vm183_vm10, %v184_v60, %v182_v62 }
  0x73   : > { %v186_v0 = vmul.f32 %v185_v63, %v122_v35 }
  0x75   : > { %v187_v1 = vsel %vm173_vm11, 0.0, %v186_v0 }
  0x76   : > { %v189_v2 = vxor.u32 2147483648, %v187_v1 }
  0x78   : > { %v190_v3 = vsel %vm188_vm12, %v187_v1, %v189_v2 }
  0x79   : > { %473 = vrcp.f32 %v190_v3  ;;  %v556_v4 = vsel %vm109_vm4, %v542_v25, %v190_v3  ;;  %v201_v8 = vand.u32 2147483647, %v190_v3  ;;  %v203_v9 = vand.u32 2147483648, %v190_v3 }
  0x7a   : > { %v209_v5 = vsub.f32 %v542_v25, %v556_v4  ;;  %vm197_vm13 = vweird.f32 %v190_v3  ;;  %v191_v14 = vsub.f32 %v190_v3, %v542_v25 }
  0x7b   : > { %vm202_vm2 = vcmp.eq.f32.partialorder %v201_v8, 8.507059e+37  ;;  %v204_v17 = vor.u32 1.1754944e-38, %v203_v9 }
  0x7c   : > { %475 = vrcp.f32 %v209_v5  ;;  %vm226_vm3 = vweird.f32 %v209_v5  ;;  %v232_v18 = vand.u32 2147483648, %v209_v5  ;;  %v230_v22 = vand.u32 2147483647, %v209_v5 }
  0x7e   : > { %v233_v27 = vor.u32 1.1754944e-38, %v232_v18  ;;  %vm231_vm8 = vcmp.eq.f32.partialorder %v230_v22, 8.507059e+37 }
  0x7f   : > { %v474_v6 = vpop.eup %473 }
  0x80   : > { %v193_v7 = vmul.f32 %v474_v6, %v190_v3  ;;  %vm198_vm14 = vweird.f32 %v474_v6 }
  0x81   : > { %vm199_vm1 = vmor %vm197_vm13, %vm198_vm14 }
  0x82   : > { %v194_v12 = vsub.f32 1.0, %v193_v7  ;;  %v476_v13 = vpop.eup %475 }
  0x83   : > { %v222_v16 = vmul.f32 %v476_v13, %v209_v5  ;;  %vm227_vm5 = vweird.f32 %v476_v13 }
  0x84   : > { %v195_v15 = vmul.f32 %v474_v6, %v194_v12  ;;  %vm228_vm7 = vmor %vm226_vm3, %vm227_vm5 }
  0x85   : > { %v223_v21 = vsub.f32 1.0, %v222_v16 }
  0x86   : > { %v196_v19 = vadd.f32 %v474_v6, %v195_v15 }
  0x87   : > { %v224_v25 = vmul.f32 %v476_v13, %v223_v21 }
  0x88   : > { %v200_v23 = vsel %vm199_vm1, %v474_v6, %v196_v19 }
  0x89   : > { %v205_v26 = vsel %vm202_vm2, %v204_v17, %v200_v23  ;;  %v225_v29 = vadd.f32 %v476_v13, %v224_v25 }
  0x8a   : > { %v206_v28 = vmul.f32 %v205_v26, %v191_v14 }
  0x8b   : > { %v229_v32 = vsel %vm228_vm7, %v476_v13, %v225_v29 }
  0x8c   : > { %v208_v31 = vsel %vm109_vm4, 0.0, %v206_v28  ;;  %v234_v33 = vsel %vm231_vm8, %v233_v27, %v229_v32 }
  0x8d   : > { %245 = vst [vmem:[%s244_s17] sm:$0x1] %v208_v31  ;;  %v235_v34 = vmul.f32 %v234_v33, %v220_v30  ;;  %435 = sbr.rel (%p434_p0) target bundleno = 176 (0xb0), region = 155 }
  0x8f   : > { %v236_v35 = vsel %vm109_vm4, 0.0, %v235_v34 }
  0x90   : > { %237 = vst [vmem:[#allocation6] sm:$0xff] %v236_v35 }
  0x91   : > { %239 = vst [vmem:[%s238_s18] sm:$0x1] %v494_v36 }
  0x92 LB: >> { %v255_v10 = vmov %v522_v10  ;;  %s446_s20 = sshll.u32 %s491_s19, 3  ;;  %s250_s19 = sadd.s32 1, %s491_s19   ;;  %s491_s19 = sphi %s489_s19, %s250_s19  }
  0x93   : >> { %s259_s21 = scalar_lea.vmem [#allocation2], %s446_s20  ;;  %vm262_vm4 = vcmp.lt.s32.totalorder %v255_v10, 3  ;;  %v272_v10 = vmov %v522_v10  ;;  %p249_p1 = scmp.ge.s32.totalorder %s250_s19, 3 }
  0x94   : >> { %v260_v20 = vld [vmem:[%s259_s21] sm:$0xff]  ;;  %vm281_vm9 = vcmp.ge.s32.totalorder %v272_v10, %v525_v11 }
  0x98   : >> { %v257_v37 = vld [vmem:[#allocation6] sm:$0xff] }
  0x99   : >> { %v261_v38 = vmul.f32 %v260_v20, %v257_v37 }
  0x9b   : >> { %v263_v39 = vsel %vm262_vm4, %v261_v38, 0.0 }
  0x9c   : >> { %v264_v40 = vrot.slane %v263_v39, 4 }
  0x9e   : >> { %v265_v41 = vadd.f32 %v264_v40, %v263_v39 }
  0xa0   : >> { %v266_v42 = vrot.slane %v265_v41, 2 }
  0xa2   : >> { %v267_v43 = vadd.f32 %v266_v42, %v265_v41 }
  0xa4   : >> { %v268_v44 = vrot.slane %v267_v43, 1 }
  0xa6   : >> { %v269_v45 = vadd.f32 %v268_v44, %v267_v43 }
  0xa8   : >> { %v273_v46 = vmul.f32 %v269_v45, %v208_v31 }
  0xaa   : >> { %v276_v47 = vmul.f32 %v273_v46, %v257_v37 }
  0xab   : > { %252 = sbr.rel (!%p249_p1) target bundleno = 146 (0x92), region = 161 }
  0xac   : >> { %v282_v48 = vsub.f32 %v260_v20, %v276_v47 }
  0xae   : >> { %v283_v49 = vsel %vm281_vm9, %v282_v48, %v260_v20 }
  0xaf   : >> { %284 = vst [vmem:[%s259_s21] sm:$0xff] %v283_v49 }
  0xb0 PF: > { %v287_v10 = vmov %v522_v10  ;;  %s602_s13 = smov %s534_s15 }
  0xb1   : > { %vm294_vm10 = vcmp.gt.s32.totalorder %v287_v10, %v525_v11  ;;  %vm297_vm11 = vcmp.eq.s32.totalorder %v287_v10, %v525_v11 }
  0xb2   :  { %v320_v57 = vld [vmem:[#allocation4] sm:$0xf] (%p434_p0) }
  0xb3   :  { %323 = vst [vmem:[#allocation5] sm:$0xf] (%p434_p0), %v320_v57 }
  0xb5   :  { %80 = sbr.rel (!%p434_p0) target bundleno = 23 (0x17), region = 172 }
  0xb6   : > { %v289_v50 = vld [vmem:[#allocation6] sm:$0xff]  ;;  %v292_v51 = vld [vmem:[%s527_s14] sm:$0xff] }
  0xb7   : > { %v295_v52 = vsel %vm294_vm10, %v289_v50, %v292_v51 }
  0xb8   : > { %v298_v53 = vsel %vm297_vm11, %v556_v4, %v295_v52 }
  0xb9   : > { %299 = vst [vmem:[%s527_s14] sm:$0xff] %v298_v53 }
  0xba   :  { %v389_v11 = vld [vmem:[#allocation5] sm:$0xf] }
  0xbb   :  { %390 = vst [vmem:[%s601_s2] sm:$0xf] %v389_v11 }
  0xc0   :  { %v302_v54 = vld [vmem:[#allocation2] sm:$0xf]  ;;  %v307_v55 = vld [vmem:[#allocation2 + $0x8] sm:$0xf]  ;;  %v313_v56 = vld [vmem:[#allocation2 + $0x10] sm:$0xf] }
  0xc1   :  { %305 = vst [vmem:[#allocation3] sm:$0xf] %v302_v54 }
  0xc2   :  { %311 = vst [vmem:[#allocation3 + $0x4] sm:$0xf] %v307_v55 }
  0xc3   :  { %317 = vst [vmem:[#allocation3 + $0x8] sm:$0xf] %v313_v56 }
  0xc9   :  { %v340_v58 = vld [vmem:[#allocation3] sm:$0xff]  }
  0xca   :  { %341 = vst [vmem:[%s600_s1] sm:$0xff] %v340_v58   ;;  %v344_v10 = vld [vmem:[#allocation3 + $0x8] sm:$0xf] }
  0xcb   :  { %345 = vst [vmem:[%s600_s1 + $0x8] sm:$0xf] %v344_v10 }

// kernel: squeeze.118
= control target key start
LH: loop header
LB: loop body
LE: loop exit
PB: predicated region body
PF: predicated region fallthrough
CT: control target
= control target key end

     0   :  { %s37_s8 = smov 4   ;;  %s38_s9 = smov 8   ;;  %vm7_vm0 = vcmask 31744   ;;  %vm13_vm1 = vcmask 130144   ;;  %vm19_vm2 = vcmask 97344   ;;  %vm25_vm3 = vcmask 64544   ;;  %s55_s0 = inlined_call_operand.vmem [shape: f32[1,4,4], index: 0, kind: input, shape index: {}]   ;;  %s56_s1 = inlined_call_operand.vmem [shape: f32[16], index: 1, kind: output, shape index: {}]  }
   0x1   :  { %v4_v0 = vld [vmem:[%s55_s0] sm:$0xf]  ;;  %s36_s0 = smov 12  }
   0x2   :  { %5 = vst [vmem:[#allocation1] sm:$0xf] %v4_v0 }
   0x9   :  { %v10_v1 = vld [vmem:[#allocation1 + $0x3] sm:$0x1]   ;;  %v22_v2 = vld [vmem:[#allocation1 + $0x1] sm:$0x1]   ;;  %v16_v3 = vld [vmem:[#allocation1 + $0x2] sm:$0x1]  }
   0xa   :  { %11 = vrot.lane.b32.xlu0 %v10_v1, %s36_s0  ;;  %23 = vrot.lane.b32.xlu1 %v22_v2, %s37_s8  ;;  %v6_v4 = vld [vmem:[#allocation1] sm:$0x1]  }
   0xb   :  { %8 = vst.msk [vmem:[#allocation0] sm:$0x1] %vm7_vm0, %v6_v4  }
  0x12   :  { %17 = vrot.lane.b32.xlu0 %v16_v3, %s38_s9 }
  0x7c   :  { %v12_v5 = vpop.permute.xlu0 %11   ;;  %v24_v6 = vpop.permute.xlu1 %23  }
  0x7d   :  { %14 = vst.msk [vmem:[#allocation0] sm:$0x1] %vm13_vm1, %v12_v5  }
  0x84   :  { %v18_v7 = vpop.permute.xlu0 %17  }
  0x85   :  { %20 = vst.msk [vmem:[#allocation0] sm:$0x1] %vm19_vm2, %v18_v7  }
  0x86   :  { %26 = vst.msk [vmem:[#allocation0] sm:$0x1] %vm25_vm3, %v24_v6  }
  0x8d   :  { %v29_v8 = vld [vmem:[#allocation0] sm:$0x1] }
  0x8e   :  { %32 = vst [vmem:[%s56_s1] sm:$0x1] %v29_v8 }

// kernel: a_call__.6
= control target key start
LH: loop header
LB: loop body
LE: loop exit
PB: predicated region body
PF: predicated region fallthrough
CT: control target
= control target key end

     0   :  { %s872_s9 = smov 0   ;;  %s874_s10 = smov 0   ;;  %s1146_s0 = inlined_call_operand.vmem [shape: f32[384,8], index: 0, kind: input, shape index: {}]   ;;  %s1147_s1 = inlined_call_operand.vmem [shape: f32[8,8,128], index: 1, kind: input, shape index: {}]   ;;  %s1148_s2 = inlined_call_operand.vmem [shape: f32[128,128], index: 2, kind: output, shape index: {}]  }
   0x1   :  { %s876_s11 = smov 0  }
   0x2 LB: > { %s24_s12 = sadd.s32 1, %s813_s10  ;;  %p627_p0 = scmp.ge.s32.totalorder %s817_s11, 1  ;;  %s817_s11 = sphi %s876_s11, %s12_s11   ;;  %s813_s10 = sphi %s874_s10, %s1177_s10   ;;  %s809_s9 = sphi %s872_s9, %s1176_s9  }
   0x3   : > { %p26_p1 = scmp.ge.s32.totalorder %s24_s12, 2  ;;  %p136_p2 = scmp.lt.s32.totalorder %s817_s11, 3 }
   0x5   : > { %s1179_s12 = smov (%p26_p1, %s24_s12), 0  ;;  %p137_p3 = pnand %p627_p0, %p136_p2 }
   0x7   : > { %140 = sbr.rel (%p137_p3) target bundleno = 227 (0xe3), region = 28 }
   0xc   : > { %s163_s13 = smul.u32 24, %s809_s9  ;;  %s629_s14 = sshll.u32 %s809_s9, 3  ;;  %v855_v0 = vmov 0.0   ;;  %v980_v25 = vmov 0.0   ;;  %v982_v26 = vmov 0.0   ;;  %v984_v27 = vmov 0.0  }
   0xd   : > { %p176_p4 = scmp.lt.s32.totalorder %s629_s14, 15  ;;  %v986_v28 = vmov 0.0   ;;  %v988_v29 = vmov 0.0   ;;  %v990_v30 = vmov 0.0   ;;  %v992_v31 = vmov 0.0   ;;  %s996_s23 = smov 0  }
   0xe   : > { %p164_p5 = scmp.lt.s32.totalorder %s163_s13, 47  ;;  %v994_v32 = vmov 0.0  }
   0xf   : > { %s1181_s14 = smov (!%p176_p4, %s629_s14), 15 }
  0x10   : > { %s1183_s13 = smov (!%p164_p5, %s163_s13), 47  ;;  %s630_s15 = sshll.u32 %s1181_s14, 3 }
  0x11   : > { %s628_s16 = sshll.u32 %s1183_s13, 3  ;;  %s893_s19 = scalar_lea.vmem %s1148_s2, %s630_s15 }
  0x12   : > { %s898_s22 = scalar_lea.vmem %s1146_s0, %s628_s16  ;;  %185 = vst [vmem:[%s893_s19] sm:$0xff] %v855_v0 }
  0x13   : > { %186 = vst [vmem:[%s893_s19 + $0x8] sm:$0xff] %v855_v0  ;;  %v903_v1 = vld [vmem:[%s898_s22] sm:$0xff]  ;;  %v906_v2 = vld [vmem:[%s898_s22 + $0x8] sm:$0xff]  ;;  %v909_v3 = vld [vmem:[%s898_s22 + $0x10] sm:$0xff] }
  0x14   : > { %1149 = vst [vmem:[#allocation2_spill] sm:$0xff] %v903_v1  ;;  %v913_v4 = vld [vmem:[%s898_s22 + $0x18] sm:$0xff]  ;;  %v916_v5 = vld [vmem:[%s898_s22 + $0x20] sm:$0xff]  ;;  %v919_v6 = vld [vmem:[%s898_s22 + $0x28] sm:$0xff] }
  0x15   : > { %1150 = vst [vmem:[#allocation3_spill] sm:$0xff] %v906_v2  ;;  %v923_v7 = vld [vmem:[%s898_s22 + $0x30] sm:$0xff]  ;;  %v926_v8 = vld [vmem:[%s898_s22 + $0x38] sm:$0xff]  ;;  %v929_v9 = vld [vmem:[%s898_s22 + $0x40] sm:$0xff] }
  0x16   : > { %1151 = vst [vmem:[#allocation4_spill] sm:$0xff] %v909_v3  ;;  %v933_v10 = vld [vmem:[%s898_s22 + $0x48] sm:$0xff]  ;;  %v936_v11 = vld [vmem:[%s898_s22 + $0x50] sm:$0xff]  ;;  %v939_v12 = vld [vmem:[%s898_s22 + $0x58] sm:$0xff] }
  0x17   : > { %187 = vst [vmem:[%s893_s19 + $0x10] sm:$0xff] %v855_v0  ;;  %v943_v13 = vld [vmem:[%s898_s22 + $0x60] sm:$0xff]  ;;  %v946_v14 = vld [vmem:[%s898_s22 + $0x68] sm:$0xff]  ;;  %v949_v15 = vld [vmem:[%s898_s22 + $0x70] sm:$0xff] }
  0x18   : > { %1152 = vst [vmem:[#allocation5_spill] sm:$0xff] %v913_v4  ;;  %v953_v16 = vld [vmem:[%s898_s22 + $0x78] sm:$0xff]  ;;  %v956_v17 = vld [vmem:[%s898_s22 + $0x80] sm:$0xff]  ;;  %v959_v18 = vld [vmem:[%s898_s22 + $0x88] sm:$0xff] }
  0x19   : > { %1153 = vst [vmem:[#allocation6_spill] sm:$0xff] %v916_v5  ;;  %v963_v19 = vld [vmem:[%s898_s22 + $0x90] sm:$0xff]  ;;  %v966_v20 = vld [vmem:[%s898_s22 + $0x98] sm:$0xff]  ;;  %v969_v21 = vld [vmem:[%s898_s22 + $0xa0] sm:$0xff] }
  0x1a   : > { %1154 = vst [vmem:[#allocation7_spill] sm:$0xff] %v919_v6  ;;  %v972_v22 = vld [vmem:[%s898_s22 + $0xa8] sm:$0xff]  ;;  %v975_v23 = vld [vmem:[%s898_s22 + $0xb0] sm:$0xff]  ;;  %v978_v24 = vld [vmem:[%s898_s22 + $0xb8] sm:$0xff] }
  0x1b   : > { %188 = vst [vmem:[%s893_s19 + $0x18] sm:$0xff] %v855_v0 }
  0x1c   : > { %1155 = vst [vmem:[#allocation8_spill] sm:$0xff] %v923_v7 }
  0x1d   : > { %1156 = vst [vmem:[#allocation9_spill] sm:$0xff] %v926_v8 }
  0x1e   : > { %1157 = vst [vmem:[#allocation10_spill] sm:$0xff] %v929_v9 }
  0x1f   : > { %189 = vst [vmem:[%s893_s19 + $0x20] sm:$0xff] %v855_v0 }
  0x20   : > { %190 = vst [vmem:[%s893_s19 + $0x28] sm:$0xff] %v855_v0 }
  0x21   : > { %191 = vst [vmem:[%s893_s19 + $0x30] sm:$0xff] %v855_v0 }
  0x22   : > { %192 = vst [vmem:[%s893_s19 + $0x38] sm:$0xff] %v855_v0 }
  0x23 LB: >> { %s631_s24 = sshll.u32 %s853_s23, 3  ;;  %vm234_vm0 = vcmask 64512   ;;  %v1158_v1 = vld [vmem:[#allocation2_spill] sm:$0xff]  ;;  %v1159_v7 = vld [vmem:[#allocation8_spill] sm:$0xff]  ;;  %v1160_v2 = vld [vmem:[#allocation3_spill] sm:$0xff]  ;;  %s222_s23 = sadd.s32 1, %s853_s23   ;;  %s853_s23 = sphi %s996_s23, %s222_s23   ;;  %v849_v32 = vphi %v994_v32, %v1175_v32   ;;  %v845_v31 = vphi %v992_v31, %v1174_v31   ;;  %v841_v30 = vphi %v990_v30, %v1173_v30   ;;  %v837_v29 = vphi %v988_v29, %v1172_v29   ;;  %v833_v28 = vphi %v986_v28, %v1171_v28   ;;  %v829_v27 = vphi %v984_v27, %v1170_v27   ;;  %v825_v26 = vphi %v982_v26, %v1169_v26   ;;  %v821_v25 = vphi %v980_v25, %v1168_v25  }
  0x24   : >> { %s232_s27 = scalar_lea.vmem %s1147_s1, %s631_s24  ;;  %v1161_v8 = vld [vmem:[#allocation9_spill] sm:$0xff]  ;;  %v1162_v3 = vld [vmem:[#allocation4_spill] sm:$0xff]  ;;  %v1165_v5 = vld [vmem:[#allocation6_spill] sm:$0xff]  ;;  %p219_p6 = scmp.ge.s32.totalorder %s222_s23, 8  }
  0x25   : >> { %v233_v33 = vld [vmem:[%s232_s27] sm:$0xff]  ;;  %v1164_v4 = vld [vmem:[#allocation5_spill] sm:$0xff]  ;;  %v1166_v6 = vld [vmem:[#allocation7_spill] sm:$0xff] }
  0x26   : >> { %322 = vmatpush.msra.mxu0 %v233_v33  ;;  %658 = vmatpush.msra.mxu1 %v233_v33  ;;  %v1163_v9 = vld [vmem:[#allocation10_spill] sm:$0xff]  ;;  %v396_v44 = vperm.slane %v233_v33, 4  ;;  %v405_v45 = vperm.slane %v233_v33, 5  ;;  %v1077_v46 = vperm.slane %v233_v33, 6 }
  0x27   : >> { %659 = vmatpush.msra.mxu2 %v233_v33  ;;  %660 = vmatpush.msra.mxu3 %v233_v33 }
  0x28   : >> { %632 = vmatmul.msk.f32.vlgmr.msra.gmra.mxu0 %vm234_vm0, %v1158_v1  ;;  %638 = vmatmul.msk.f32.vlgmr.msra.gmra.mxu1 %vm234_vm0, %v1159_v7 }
  0x29   : >> { %644 = vmatmul.msk.f32.vlgmr.msra.gmra.mxu2 %vm234_vm0, %v943_v13  ;;  %650 = vmatmul.msk.f32.vlgmr.msra.gmra.mxu3 %vm234_vm0, %v963_v19 }
  0x30   : >> { %633 = vmatmul.msk.f32.gmra.mxu0 %vm234_vm0, %v1160_v2  ;;  %639 = vmatmul.msk.f32.gmra.mxu1 %vm234_vm0, %v1161_v8 }
  0x31   : >> { %645 = vmatmul.msk.f32.gmra.mxu2 %vm234_vm0, %v946_v14  ;;  %651 = vmatmul.msk.f32.gmra.mxu3 %vm234_vm0, %v966_v20  ;;  %v493_v14 = vld [vmem:[%s893_s19 + $0x30] sm:$0xff] (%p219_p6) }
  0x38   : >> { %634 = vmatmul.msk.f32.gmra.mxu0 %vm234_vm0, %v1162_v3  ;;  %640 = vmatmul.msk.f32.gmra.mxu1 %vm234_vm0, %v1163_v9 }
  0x39   : >> { %646 = vmatmul.msk.f32.gmra.mxu2 %vm234_vm0, %v949_v15  ;;  %652 = vmatmul.msk.f32.gmra.mxu3 %vm234_vm0, %v969_v21 }
  0x40   : >> { %635 = vmatmul.msk.f32.gmra.mxu0 %vm234_vm0, %v1164_v4  ;;  %641 = vmatmul.msk.f32.gmra.mxu1 %vm234_vm0, %v933_v10  ;;  %v490_v10 = vld [vmem:[%s893_s19 + $0x18] sm:$0xff] (%p219_p6) }
  0x41   : >> { %647 = vmatmul.msk.f32.gmra.mxu2 %vm234_vm0, %v953_v16  ;;  %653 = vmatmul.msk.f32.gmra.mxu3 %vm234_vm0, %v972_v22  ;;  %v494_v16 = vld [vmem:[%s893_s19 + $0x38] sm:$0xff] (%p219_p6) }
  0x48   : >> { %636 = vmatmul.msk.f32.gmra.mxu0 %vm234_vm0, %v1165_v5  ;;  %642 = vmatmul.msk.f32.gmra.mxu1 %vm234_vm0, %v936_v11  ;;  %v491_v11 = vld [vmem:[%s893_s19 + $0x20] sm:$0xff] (%p219_p6) }
  0x49   : >> { %648 = vmatmul.msk.f32.gmra.mxu2 %vm234_vm0, %v956_v17  ;;  %654 = vmatmul.msk.f32.gmra.mxu3 %vm234_vm0, %v975_v23 }
  0x50   : >> { %637 = vmatmul.msk.f32.gmra.mxu0 %vm234_vm0, %v1166_v6  ;;  %643 = vmatmul.msk.f32.gmra.mxu1 %vm234_vm0, %v939_v12  ;;  %v492_v12 = vld [vmem:[%s893_s19 + $0x28] sm:$0xff] (%p219_p6) }
  0x51   : >> { %649 = vmatmul.msk.f32.gmra.mxu2 %vm234_vm0, %v959_v18  ;;  %655 = vmatmul.msk.f32.gmra.mxu3 %vm234_vm0, %v978_v24 }
  0xa5   : >> { %v324_v34 = vpop.f32.mrf.mxu0  ;;  %v342_v35 = vpop.f32.mrf.mxu1 }
  0xa6   : >> { %v397_v51 = vsub.f32 %v396_v44, %v324_v34  ;;  %v403_v52 = vsub.f32 %v396_v44, %v342_v35 }
  0xa8   : >> { %v423_v56 = vmul.f32 %v397_v51, %v397_v51  ;;  %v429_v57 = vmul.f32 %v403_v52, %v403_v52 }
  0xac   : >> { %v360_v36 = vpop.f32.mrf.mxu2  ;;  %v378_v37 = vpop.f32.mrf.mxu3 }
  0xad   : >> { %v327_v38 = vpop.f32.mrf.mxu0  ;;  %v345_v39 = vpop.f32.mrf.mxu1  ;;  %v410_v53 = vsub.f32 %v405_v45, %v360_v36  ;;  %v417_v54 = vsub.f32 %v1077_v46, %v378_v37 }
  0xae   : >> { %v398_v55 = vsub.f32 %v396_v44, %v327_v38  ;;  %v404_v58 = vsub.f32 %v396_v44, %v345_v39 }
  0xaf   : >> { %v435_v61 = vmul.f32 %v410_v53, %v410_v53  ;;  %v449_v62 = vmul.f32 %v417_v54, %v417_v54 }
  0xb0   : >> { %v1080_v1 = vmul.f32 %v398_v55, %v398_v55  ;;  %v430_v38 = vmul.f32 %v404_v58, %v404_v58 }
  0xb4   : >> { %v363_v40 = vpop.f32.mrf.mxu2  ;;  %v381_v41 = vpop.f32.mrf.mxu3 }
  0xb5   : >> { %v330_v42 = vpop.f32.mrf.mxu0  ;;  %v348_v43 = vpop.f32.mrf.mxu1  ;;  %v411_v2 = vsub.f32 %v405_v45, %v363_v40  ;;  %v418_v51 = vsub.f32 %v1077_v46, %v381_v41 }
  0xb6   : >> { %v399_v59 = vsub.f32 %v396_v44, %v330_v42  ;;  %v406_v60 = vsub.f32 %v405_v45, %v348_v43 }
  0xb7   : >> { %v436_v54 = vmul.f32 %v411_v2, %v411_v2  ;;  %v450_v40 = vmul.f32 %v418_v51, %v418_v51 }
  0xb8   : >> { %v425_v39 = vmul.f32 %v399_v59, %v399_v59  ;;  %v431_v42 = vmul.f32 %v406_v60, %v406_v60 }
  0xba   : >> { %v439_v6 = vadd.f32 %v431_v42, %v423_v56 }
  0xbc   : >> { %v366_v47 = vpop.f32.mrf.mxu2  ;;  %v384_v48 = vpop.f32.mrf.mxu3 }
  0xbd   : >> { %v333_v49 = vpop.f32.mrf.mxu0  ;;  %v351_v50 = vpop.f32.mrf.mxu1  ;;  %v412_v63 = vsub.f32 %v405_v45, %v366_v47  ;;  %v419_v35 = vsub.f32 %v1077_v46, %v384_v48 }
  0xbe   : >> { %v400_v52 = vsub.f32 %v396_v44, %v333_v49  ;;  %v407_v7 = vsub.f32 %v405_v45, %v351_v50  ;;  %v856_v50 = vmov 0.0  }
  0xbf   : >> { %v437_v43 = vmul.f32 %v412_v63, %v412_v63  ;;  %v451_v4 = vmul.f32 %v419_v35, %v419_v35 }
  0xc0   : >> { %v426_v48 = vmul.f32 %v400_v52, %v400_v52 }
  0xc1   : >> { %v445_v8 = vadd.f32 %v437_v43, %v429_v57 }
  0xc4   : >> { %v369_v0 = vpop.f32.mrf.mxu2  ;;  %v387_v33 = vpop.f32.mrf.mxu3 }
  0xc5   : >> { %v336_v3 = vpop.f32.mrf.mxu0  ;;  %v354_v34 = vpop.f32.mrf.mxu1  ;;  %v413_v41 = vsub.f32 %v405_v45, %v369_v0  ;;  %v420_v59 = vsub.f32 %v1077_v46, %v387_v33 }
  0xc6   : >> { %v401_v36 = vsub.f32 %v396_v44, %v336_v3  ;;  %v408_v37 = vsub.f32 %v405_v45, %v354_v34 }
  0xc7   : >> { %v452_v42 = vmul.f32 %v420_v59, %v420_v59 }
  0xc8   : >> { %v427_v53 = vmul.f32 %v401_v36, %v401_v36  ;;  %v433_v47 = vmul.f32 %v408_v37, %v408_v37  ;;  %v432_v37 = vmul.f32 %v407_v7, %v407_v7 }
  0xca   : >> { %v443_v55 = vadd.f32 %v435_v61, %v427_v53  ;;  %v441_v5 = vadd.f32 %v433_v47, %v425_v39  ;;  %v438_v39 = vmul.f32 %v413_v41, %v413_v41 }
  0xcc   : >> { %v459_v3 = vadd.f32 %v451_v4, %v443_v55  ;;  %v457_v34 = vadd.f32 %v449_v62, %v441_v5  ;;  %v372_v58 = vpop.f32.mrf.mxu2  ;;  %v390_v9 = vpop.f32.mrf.mxu3 }
  0xcd   : >> { %v415_v49 = vsub.f32 %v1077_v46, %v372_v58  ;;  %v421_v60 = vsub.f32 %v1077_v46, %v390_v9  ;;  %v339_v2 = vpop.f32.mrf.mxu0  ;;  %v357_v63 = vpop.f32.mrf.mxu1 }
  0xce   : >> { %vm467_vm1 = vcmp.lt.f32.partialorder %v459_v3, 1.0  ;;  %vm465_vm2 = vcmp.lt.f32.partialorder %v457_v34, 1.0  ;;  %v402_v61 = vsub.f32 %v396_v44, %v339_v2  ;;  %v409_v56 = vsub.f32 %v405_v45, %v357_v63  ;;  %v488_v2 = vld [vmem:[%s893_s19 + $0x8] sm:$0xff] (%p219_p6)  ;;  %v489_v63 = vld [vmem:[%s893_s19 + $0x10] sm:$0xff] (%p219_p6) }
  0xcf   : >> { %v475_v57 = vsel %vm467_vm1, 1.0, %v856_v50  ;;  %v473_v35 = vsel %vm465_vm2, 1.0, %v856_v50  ;;  %v447_v4 = vmul.f32 %v415_v49, %v415_v49  ;;  %v453_v5 = vmul.f32 %v421_v60, %v421_v60 }
  0xd0   : >> { %v1088_v28 = vadd.f32 %v833_v28, %v475_v57   ;;  %v481_v0 = vadd.f32 %v841_v30, %v473_v35   ;;  %v428_v33 = vmul.f32 %v402_v61, %v402_v61  ;;  %v434_v36 = vmul.f32 %v409_v56, %v409_v56 }
  0xd1   : >> { %v455_v9 = vadd.f32 %v447_v4, %v439_v6  ;;  %v461_v51 = vadd.f32 %v453_v5, %v445_v8  ;;  %v440_v8 = vadd.f32 %v432_v37, %v1080_v1 }
  0xd2   : >> { %v1167_v62 = vmov %v1088_v28  ;;  %v444_v43 = vadd.f32 %v436_v54, %v428_v33  ;;  %v442_v44 = vadd.f32 %v434_v36, %v426_v48  ;;  %v446_v28 = vadd.f32 %v438_v39, %v430_v38  ;;  %v487_v38 = vld [vmem:[%s893_s19] sm:$0xff] (%p219_p6) }
  0xd3   : >> { %vm463_vm3 = vcmp.lt.f32.partialorder %v455_v9, 1.0  ;;  %vm469_vm4 = vcmp.lt.f32.partialorder %v461_v51, 1.0  ;;  %v499_v15 = vadd.f32 (%p219_p6), %v491_v11, %v1167_v62 }
  0xd4   : >> { %v471_v45 = vsel %vm463_vm3, 1.0, %v856_v50  ;;  %v477_v52 = vsel %vm469_vm4, 1.0, %v856_v50  ;;  %v460_v53 = vadd.f32 %v452_v42, %v444_v43  ;;  %v458_v47 = vadd.f32 %v450_v40, %v442_v44  ;;  %v375_v55 = vpop.f32.mrf.mxu2  ;;  %v393_v3 = vpop.f32.mrf.mxu3 }
  0xd5   : >> { %v479_v34 = vadd.f32 %v849_v32, %v471_v45   ;;  %v485_v58 = vadd.f32 %v825_v26, %v477_v52   ;;  %v416_v7 = vsub.f32 %v1077_v46, %v375_v55  ;;  %v422_v6 = vsub.f32 %v1077_v46, %v393_v3  ;;  %507 = vst [vmem:[%s893_s19 + $0x20] sm:$0xff] (%p219_p6), %v499_v15 }
  0xd6   : >> { %vm468_vm5 = vcmp.lt.f32.partialorder %v460_v53, 1.0  ;;  %vm466_vm6 = vcmp.lt.f32.partialorder %v458_v47, 1.0 }
  0xd7   : >> { %v476_v30 = vsel %vm468_vm5, 1.0, %v856_v50  ;;  %v474_v54 = vsel %vm466_vm6, 1.0, %v856_v50  ;;  %v448_v48 = vmul.f32 %v416_v7, %v416_v7  ;;  %v454_v41 = vmul.f32 %v422_v6, %v422_v6 }
  0xd8   : >> { %v484_v40 = vadd.f32 %v829_v27, %v476_v30   ;;  %v482_v59 = vadd.f32 %v837_v29, %v474_v54   ;;  %v1173_v30 = vmov %v481_v0  ;;  %v495_v61 = vadd.f32 (%p219_p6), %v487_v38, %v479_v34 }
  0xd9   : >> { %v456_v32 = vadd.f32 %v448_v48, %v440_v8  ;;  %v462_v49 = vadd.f32 %v454_v41, %v446_v28  ;;  %v1171_v28 = vmov %v1167_v62  ;;  %v501_v18 = vadd.f32 (%p219_p6), %v493_v14, %v485_v58 }
  0xda   : >> { %v1170_v27 = vmov %v484_v40  ;;  %v1172_v29 = vmov %v482_v59  ;;  %v498_v13 = vadd.f32 (%p219_p6), %v490_v10, %v482_v59  ;;  %503 = vst [vmem:[%s893_s19] sm:$0xff] (%p219_p6), %v495_v61  ;;  %v500_v17 = vadd.f32 (%p219_p6), %v492_v12, %v484_v40 }
  0xdb   : >> { %vm464_vm7 = vcmp.lt.f32.partialorder %v456_v32, 1.0  ;;  %vm470_vm8 = vcmp.lt.f32.partialorder %v462_v49, 1.0  ;;  %v1175_v32 = vmov %v479_v34  ;;  %221 = sbr.rel (!%p219_p6) target bundleno = 35 (0x23), region = 73  ;;  %509 = vst [vmem:[%s893_s19 + $0x30] sm:$0xff] (%p219_p6), %v501_v18 }
  0xdc   : >> { %v472_v26 = vsel %vm464_vm7, 1.0, %v856_v50  ;;  %v478_v60 = vsel %vm470_vm8, 1.0, %v856_v50  ;;  %v497_v50 = vadd.f32 (%p219_p6), %v489_v63, %v481_v0  ;;  %506 = vst [vmem:[%s893_s19 + $0x18] sm:$0xff] (%p219_p6), %v498_v13 }
  0xdd   : >> { %v480_v46 = vadd.f32 %v845_v31, %v472_v26   ;;  %v486_v1 = vadd.f32 %v821_v25, %v478_v60   ;;  %v1169_v26 = vmov %v485_v58  ;;  %508 = vst [vmem:[%s893_s19 + $0x28] sm:$0xff] (%p219_p6), %v500_v17 }
  0xde   : > { %505 = vst [vmem:[%s893_s19 + $0x10] sm:$0xff] (%p219_p6), %v497_v50 }
  0xdf   : >> { %v1168_v25 = vmov %v486_v1  ;;  %v1174_v31 = vmov %v480_v46  ;;  %v496_v56 = vadd.f32 (%p219_p6), %v488_v2, %v480_v46  ;;  %v502_v19 = vadd.f32 (%p219_p6), %v494_v16, %v486_v1 }
  0xe1   : > { %504 = vst [vmem:[%s893_s19 + $0x8] sm:$0xff] %v496_v56 }
  0xe2   : > { %510 = vst [vmem:[%s893_s19 + $0x38] sm:$0xff] %v502_v19 }
  0xe3 PF: > { %s12_s11 = sadd.s32 1, %s817_s11   ;;  %s1176_s9 = smov %s813_s10 }
  0xe4   : > { %p9_p7 = scmp.ge.s32.totalorder %s12_s11, 4   ;;  %s1177_s10 = smov %s1179_s12 }
  0xe6   :  { %11 = sbr.rel (!%p9_p7) target bundleno = 2 (0x2), region = 84 }

// kernel: a_call__.7
= control target key start
LH: loop header
LB: loop body
LE: loop exit
PB: predicated region body
PF: predicated region fallthrough
CT: control target
= control target key end

     0   :  { %7 = vsyncpa [#allocation3], 0  ;;  %s261_s12 = smov [#allocation2]   ;;  %s372_s0 = inlined_call_operand.vmem [shape: f32[16], index: 0, kind: input, shape index: {}]   ;;  %s373_s1 = inlined_call_operand.vmem [shape: f32[1,8,8,128], index: 1, kind: input, shape index: {}]   ;;  %s374_s2 = inlined_call_operand.vmem [shape: f32[16,128], index: 2, kind: output, shape index: {}]  }
   0x1   :  { %s13_s11 = sshll.u32 %s372_s0, 4  ;;  %s14_s11 = int_to_ptr.vmem [resolvable:$true] %s13_s11 }
   0x2   :  { %16 = dma.vmem_to_smem %s14_s11, 16, %s261_s12, [#allocation3]  }
   0x3   :  { %259 = dma.done.wait [#allocation3], 16  }
   0x4   :  { %260 = vsyncadd [#allocation3], 4294967280 }
   0x5   :  { %23 = sfence }
   0x6   :  { %s30_s13 = sld [smem:[#allocation2]]  ;;  %v283_v0 = vld [vmem:[%s373_s1] sm:$0xff]  ;;  %v288_v1 = vld [vmem:[%s373_s1 + $0x8] sm:$0xff]  ;;  %v293_v2 = vld [vmem:[%s373_s1 + $0x10] sm:$0xff]  ;;  %vm200_vm1 = vcmask 1040384   ;;  %vm202_vm2 = vcmask 1041408  }
   0x7   :  { %s234_s14 = sld [smem:[#allocation2 + $0x1]]  ;;  %v45_v17 = vld [vmem:[%s373_s1 + $0x20] sm:$0xff]  ;;  %v46_v29 = vld [vmem:[%s373_s1 + $0x28] sm:$0xff]  ;;  %v47_v37 = vld [vmem:[%s373_s1 + $0x30] sm:$0xff]  ;;  %vm204_vm3 = vcmask 1042432   ;;  %vm206_vm4 = vcmask 1043456  }
   0x8   :  { %s235_s15 = sld [smem:[#allocation2 + $0x2]]  ;;  %v48_v43 = vld [vmem:[%s373_s1 + $0x38] sm:$0xff]  ;;  %vm208_vm5 = vcmask 1044480   ;;  %vm210_vm6 = vcmask 1045504   ;;  %vm212_vm7 = vcmask 1046528  }
   0x9   :  { %s236_s16 = sld [smem:[#allocation2 + $0x3]] }
   0xa   :  { %s237_s17 = sld [smem:[#allocation2 + $0x4]] }
   0xb   :  { %s238_s20 = sld [smem:[#allocation2 + $0x5]] }
   0xc   :  { %s239_s0 = sld [smem:[#allocation2 + $0x6]]  ;;  %v49_v3 = vstv %s30_s13 }
   0xd   :  { %s295_s25 = sld [smem:[#allocation2 + $0x7]]  ;;  %v50_v4 = vmul.f32 %v49_v3, %v283_v0  ;;  %v51_v5 = vstv %s234_s14 }
   0xe   :  { %s241_s26 = sld [smem:[#allocation2 + $0x8]]  ;;  %v52_v6 = vmul.f32 %v51_v5, %v288_v1  ;;  %v54_v7 = vstv %s235_s15 }
   0xf   :  { %s242_s27 = sld [smem:[#allocation2 + $0x9]]  ;;  %v55_v8 = vmul.f32 %v54_v7, %v293_v2  ;;  %v57_v11 = vstv %s236_s16 }
  0x10   :  { %s243_s28 = sld [smem:[#allocation2 + $0xa]]  ;;  %v53_v9 = vadd.f32 %v52_v6, %v50_v4  ;;  %v59_v10 = vstv %s237_s17 }
  0x11   :  { %s244_s29 = sld [smem:[#allocation2 + $0xb]]  ;;  %v60_v12 = vmul.f32 %v59_v10, %v283_v0  ;;  %v61_v13 = vstv %s238_s20 }
  0x12   :  { %v56_v14 = vadd.f32 %v55_v8, %v53_v9  ;;  %v62_v15 = vmul.f32 %v61_v13, %v288_v1  ;;  %v64_v16 = vstv %s239_s0 }
  0x13   :  { %v65_v18 = vmul.f32 %v64_v16, %v293_v2  ;;  %v67_v22 = vstv %s295_s25 }
  0x14   :  { %v58_v19 = vadd.f32 %v57_v11, %v56_v14  ;;  %v63_v20 = vadd.f32 %v62_v15, %v60_v12  ;;  %v69_v21 = vstv %s241_s26 }
  0x15   :  { %v70_v23 = vmul.f32 %v69_v21, %v283_v0  ;;  %v71_v24 = vstv %s242_s27 }
  0x16   :  { %v66_v25 = vadd.f32 %v65_v18, %v63_v20  ;;  %v72_v26 = vmul.f32 %v71_v24, %v288_v1  ;;  %v74_v27 = vstv %s243_s28  ;;  %v79_v28 = vsub.f32 %v45_v17, %v58_v19 }
  0x17   :  { %v75_v30 = vmul.f32 %v74_v27, %v293_v2  ;;  %v77_v33 = vstv %s244_s29 }
  0x18   :  { %v68_v31 = vadd.f32 %v67_v22, %v66_v25  ;;  %v73_v32 = vadd.f32 %v72_v26, %v70_v23  ;;  %v82_v36 = vmul.f32 %v79_v28, %v79_v28 }
  0x1a   :  { %v76_v34 = vadd.f32 %v75_v30, %v73_v32  ;;  %v80_v35 = vsub.f32 %v46_v29, %v68_v31 }
  0x1c   :  { %v78_v38 = vadd.f32 %v77_v33, %v76_v34  ;;  %v83_v39 = vmul.f32 %v80_v35, %v80_v35 }
  0x1e   :  { %v81_v40 = vsub.f32 %v47_v37, %v78_v38  ;;  %v84_v41 = vadd.f32 %v83_v39, %v82_v36 }
  0x20   :  { %v85_v42 = vmul.f32 %v81_v40, %v81_v40 }
  0x22   :  { %v86_v44 = vadd.f32 %v85_v42, %v84_v41 }
  0x24   :  { %vm87_vm0 = vcmp.lt.f32.partialorder %v86_v44, 1.0 }
  0x25   :  { %v88_v45 = vsel %vm87_vm0, %v48_v43, 0.0 }
  0x26   :  { %v319_v46 = vmul.f32 %v88_v45, %v45_v17  ;;  %v321_v47 = vmul.f32 %v88_v45, %v46_v29  ;;  %v92_v48 = vmul.f32 %v88_v45, %v283_v0  ;;  %v324_v49 = vmul.f32 %v88_v45, %v47_v37 }
  0x27   :  { %v93_v50 = vmul.f32 %v88_v45, %v288_v1  ;;  %v94_v51 = vmul.f32 %v88_v45, %v293_v2  ;;  %v104_v52 = vrot.slane %v88_v45, 4 }
  0x28   :  { %v95_v53 = vmul.f32 %v319_v46, %v283_v0  ;;  %v110_v54 = vrot.slane %v92_v48, 4  ;;  %v128_v55 = vrot.slane %v319_v46, 4  ;;  %v134_v56 = vrot.slane %v321_v47, 4 }
  0x29   :  { %v105_v57 = vadd.f32 %v104_v52, %v88_v45  ;;  %v116_v58 = vrot.slane %v93_v50, 4  ;;  %v122_v59 = vrot.slane %v94_v51, 4  ;;  %v140_v60 = vrot.slane %v324_v49, 4 }
  0x2a   :  { %v111_v61 = vadd.f32 %v110_v54, %v92_v48  ;;  %v129_v62 = vadd.f32 %v128_v55, %v319_v46  ;;  %v135_v63 = vadd.f32 %v134_v56, %v321_v47  ;;  %v146_v3 = vrot.slane %v95_v53, 4 }
  0x2b   :  { %v106_v4 = vrot.slane %v105_v57, 2  ;;  %v117_v5 = vadd.f32 %v116_v58, %v93_v50  ;;  %v123_v6 = vadd.f32 %v122_v59, %v94_v51  ;;  %v141_v7 = vadd.f32 %v140_v60, %v324_v49 }
  0x2c   :  { %v112_v8 = vrot.slane %v111_v61, 2  ;;  %v130_v9 = vrot.slane %v129_v62, 2  ;;  %v136_v10 = vrot.slane %v135_v63, 2  ;;  %v147_v11 = vadd.f32 %v146_v3, %v95_v53 }
  0x2d   :  { %v107_v12 = vadd.f32 %v106_v4, %v105_v57  ;;  %v118_v13 = vrot.slane %v117_v5, 2  ;;  %v124_v14 = vrot.slane %v123_v6, 2  ;;  %v142_v15 = vrot.slane %v141_v7, 2 }
  0x2e   :  { %v113_v16 = vadd.f32 %v112_v8, %v111_v61  ;;  %v131_v17 = vadd.f32 %v130_v9, %v129_v62  ;;  %v137_v18 = vadd.f32 %v136_v10, %v135_v63  ;;  %v148_v19 = vrot.slane %v147_v11, 2 }
  0x2f   :  { %v108_v20 = vrot.slane %v107_v12, 1  ;;  %v119_v21 = vadd.f32 %v118_v13, %v117_v5  ;;  %v125_v22 = vadd.f32 %v124_v14, %v123_v6  ;;  %v143_v23 = vadd.f32 %v142_v15, %v141_v7 }
  0x30   :  { %v114_v24 = vrot.slane %v113_v16, 1  ;;  %v132_v25 = vrot.slane %v131_v17, 1  ;;  %v138_v26 = vrot.slane %v137_v18, 1  ;;  %v149_v27 = vadd.f32 %v148_v19, %v147_v11 }
  0x31   :  { %v109_v28 = vadd.f32 %v108_v20, %v107_v12  ;;  %v120_v29 = vrot.slane %v119_v21, 1  ;;  %v126_v30 = vrot.slane %v125_v22, 1  ;;  %v144_v31 = vrot.slane %v143_v23, 1 }
  0x32   :  { %v115_v32 = vadd.f32 %v114_v24, %v113_v16  ;;  %v133_v33 = vadd.f32 %v132_v25, %v131_v17  ;;  %v139_v34 = vadd.f32 %v138_v26, %v137_v18  ;;  %v150_v35 = vrot.slane %v149_v27, 1 }
  0x33   :  { %v121_v36 = vadd.f32 %v120_v29, %v119_v21  ;;  %v127_v37 = vadd.f32 %v126_v30, %v125_v22  ;;  %v145_v38 = vadd.f32 %v144_v31, %v143_v23  ;;  %v96_v39 = vmul.f32 %v319_v46, %v288_v1 }
  0x34   :  { %v151_v40 = vadd.f32 %v150_v35, %v149_v27  ;;  %v201_v41 = vsel %vm200_vm1, %v109_v28, %v115_v32  ;;  %v97_v42 = vmul.f32 %v319_v46, %v293_v2  ;;  %v98_v43 = vmul.f32 %v321_v47, %v283_v0 }
  0x35   :  { %v203_v44 = vsel %vm202_vm2, %v201_v41, %v121_v36  ;;  %v99_v45 = vmul.f32 %v321_v47, %v288_v1  ;;  %v100_v48 = vmul.f32 %v321_v47, %v293_v2  ;;  %v101_v50 = vmul.f32 %v324_v49, %v283_v0 }
  0x36   :  { %v205_v51 = vsel %vm204_vm3, %v203_v44, %v127_v37  ;;  %v102_v52 = vmul.f32 %v324_v49, %v288_v1  ;;  %v103_v46 = vmul.f32 %v324_v49, %v293_v2  ;;  %v152_v53 = vrot.slane %v96_v39, 4 }
  0x37   :  { %v207_v54 = vsel %vm206_vm4, %v205_v51, %v133_v33  ;;  %v158_v55 = vrot.slane %v97_v42, 4  ;;  %v164_v56 = vrot.slane %v98_v43, 4  ;;  %v170_v57 = vrot.slane %v99_v45, 4 }
  0x38   :  { %v209_v58 = vsel %vm208_vm5, %v207_v54, %v139_v34  ;;  %v153_v47 = vadd.f32 %v152_v53, %v96_v39  ;;  %v176_v59 = vrot.slane %v100_v48, 4  ;;  %v182_v60 = vrot.slane %v101_v50, 4 }
  0x39   :  { %v211_v0 = vsel %vm210_vm6, %v209_v58, %v145_v38  ;;  %v159_v61 = vadd.f32 %v158_v55, %v97_v42  ;;  %v165_v62 = vadd.f32 %v164_v56, %v98_v43  ;;  %v171_v63 = vadd.f32 %v170_v57, %v99_v45 }
  0x3a   :  { %v213_v1 = vsel %vm212_vm7, %v211_v0, %v151_v40  ;;  %v154_v3 = vrot.slane %v153_v47, 2  ;;  %v177_v2 = vadd.f32 %v176_v59, %v100_v48  ;;  %v183_v49 = vadd.f32 %v182_v60, %v101_v50 }
  0x3b   :  { %v160_v4 = vrot.slane %v159_v61, 2  ;;  %v166_v5 = vrot.slane %v165_v62, 2  ;;  %v172_v6 = vrot.slane %v171_v63, 2  ;;  %v188_v10 = vrot.slane %v102_v52, 4  ;;  %227 = vst [vmem:[%s374_s2] sm:$0xff] %v213_v1 }
  0x3c   :  { %v155_v7 = vadd.f32 %v154_v3, %v153_v47  ;;  %v178_v8 = vrot.slane %v177_v2, 2  ;;  %v184_v9 = vrot.slane %v183_v49, 2  ;;  %v194_v14 = vrot.slane %v103_v46, 4 }
  0x3d   :  { %v161_v11 = vadd.f32 %v160_v4, %v159_v61  ;;  %v167_v12 = vadd.f32 %v166_v5, %v165_v62  ;;  %v173_v13 = vadd.f32 %v172_v6, %v171_v63  ;;  %v189_v18 = vadd.f32 %v188_v10, %v102_v52 }
  0x3e   :  { %v156_v15 = vrot.slane %v155_v7, 1  ;;  %v179_v16 = vadd.f32 %v178_v8, %v177_v2  ;;  %v185_v17 = vadd.f32 %v184_v9, %v183_v49  ;;  %v195_v22 = vadd.f32 %v194_v14, %v103_v46 }
  0x3f   :  { %v162_v19 = vrot.slane %v161_v11, 1  ;;  %v168_v20 = vrot.slane %v167_v12, 1  ;;  %v174_v21 = vrot.slane %v173_v13, 1  ;;  %v190_v26 = vrot.slane %v189_v18, 2 }
  0x40   :  { %v157_v23 = vadd.f32 %v156_v15, %v155_v7  ;;  %v180_v24 = vrot.slane %v179_v16, 1  ;;  %v186_v25 = vrot.slane %v185_v17, 1  ;;  %v196_v30 = vrot.slane %v195_v22, 2 }
  0x41   :  { %v163_v27 = vadd.f32 %v162_v19, %v161_v11  ;;  %v169_v28 = vadd.f32 %v168_v20, %v167_v12  ;;  %v175_v29 = vadd.f32 %v174_v21, %v173_v13  ;;  %v191_v32 = vadd.f32 %v190_v26, %v189_v18 }
  0x42   :  { %v181_v31 = vadd.f32 %v180_v24, %v179_v16  ;;  %v187_v33 = vadd.f32 %v186_v25, %v185_v17  ;;  %v197_v34 = vadd.f32 %v196_v30, %v195_v22 }
  0x43   :  { %v214_v35 = vsel %vm200_vm1, %v157_v23, %v163_v27  ;;  %v192_v36 = vrot.slane %v191_v32, 1 }
  0x44   :  { %v215_v37 = vsel %vm202_vm2, %v214_v35, %v169_v28  ;;  %v198_v38 = vrot.slane %v197_v34, 1 }
  0x45   :  { %v216_v39 = vsel %vm204_vm3, %v215_v37, %v175_v29  ;;  %v193_v40 = vadd.f32 %v192_v36, %v191_v32 }
  0x46   :  { %v217_v41 = vsel %vm206_vm4, %v216_v39, %v181_v31  ;;  %v199_v42 = vadd.f32 %v198_v38, %v197_v34 }
  0x47   :  { %v218_v43 = vsel %vm208_vm5, %v217_v41, %v187_v33 }
  0x48   :  { %v219_v44 = vsel %vm210_vm6, %v218_v43, %v193_v40 }
  0x49   :  { %v220_v45 = vsel %vm212_vm7, %v219_v44, %v199_v42 }
  0x4a   :  { %228 = vst [vmem:[%s374_s2 + $0x8] sm:$0xff] %v220_v45 }
  0x4b   :  { %233 = vsyncpa [#allocation3], 1 }

// kernel: custom-call.253
= control target key start
LH: loop header
LB: loop body
LE: loop exit
PB: predicated region body
PF: predicated region fallthrough
CT: control target
= control target key end

     0   :  { %v400_v1 = vmov 0.0   ;;  %s420_s11 = smov 0   ;;  %s505_s0 = inlined_call_operand.vmem [shape: f32[6,3], index: 0, kind: input, shape index: {}]   ;;  %s506_s1 = inlined_call_operand.vmem [shape: f32[6,3], index: 1, kind: output, shape index: {0}]   ;;  %s507_s2 = inlined_call_operand.vmem [shape: f32[3], index: 2, kind: output, shape index: {1}]  }
   0x1   :  { %v32_v0 = vld [vmem:[%s505_s0] sm:$0xff]  ;;  %39 = vst [vmem:[#allocation2] sm:$0x1] %v400_v1 }
   0x2   :  { %38 = vst [vmem:[#allocation1] sm:$0xff] %v32_v0 }
   0x3 LB: > { %v47_v2 = vlaneseq  ;;  %v429_v4 = vstv %s398_s11  ;;  %s79_s0 = scalar_lea.vmem [#allocation1], %s398_s11  ;;  %s172_s12 = smov [#allocation1]  ;;  %s398_s11 = sphi %s420_s11, %s45_s11  }
   0x4   : > { %s207_s13 = scalar_lea.vmem [#allocation4], %s398_s11  ;;  %s223_s14 = smov [#allocation1] }
   0x5   : > { %v426_v3 = vshrl.u32 %v47_v2, 7  ;;  %s224_s15 = smov [#allocation4] }
   0x7   : > { %vm51_vm0 = vcmp.gt.s32.totalorder %v426_v3, %v429_v4  ;;  %vm52_vm1 = vcmp.lt.s32.totalorder %v426_v3, 6  ;;  %v175_v3 = vmov %v426_v3 }
   0x8   : > { %vm53_vm2 = vmand %vm51_vm0, %vm52_vm1  ;;  %vm179_vm13 = vcmp.gt.s32.totalorder %v175_v3, %v429_v4  ;;  %vm180_vm14 = vcmp.lt.s32.totalorder %v175_v3, 6  ;;  %v227_v3 = vmov %v426_v3 }
   0x9   : > { %v46_v5 = vld [vmem:[#allocation1] sm:$0xff] }
   0xa   : > { %v54_v6 = vsel %vm53_vm2, %v46_v5, 0.0  ;;  %v439_v18 = vld [vmem:[%s79_s0] ss:$0 sm:$0xff] }
   0xb   : > { %v55_v7 = vmul.f32 %v54_v6, %v54_v6  ;;  %v81_v21 = vand.u32 2147483647, %v439_v18  ;;  %vm150_vm12 = vcmp.lt.f32.partialorder %v439_v18, 0.0 }
   0xd   : > { %v56_v8 = vrot.slane %v55_v7, 4  ;;  %v82_v25 = vmax.f32 %v81_v21, 0.0 }
   0xf   : > { %v57_v9 = vadd.f32 %v56_v8, %v55_v7 }
  0x11   : > { %v58_v10 = vrot.slane %v57_v9, 2 }
  0x13   : > { %v59_v11 = vadd.f32 %v58_v10, %v57_v9 }
  0x15   : > { %v60_v12 = vrot.slane %v59_v11, 1 }
  0x17   : > { %v434_v13 = vadd.f32 %v60_v12, %v59_v11 }
  0x19   : > { %382 = vrsqrt.f32 %v434_v13  ;;  %vm69_vm3 = vcmp.eq.f32.partialorder %v434_v13, inf  ;;  %v72_v22 = vand.u32 2147483648, %v434_v13  ;;  %vm71_vm4 = vcmp.eq.f32.partialorder %v434_v13, 0.0 }
  0x1f   : > { %v383_v14 = vpop.eup %382 }
  0x20   : > { %v63_v15 = vmul.f32 %v383_v14, %v434_v13 }
  0x22   : > { %v64_v16 = vmul.f32 %v383_v14, %v63_v15 }
  0x24   : > { %v65_v17 = vmul.f32 0.5, %v64_v16  ;;  %v176_v16 = vld [vmem:[%s172_s12] sm:$0xff] }
  0x26   : > { %v66_v19 = vsub.f32 1.5, %v65_v17 }
  0x28   : > { %v67_v20 = vmul.f32 %v383_v14, %v66_v19 }
  0x2a   : > { %v68_v23 = vmul.f32 %v67_v20, %v434_v13  ;;  %v201_v20 = vand.u32 127, %v47_v2 }
  0x2c   : > { %v70_v24 = vsel %vm69_vm3, %v434_v13, %v68_v23 }
  0x2d   : > { %v73_v26 = vsel %vm71_vm4, %v72_v22, %v70_v24 }
  0x2e   : > { %v83_v27 = vand.u32 2147483647, %v73_v26 }
  0x30   : > { %v84_v28 = vmax.f32 %v82_v25, %v83_v27 }
  0x32   : > { %384 = vrcp.f32 %v84_v28  ;;  %v96_v31 = vand.u32 2147483648, %v84_v28  ;;  %vm90_vm5 = vweird.f32 %v84_v28  ;;  %v94_v33 = vand.u32 2147483647, %v84_v28 }
  0x33   : > { %vm135_vm11 = vcmp.eq.f32.partialorder %v84_v28, 0.0 }
  0x34   : > { %v97_v35 = vor.u32 1.1754944e-38, %v96_v31  ;;  %vm95_vm8 = vcmp.eq.f32.partialorder %v94_v33, 8.507059e+37 }
  0x38   : > { %v385_v29 = vpop.eup %384 }
  0x39   : > { %v86_v30 = vmul.f32 %v385_v29, %v84_v28  ;;  %vm91_vm6 = vweird.f32 %v385_v29 }
  0x3a   : > { %vm92_vm7 = vmor %vm90_vm5, %vm91_vm6 }
  0x3b   : > { %v87_v32 = vsub.f32 1.0, %v86_v30  ;;  %vm181_vm5 = vmand %vm179_vm13, %vm180_vm14 }
  0x3c   : > { %v182_v24 = vsel %vm181_vm5, %v176_v16, 0.0 }
  0x3d   : > { %v88_v34 = vmul.f32 %v385_v29, %v87_v32 }
  0x3f   : > { %v89_v36 = vadd.f32 %v385_v29, %v88_v34 }
  0x41   : > { %v93_v37 = vsel %vm92_vm7, %v385_v29, %v89_v36  ;;  %v220_v36 = vld [vmem:[#allocation2] ss:$0 sm:$0xff] }
  0x42   : > { %v98_v38 = vsel %vm95_vm8, %v97_v35, %v93_v37  ;;  %v401_v35 = vmov 1.0   ;;  %v230_v37 = vld [vmem:[%s223_s14] sm:$0xff]  ;;  %s240_s14 = smov %s223_s14 }
  0x43   : > { %v99_v39 = vmul.f32 %v98_v38, %v81_v21  ;;  %v115_v40 = vmul.f32 0.0, %v98_v38  ;;  %v132_v41 = vmul.f32 %v98_v38, %v83_v27  ;;  %s265_s16 = scalar_lea.vmem %s240_s14, %s398_s11  ;;  %s45_s11 = sadd.s32 1, %s398_s11  }
  0x44   : > { %p42_p0 = scmp.ge.s32.totalorder %s45_s11, 3  }
  0x45   : > { %v100_v42 = vmul.f32 %v99_v39, %v99_v39  ;;  %v116_v43 = vmul.f32 %v115_v40, %v115_v40  ;;  %v133_v44 = vmul.f32 %v132_v41, %v132_v41 }
  0x47   : > { %v117_v45 = vadd.f32 %v116_v43, %v100_v42 }
  0x49   : > { %v134_v46 = vadd.f32 %v133_v44, %v117_v45 }
  0x4b   : > { %386 = vrsqrt.f32 %v134_v46  ;;  %vm143_vm9 = vcmp.eq.f32.partialorder %v134_v46, inf  ;;  %v146_v53 = vand.u32 2147483648, %v134_v46  ;;  %vm145_vm10 = vcmp.eq.f32.partialorder %v134_v46, 0.0 }
  0x51   : > { %v387_v47 = vpop.eup %386 }
  0x52   : > { %v137_v48 = vmul.f32 %v387_v47, %v134_v46 }
  0x54   : > { %v138_v49 = vmul.f32 %v387_v47, %v137_v48 }
  0x56   : > { %v139_v50 = vmul.f32 0.5, %v138_v49 }
  0x58   : > { %v140_v51 = vsub.f32 1.5, %v139_v50  ;;  %v251_v50 = vld [vmem:[%s240_s14] sm:$0xff] }
  0x5a   : > { %v141_v52 = vmul.f32 %v387_v47, %v140_v51 }
  0x5c   : > { %v142_v54 = vmul.f32 %v141_v52, %v134_v46 }
  0x5e   : > { %v144_v55 = vsel %vm143_vm9, %v134_v46, %v142_v54  ;;  %vm471_vm9 = vcmp.eq.s32.totalorder %v201_v20, %v429_v4 }
  0x5f   : > { %v147_v56 = vsel %vm145_vm10, %v146_v53, %v144_v55  ;;  %vm232_vm10 = vcmp.lt.s32.totalorder %v227_v3, 6  ;;  %v244_v3 = vmov %v426_v3 }
  0x60   : > { %v148_v57 = vmul.f32 %v147_v56, %v84_v28 }
  0x62   : > { %v149_v58 = vsel %vm135_vm11, 0.0, %v148_v57  ;;  %vm253_vm11 = vcmp.gt.s32.totalorder %v201_v20, %v429_v4 }
  0x63   : > { %v151_v59 = vxor.u32 2147483648, %v149_v58 }
  0x65   : > { %v152_v60 = vsel %vm150_vm12, %v149_v58, %v151_v59 }
  0x66   : > { %v453_v61 = vsel %vm71_vm4, %v439_v18, %v152_v60  ;;  %388 = vrcp.f32 %v152_v60  ;;  %vm159_vm15 = vweird.f32 %v152_v60  ;;  %v163_v9 = vand.u32 2147483647, %v152_v60 }
  0x67   : > { %v171_v62 = vsub.f32 %v439_v18, %v453_v61  ;;  %v165_v10 = vand.u32 2147483648, %v152_v60  ;;  %v153_v26 = vsub.f32 %v152_v60, %v439_v18 }
  0x68   : > { %vm164_vm8 = vcmp.eq.f32.partialorder %v163_v9, 8.507059e+37 }
  0x69   : > { %390 = vrcp.f32 %v171_v62  ;;  %v194_v7 = vand.u32 2147483648, %v171_v62  ;;  %vm188_vm1 = vweird.f32 %v171_v62  ;;  %v192_v12 = vand.u32 2147483647, %v171_v62 }
  0x6a   : > { %v166_v21 = vor.u32 1.1754944e-38, %v165_v10 }
  0x6b   : > { %v195_v19 = vor.u32 1.1754944e-38, %v194_v7  ;;  %vm193_vm7 = vcmp.eq.f32.partialorder %v192_v12, 8.507059e+37 }
  0x6c   : > { %v389_v63 = vpop.eup %388 }
  0x6d   : > { %v155_v0 = vmul.f32 %v389_v63, %v152_v60  ;;  %vm160_vm0 = vweird.f32 %v389_v63 }
  0x6e   : > { %vm459_vm3 = vmor %vm159_vm15, %vm160_vm0 }
  0x6f   : > { %v391_v1 = vpop.eup %390  ;;  %v156_v5 = vsub.f32 1.0, %v155_v0 }
  0x70   : > { %v184_v6 = vmul.f32 %v391_v1, %v171_v62  ;;  %vm189_vm2 = vweird.f32 %v391_v1 }
  0x71   : > { %v157_v8 = vmul.f32 %v389_v63, %v156_v5  ;;  %vm190_vm6 = vmor %vm188_vm1, %vm189_vm2 }
  0x72   : > { %v185_v11 = vsub.f32 1.0, %v184_v6 }
  0x73   : > { %v158_v14 = vadd.f32 %v389_v63, %v157_v8 }
  0x74   : > { %v186_v17 = vmul.f32 %v391_v1, %v185_v11 }
  0x75   : > { %v162_v23 = vsel %vm459_vm3, %v389_v63, %v158_v14 }
  0x76   : > { %v187_v22 = vadd.f32 %v391_v1, %v186_v17  ;;  %v167_v28 = vsel %vm164_vm8, %v166_v21, %v162_v23 }
  0x77   : > { %v168_v31 = vmul.f32 %v167_v28, %v153_v26 }
  0x78   : > { %v191_v25 = vsel %vm190_vm6, %v391_v1, %v187_v22 }
  0x79   : > { %v196_v27 = vsel %vm193_vm7, %v195_v19, %v191_v25  ;;  %v170_v33 = vsel %vm71_vm4, 0.0, %v168_v31 }
  0x7a   : > { %v197_v29 = vmul.f32 %v196_v27, %v182_v24  ;;  %v213_v18 = vsel %vm471_vm9, %v170_v33, 0.0 }
  0x7c   : > { %v198_v2 = vsel %vm71_vm4, 0.0, %v197_v29  ;;  %vm261_vm4 = vcmp.ge.s32.totalorder %v244_v3, %v429_v4 }
  0x7d   : > { %v203_v32 = vsel %vm471_vm9, %v198_v2, 0.0  ;;  %vm262_vm12 = vmand %vm471_vm9, %vm261_vm4 }
  0x7e   : > { %204 = vadd.xlane.f32.xlu0 %v203_v32 }
  0x86   : > { %214 = vadd.xlane.f32.xlu0 %v213_v18 }
  0xf1   : > { %v205_v34 = vpop.xlane.xlu0 %204 }
  0xf2   : > { %206 = vst [vmem:[#allocation4] sm:$0xff] %v205_v34 }
  0xf3   : > { %208 = vst [vmem:[%s207_s13] sm:$0x1] %v401_v35 }
  0xf9   : > { %v215_v38 = vpop.xlane.xlu0 %214 }
  0xfa   : > { %v229_v39 = vld [vmem:[%s224_s15] sm:$0xff]  ;;  %v221_v13 = vsel %vm471_vm9, %v215_v38, %v220_v36  ;;  %s241_s15 = smov %s224_s15 }
  0xfb   : > { %v231_v40 = vmul.f32 %v230_v37, %v229_v39  ;;  %222 = vst [vmem:[#allocation2] sm:$0x1] %v221_v13  ;;  %v249_v49 = vld [vmem:[%s241_s15] sm:$0xff] }
  0xfd   : > { %v233_v41 = vsel %vm232_vm10, %v231_v40, 0.0 }
  0xfe   : > { %v234_v42 = vrot.slane %v233_v41, 4 }
 0x100   : > { %v235_v43 = vadd.f32 %v234_v42, %v233_v41 }
 0x102   : > { %v236_v44 = vrot.slane %v235_v43, 2  ;;  %v275_v3 = vld [vmem:[#allocation2] sm:$0x1] (%p42_p0) }
 0x103   :  { %278 = vst [vmem:[#allocation3] sm:$0x1] (%p42_p0), %v275_v3 }
 0x104   : > { %v237_v45 = vadd.f32 %v236_v44, %v235_v43 }
 0x106   : > { %v238_v46 = vrot.slane %v237_v45, 1 }
 0x108   : > { %v239_v47 = vadd.f32 %v238_v46, %v237_v45 }
 0x10a   : > { %v245_v48 = vmul.f32 %v239_v47, %v215_v38  ;;  %v330_v57 = vld [vmem:[#allocation3] sm:$0x1] (%p42_p0) }
 0x10b   :  { %331 = vst [vmem:[%s507_s2] sm:$0x1] (%p42_p0), %v330_v57 }
 0x10c   : > { %v250_v51 = vmul.f32 %v249_v49, %v245_v48 }
 0x10e   : > { %v254_v52 = vsub.f32 %v251_v50, %v250_v51 }
 0x110   : > { %v255_v53 = vsel %vm253_vm11, %v254_v52, %v251_v50 }
 0x111   : > { %v263_v54 = vsel %vm262_vm12, %v249_v49, %v255_v53 }
 0x112   : > { %264 = vst [vmem:[%s240_s14] sm:$0xff] %v263_v54 }
 0x117   :  { %44 = sbr.rel (!%p42_p0) target bundleno = 3 (0x3), region = 139 }
 0x119   : > { %v266_v55 = vld [vmem:[%s265_s16] ss:$0 sm:$0xff] }
 0x11a   : > { %v271_v56 = vsel %vm471_vm9, %v453_v61, %v266_v55 }
 0x11b   : > { %272 = vst [vmem:[%s265_s16] sm:$0x1] %v271_v56 }
 0x122   :  { %v307_v4 = vld [vmem:[#allocation1] sm:$0xff] }
 0x123   :  { %308 = vst [vmem:[%s506_s1] sm:$0xff] %v307_v4 }

// kernel: custom-call.254
= control target key start
LH: loop header
LB: loop body
LE: loop exit
PB: predicated region body
PF: predicated region fallthrough
CT: control target
= control target key end

     0   :  { %v62_v1 = vlaneseq  ;;  %vm76_vm1 = vcmask 23552   ;;  %s224_s0 = inlined_call_operand.vmem [shape: f32[3,3], index: 0, kind: input, shape index: {}]   ;;  %s225_s1 = inlined_call_operand.vmem [shape: f32[3,3], index: 1, kind: output, shape index: {}]  }
   0x1   :  { %v56_v0 = vld [vmem:[%s224_s0] sm:$0xf] }
   0x2   :  { %57 = vst [vmem:[#allocation1] sm:$0xf] %v56_v0  ;;  %v63_v3 = vand.u32 127, %v62_v1  ;;  %v65_v4 = vshrl.u32 %v62_v1, 7 }
   0x4   :  { %vm71_vm0 = vcmp.eq.s32.totalorder %v63_v3, 0  ;;  %vm67_vm2 = vcmp.eq.s32.totalorder %v63_v3, %v65_v4  ;;  %vm80_vm3 = vcmp.eq.s32.totalorder %v63_v3, 1  ;;  %vm91_vm4 = vcmp.eq.s32.totalorder %v63_v3, 2 }
   0x9   :  { %v60_v2 = vld [vmem:[#allocation1] sm:$0xf] }
   0xa   :  { %61 = vst [vmem:[#allocation0] sm:$0xf] %v60_v2 }
  0x11   :  { %v68_v5 = vld [vmem:[#allocation0] sm:$0xff] }
  0x12   :  { %v75_v6 = vld [vmem:[#allocation0 + $0x1] ss:$0 sm:$0xff]  ;;  %v72_v7 = vsel %vm71_vm0, %v68_v5, 1.0  ;;  %v86_v11 = vld [vmem:[#allocation0 + $0x2] ss:$0 sm:$0xff] }
  0x13   :  { %v77_v8 = vsel %vm76_vm1, %v75_v6, 0.0  ;;  %v73_v9 = vsel %vm67_vm2, %v72_v7, 0.0  ;;  %v88_v12 = vsel %vm76_vm1, %v86_v11, 0.0 }
  0x14   :  { %v81_v10 = vmul.f32 %v77_v8, %v73_v9 }
  0x16   :  { %82 = vadd.xlane.f32.xlu0 %v81_v10 }
  0x89   :  { %v83_v13 = vpop.xlane.xlu0 %82 }
  0x8a   :  { %v84_v14 = vsel %vm80_vm3, %v83_v13, %v73_v9 }
  0x8b   :  { %v92_v15 = vmul.f32 %v88_v12, %v84_v14 }
  0x8d   :  { %93 = vadd.xlane.f32.xlu0 %v92_v15 }
 0x100   :  { %v94_v16 = vpop.xlane.xlu0 %93 }
 0x101   :  { %v95_v17 = vsel %vm91_vm4, %v94_v16, %v84_v14 }
 0x102   :  { %96 = vst [vmem:[#allocation2] sm:$0xff] %v95_v17 }
 0x109   :  { %v99_v18 = vld [vmem:[#allocation2] sm:$0xf] }
 0x10a   :  { %102 = vst [vmem:[#allocation3] sm:$0xf] %v99_v18 }
 0x111   :  { %v157_v19 = vld [vmem:[#allocation3] sm:$0xf] }
 0x112   :  { %158 = vst [vmem:[%s225_s1] sm:$0xf] %v157_v19 }

// kernel: custom-call.255
= control target key start
LH: loop header
LB: loop body
LE: loop exit
PB: predicated region body
PF: predicated region fallthrough
CT: control target
= control target key end

     0   :  { %v183_v0 = vmov 0.0   ;;  %vm40_vm3 = vcmask 7168   ;;  %vm67_vm5 = vcmask 15368   ;;  %vm93_vm6 = vcmask 1047553   ;;  %s205_s0 = inlined_call_operand.vmem [shape: f32[3,3], index: 0, kind: input, shape index: {}]   ;;  %s206_s1 = inlined_call_operand.vmem [shape: f32[3,3], index: 1, kind: output, shape index: {}]  }
   0x1   :  { %39 = vst [vmem:[#allocation2] sm:$0xff] %v183_v0  ;;  %v18_v4 = vld [vmem:[%s205_s0] sm:$0xf]  ;;  %vm94_vm9 = vmand %vm67_vm5, %vm93_vm6  ;;  %vm98_vm11 = vcmask 23568   ;;  %vm124_vm12 = vcmask 1047554  }
   0x2   :  { %19 = vst [vmem:[#allocation1] sm:$0xf] %v18_v4  ;;  %vm125_vm15 = vmand %vm98_vm11, %vm124_vm12 }
   0x8   :  { %v41_v1 = vld [vmem:[#allocation2] ss:$0 sm:$0xff] }
   0x9   :  { %v43_v2 = vmul.f32 %v41_v1, %v41_v1  ;;  %v59_v3 = vmul.f32 0.0, %v41_v1  ;;  %v37_v5 = vld [vmem:[#allocation1] sm:$0xf] }
   0xa   :  { %38 = vst [vmem:[#allocation0] sm:$0xf] %v37_v5 }
   0xb   :  { %44 = vadd.xlane.f32.xlu0 %v43_v2 }
  0x11   :  { %v42_v6 = vld [vmem:[#allocation0] ss:$0 sm:$0xff]  ;;  %v71_v24 = vld [vmem:[#allocation0 + $0x1] ss:$0 sm:$0xff]  ;;  %v102_v42 = vld [vmem:[#allocation0 + $0x2] ss:$0 sm:$0xff] }
  0x12   :  { %v197_v14 = vld [vmem:[#allocation0] sm:$0xff] }
  0x13   :  { %60 = vadd.xlane.f32.xlu0 %v59_v3 }
  0x7e   :  { %v45_v7 = vpop.xlane.xlu0 %44 }
  0x7f   :  { %v46_v8 = vsub.f32 %v42_v6, %v45_v7 }
  0x81   :  { %177 = vrsqrt.f32 %v46_v8  ;;  %vm53_vm1 = vweird.f32 %v46_v8 }
  0x86   :  { %v61_v13 = vpop.xlane.xlu0 %60 }
  0x87   :  { %v178_v9 = vpop.eup %177  ;;  %v62_v16 = vsub.f32 %v197_v14, %v61_v13 }
  0x88   :  { %v48_v10 = vmul.f32 %v178_v9, %v46_v8  ;;  %vm54_vm0 = vweird.f32 %v178_v9 }
  0x89   :  { %vm55_vm2 = vmor %vm53_vm1, %vm54_vm0 }
  0x8a   :  { %v49_v11 = vmul.f32 %v178_v9, %v48_v10 }
  0x8c   :  { %v50_v12 = vmul.f32 0.5, %v49_v11 }
  0x8e   :  { %v51_v15 = vsub.f32 1.5, %v50_v12 }
  0x90   :  { %v52_v17 = vmul.f32 %v178_v9, %v51_v15 }
  0x92   :  { %v56_v18 = vsel %vm55_vm2, %v178_v9, %v52_v17 }
  0x93   :  { %v63_v19 = vmul.f32 %v62_v16, %v56_v18 }
  0x95   :  { %v64_v20 = vsel %vm40_vm3, %v63_v19, 0.0 }
  0x96   :  { %66 = vst [vmem:[#allocation2] sm:$0xff] %v64_v20 }
  0x9d   :  { %v69_v21 = vld [vmem:[#allocation2 + $0x1] ss:$0 sm:$0xff] }
  0x9e   :  { %v72_v22 = vmul.f32 %v69_v21, %v69_v21  ;;  %v88_v23 = vmul.f32 %v69_v21, %v64_v20 }
  0xa0   :  { %73 = vadd.xlane.f32.xlu1 %v72_v22 }
  0xa8   :  { %89 = vadd.xlane.f32.xlu1 %v88_v23 }
 0x113   :  { %v74_v25 = vpop.xlane.xlu1 %73 }
 0x114   :  { %v75_v26 = vsub.f32 %v71_v24, %v74_v25 }
 0x116   :  { %179 = vrsqrt.f32 %v75_v26  ;;  %vm82_vm7 = vweird.f32 %v75_v26 }
 0x11b   :  { %v90_v32 = vpop.xlane.xlu1 %89 }
 0x11c   :  { %v180_v27 = vpop.eup %179  ;;  %v91_v34 = vsub.f32 %v197_v14, %v90_v32 }
 0x11d   :  { %v77_v28 = vmul.f32 %v180_v27, %v75_v26  ;;  %vm83_vm4 = vweird.f32 %v180_v27 }
 0x11e   :  { %vm84_vm8 = vmor %vm82_vm7, %vm83_vm4 }
 0x11f   :  { %v78_v29 = vmul.f32 %v180_v27, %v77_v28 }
 0x121   :  { %v79_v30 = vmul.f32 0.5, %v78_v29 }
 0x123   :  { %v80_v31 = vsub.f32 1.5, %v79_v30 }
 0x125   :  { %v81_v33 = vmul.f32 %v180_v27, %v80_v31 }
 0x127   :  { %v85_v35 = vsel %vm84_vm8, %v180_v27, %v81_v33 }
 0x128   :  { %v92_v36 = vmul.f32 %v91_v34, %v85_v35 }
 0x12a   :  { %v95_v37 = vsel %vm94_vm9, %v92_v36, 0.0 }
 0x12b   :  { %v96_v38 = vadd.f32 %v95_v37, %v64_v20 }
 0x12d   :  { %97 = vst [vmem:[#allocation2] sm:$0xff] %v96_v38 }
 0x134   :  { %v100_v39 = vld [vmem:[#allocation2 + $0x2] ss:$0 sm:$0xff] }
 0x135   :  { %v103_v40 = vmul.f32 %v100_v39, %v100_v39  ;;  %v119_v41 = vmul.f32 %v100_v39, %v96_v38 }
 0x137   :  { %104 = vadd.xlane.f32.xlu2 %v103_v40 }
 0x13f   :  { %120 = vadd.xlane.f32.xlu2 %v119_v41 }
 0x1aa   :  { %v105_v43 = vpop.xlane.xlu2 %104 }
 0x1ab   :  { %v106_v44 = vsub.f32 %v102_v42, %v105_v43 }
 0x1ad   :  { %181 = vrsqrt.f32 %v106_v44  ;;  %vm113_vm13 = vweird.f32 %v106_v44 }
 0x1b2   :  { %v121_v50 = vpop.xlane.xlu2 %120 }
 0x1b3   :  { %v182_v45 = vpop.eup %181  ;;  %v122_v52 = vsub.f32 %v197_v14, %v121_v50 }
 0x1b4   :  { %v108_v46 = vmul.f32 %v182_v45, %v106_v44  ;;  %vm114_vm10 = vweird.f32 %v182_v45 }
 0x1b5   :  { %vm115_vm14 = vmor %vm113_vm13, %vm114_vm10 }
 0x1b6   :  { %v109_v47 = vmul.f32 %v182_v45, %v108_v46 }
 0x1b8   :  { %v110_v48 = vmul.f32 0.5, %v109_v47 }
 0x1ba   :  { %v111_v49 = vsub.f32 1.5, %v110_v48 }
 0x1bc   :  { %v112_v51 = vmul.f32 %v182_v45, %v111_v49 }
 0x1be   :  { %v116_v53 = vsel %vm115_vm14, %v182_v45, %v112_v51 }
 0x1bf   :  { %v123_v54 = vmul.f32 %v122_v52, %v116_v53 }
 0x1c1   :  { %v126_v55 = vsel %vm125_vm15, %v123_v54, 0.0 }
 0x1c2   :  { %v127_v56 = vadd.f32 %v126_v55, %v96_v38 }
 0x1c4   :  { %128 = vst [vmem:[#allocation2] sm:$0xff] %v127_v56 }
 0x1cb   :  { %v131_v57 = vld [vmem:[#allocation2] sm:$0xf] }
 0x1cc   :  { %134 = vst [vmem:[#allocation3] sm:$0xf] %v131_v57 }
 0x1d3   :  { %v151_v58 = vld [vmem:[#allocation3] sm:$0xf] }
 0x1d4   :  { %152 = vst [vmem:[%s206_s1] sm:$0xf] %v151_v58 }

// kernel: custom-call.256
= control target key start
LH: loop header
LB: loop body
LE: loop exit
PB: predicated region body
PF: predicated region fallthrough
CT: control target
= control target key end

     0   :  { %v39_v1 = vlaneseq  ;;  %v168_v20 = vmov -1.0   ;;  %s187_s0 = inlined_call_operand.vmem [shape: f32[1,3,3], index: 0, kind: input, shape index: {}]   ;;  %s188_s1 = inlined_call_operand.vmem [shape: f32[1,3,3], index: 1, kind: output, shape index: {}]  }
   0x1   :  { %v18_v0 = vld [vmem:[%s187_s0] sm:$0xf] }
   0x2   :  { %19 = vst [vmem:[#allocation1] sm:$0xf] %v18_v0  ;;  %v40_v3 = vand.u32 127, %v39_v1  ;;  %v43_v4 = vshrl.u32 %v39_v1, 7 }
   0x4   :  { %vm45_vm0 = vcmp.eq.s32.totalorder %v43_v4, %v40_v3  ;;  %vm41_vm1 = vcmp.lt.s32.totalorder %v40_v3, 3  ;;  %vm50_vm2 = vcmp.ge.s32.totalorder %v43_v4, %v40_v3  ;;  %vm77_vm8 = vcmp.eq.s32.totalorder %v40_v3, 0 }
   0x5   :  { %vm51_vm3 = vmand %vm50_vm2, %vm41_vm1  ;;  %vm74_vm9 = vcmp.eq.s32.totalorder %v40_v3, %v43_v4  ;;  %v78_v21 = vsel %vm77_vm8, 1.0, %v168_v20  ;;  %vm85_vm10 = vcmp.eq.s32.totalorder %v40_v3, 1  ;;  %vm95_vm11 = vcmp.eq.s32.totalorder %v40_v3, 2 }
   0x6   :  { %v79_v22 = vsel %vm74_vm9, %v78_v21, 0.0 }
   0x9   :  { %v37_v2 = vld [vmem:[#allocation1] sm:$0xf] }
   0xa   :  { %38 = vst [vmem:[#allocation0] sm:$0xf] %v37_v2 }
  0x11   :  { %v46_v5 = vld [vmem:[#allocation0] sm:$0xff] }
  0x12   :  { %v47_v6 = vsel %vm45_vm0, %v46_v5, 0.0  ;;  %v52_v15 = vsel %vm51_vm3, %v46_v5, 0.0 }
  0x13   :  { %48 = vadd.xlane.f32.xlu0 %v47_v6 }
  0x86   :  { %v49_v7 = vpop.xlane.xlu0 %48 }
  0x87   :  { %166 = vrcp.f32 %v49_v7  ;;  %v64_v11 = vand.u32 2147483648, %v49_v7  ;;  %v62_v13 = vand.u32 2147483647, %v49_v7  ;;  %vm58_vm5 = vweird.f32 %v49_v7 }
  0x89   :  { %v65_v16 = vor.u32 1.1754944e-38, %v64_v11  ;;  %vm63_vm7 = vcmp.eq.f32.partialorder %v62_v13, 8.507059e+37 }
  0x8d   :  { %v167_v8 = vpop.eup %166 }
  0x8e   :  { %v54_v9 = vmul.f32 %v167_v8, %v49_v7  ;;  %vm59_vm4 = vweird.f32 %v167_v8 }
  0x8f   :  { %vm60_vm6 = vmor %vm58_vm5, %vm59_vm4 }
  0x90   :  { %v55_v10 = vsub.f32 1.0, %v54_v9 }
  0x92   :  { %v56_v12 = vmul.f32 %v167_v8, %v55_v10 }
  0x94   :  { %v57_v14 = vadd.f32 %v167_v8, %v56_v12 }
  0x96   :  { %v61_v17 = vsel %vm60_vm6, %v167_v8, %v57_v14 }
  0x97   :  { %v66_v18 = vsel %vm63_vm7, %v65_v16, %v61_v17 }
  0x98   :  { %v67_v19 = vmul.f32 %v66_v18, %v52_v15 }
  0x9a   :  { %68 = vst [vmem:[#allocation4] sm:$0xff] %v67_v19 }
  0xa1   :  { %v81_v23 = vld [vmem:[#allocation4 + $0x1] ss:$0 sm:$0xff]  ;;  %v91_v26 = vld [vmem:[#allocation4 + $0x2] ss:$0 sm:$0xff] }
  0xa2   :  { %v82_v24 = vxor.u32 2147483648, %v81_v23  ;;  %v92_v28 = vxor.u32 2147483648, %v91_v26 }
  0xa4   :  { %v86_v25 = vmul.f32 %v82_v24, %v79_v22 }
  0xa6   :  { %87 = vadd.xlane.f32.xlu0 %v86_v25 }
 0x119   :  { %v88_v27 = vpop.xlane.xlu0 %87 }
 0x11a   :  { %v89_v29 = vsel %vm85_vm10, %v88_v27, %v79_v22 }
 0x11b   :  { %v96_v30 = vmul.f32 %v92_v28, %v89_v29 }
 0x11d   :  { %97 = vadd.xlane.f32.xlu1 %v96_v30 }
 0x190   :  { %v98_v31 = vpop.xlane.xlu1 %97 }
 0x191   :  { %v99_v32 = vsel %vm95_vm11, %v98_v31, %v89_v29 }
 0x192   :  { %v114_v33 = vmul.f32 %v99_v32, %v66_v18 }
 0x194   :  { %v116_v34 = vsel %vm58_vm5, %v99_v32, %v114_v33 }
 0x195   :  { %117 = vst [vmem:[#allocation2] sm:$0xff] %v116_v34 }
 0x19c   :  { %v120_v35 = vld [vmem:[#allocation2] sm:$0xf] }
 0x19d   :  { %123 = vst [vmem:[#allocation3] sm:$0xf] %v120_v35 }
 0x1a4   :  { %v140_v36 = vld [vmem:[#allocation3] sm:$0xf] }
 0x1a5   :  { %141 = vst [vmem:[%s188_s1] sm:$0xf] %v140_v36 }

// kernel: custom-call.189
= control target key start
LH: loop header
LB: loop body
LE: loop exit
PB: predicated region body
PF: predicated region fallthrough
CT: control target
= control target key end

     0   :  { %v268_v3 = vlaneseq  ;;  %v1713_v7 = vmov 0.0   ;;  %s257_s17 = smov [#allocation22]  ;;  %s260_s18 = smov [#allocation23]  ;;  %s2002_s0 = inlined_call_operand.vmem [shape: f32[2,2], index: 0, kind: input, shape index: {}]   ;;  %s2003_s1 = inlined_call_operand.vmem [shape: f32[2,2], index: 1, kind: input, shape index: {}]   ;;  %s2004_s2 = inlined_call_operand.vmem [shape: f32[2,2], index: 2, kind: input, shape index: {}]   ;;  %s2005_s3 = inlined_call_operand.vmem [shape: f32[2,2], index: 3, kind: input, shape index: {}]   ;;  %s2006_s4 = inlined_call_operand.vmem [shape: f32[2], index: 4, kind: output, shape index: {0}]   ;;  %s2007_s5 = inlined_call_operand.vmem [shape: f32[2], index: 5, kind: output, shape index: {1}]   ;;  %s2008_s6 = inlined_call_operand.vmem [shape: f32[2,2], index: 6, kind: output, shape index: {2}]   ;;  %s2009_s7 = inlined_call_operand.vmem [shape: f32[2,2], index: 7, kind: output, shape index: {3}]   ;;  %s2010_s8 = inlined_call_operand.vmem [shape: f32[2,2], index: 8, kind: output, shape index: {4}]   ;;  %s2011_s9 = inlined_call_operand.vmem [shape: f32[2,2], index: 9, kind: output, shape index: {5}]  }
   0x1   :  { %v65_v0 = vld [vmem:[%s2002_s0] sm:$0x3]  ;;  %263 = vst [vmem:[#allocation12] sm:$0xff] %v1713_v7  ;;  %s267_s0 = smov [#allocation12]  ;;  %s1411_s19 = smov [#allocation20] }
   0x2   :  { %v121_v1 = vld [vmem:[%s2003_s1] sm:$0x3]  ;;  %66 = vst [vmem:[#allocation1] sm:$0x3] %v65_v0  ;;  %v1778_v5 = vand.u32 127, %v268_v3  ;;  %v1780_v6 = vshrl.u32 %v268_v3, 7 }
   0x3   :  { %v177_v2 = vld [vmem:[%s2004_s2] sm:$0x3]  ;;  %122 = vst [vmem:[#allocation3] sm:$0x3] %v121_v1  ;;  %s280_s1 = smov [#allocation18]  ;;  %s251_s2 = smov [#allocation20] }
   0x4   :  { %v233_v4 = vld [vmem:[%s2005_s3] sm:$0x3]  ;;  %178 = vst [vmem:[#allocation5] sm:$0x3] %v177_v2  ;;  %v270_v5 = vmov %v1778_v5  ;;  %v273_v6 = vmov %v1780_v6  ;;  %s254_s3 = smov [#allocation21]  ;;  %vm1415_vm2 = vcmp.lt.s32.totalorder %v1778_v5, 2 }
   0x5   :  { %234 = vst [vmem:[#allocation7] sm:$0x3] %v233_v4  ;;  %vm277_vm0 = vcmp.eq.s32.totalorder %v273_v6, %v270_v5  ;;  %v283_v5 = vmov %v1778_v5  ;;  %v286_v6 = vmov %v1780_v6  ;;  %s1428_s20 = smov [#allocation21]  ;;  %s1445_s21 = smov [#allocation22] }
   0x6   :  { %264 = vst [vmem:[#allocation14] sm:$0xff] %v1713_v7  ;;  %vm290_vm1 = vcmp.eq.s32.totalorder %v286_v6, %v283_v5  ;;  %v1407_v5 = vmov %v1778_v5  ;;  %v1410_v6 = vmov %v1780_v6  ;;  %s1462_s22 = smov [#allocation23] }
   0x7   :  { %265 = vst [vmem:[#allocation16] sm:$0xff] %v1713_v7  ;;  %v1424_v5 = vmov %v1778_v5  ;;  %v1427_v6 = vmov %v1780_v6  ;;  %vm1420_vm3 = vcmp.eq.s32.totalorder %v1410_v6, %v1407_v5 }
   0x8   :  { %266 = vst [vmem:[#allocation18] sm:$0xff] %v1713_v7  ;;  %v274_v12 = vld [vmem:[%s267_s0] sm:$0x3]  ;;  %v1441_v5 = vmov %v1778_v5  ;;  %v1444_v6 = vmov %v1780_v6 }
   0x9   :  { %v237_v8 = vld [vmem:[#allocation1] sm:$0x3]  ;;  %v278_v13 = vsel %vm277_vm0, 1.0, %v274_v12  ;;  %v1458_v5 = vmov %v1778_v5  ;;  %v1461_v6 = vmov %v1780_v6 }
   0xa   :  { %238 = vst [vmem:[#allocation0] sm:$0x3] %v237_v8  ;;  %v241_v9 = vld [vmem:[#allocation3] sm:$0x3]  ;;  %vm1471_vm4 = vcmp.eq.s32.totalorder %v1461_v6, %v1458_v5 }
   0xb   :  { %242 = vst [vmem:[#allocation2] sm:$0x3] %v241_v9  ;;  %v245_v10 = vld [vmem:[#allocation5] sm:$0x3] }
   0xc   :  { %246 = vst [vmem:[#allocation4] sm:$0x3] %v245_v10  ;;  %v249_v11 = vld [vmem:[#allocation7] sm:$0x3] }
   0xd   :  { %250 = vst [vmem:[#allocation6] sm:$0x3] %v249_v11 }
   0xe   :  { %279 = vst [vmem:[%s267_s0] sm:$0x3] %v278_v13 }
   0xf   :  { %v287_v14 = vld [vmem:[%s280_s1] sm:$0x3] }
  0x10   :  { %v291_v18 = vsel %vm290_vm1, 1.0, %v287_v14 }
  0x11   :  { %v252_v15 = vld [vmem:[#allocation0] sm:$0xff]  ;;  %292 = vst [vmem:[%s280_s1] sm:$0x3] %v291_v18 }
  0x12   :  { %253 = vst [vmem:[%s251_s2] sm:$0xff] %v252_v15  ;;  %v255_v16 = vld [vmem:[#allocation2] sm:$0xff] }
  0x13   :  { %256 = vst [vmem:[%s254_s3] sm:$0xff] %v255_v16  ;;  %v258_v17 = vld [vmem:[#allocation4] sm:$0xff] }
  0x14   :  { %259 = vst [vmem:[%s257_s17] sm:$0xff] %v258_v17  ;;  %v261_v19 = vld [vmem:[#allocation6] sm:$0xff] }
  0x15   :  { %262 = vst [vmem:[%s260_s18] sm:$0xff] %v261_v19 }
  0x19   :  { %v1417_v20 = vld [vmem:[%s1411_s19] sm:$0x3] }
  0x1a   :  { %v1434_v21 = vld [vmem:[%s1428_s20] sm:$0x3]  ;;  %v1418_v22 = vsel %vm1415_vm2, %v1417_v20, 0.0 }
  0x1b   :  { %v1435_v23 = vsel %vm1415_vm2, %v1434_v21, 0.0  ;;  %v1451_v24 = vld [vmem:[%s1445_s21] sm:$0x3]  ;;  %v1419_v26 = vmul.f32 %v1418_v22, %v1418_v22 }
  0x1c   :  { %v1468_v25 = vld [vmem:[%s1462_s22] sm:$0x3]  ;;  %v1436_v27 = vmul.f32 %v1435_v23, %v1435_v23  ;;  %v1452_v28 = vsel %vm1415_vm2, %v1451_v24, 0.0 }
  0x1d   :  { %v1469_v29 = vsel %vm1415_vm2, %v1468_v25, 0.0  ;;  %v1453_v30 = vmul.f32 %v1452_v28, %v1452_v28  ;;  %v1421_v33 = vsel %vm1420_vm3, 0.0, %v1419_v26 }
  0x1e   :  { %v1438_v31 = vadd.f32 %v1436_v27, %v1419_v26  ;;  %v1470_v32 = vmul.f32 %v1469_v29, %v1469_v29  ;;  %v1437_v35 = vadd.f32 %v1436_v27, %v1421_v33 }
  0x20   :  { %v1455_v34 = vadd.f32 %v1453_v30, %v1438_v31  ;;  %v1454_v37 = vadd.f32 %v1453_v30, %v1437_v35  ;;  %v1472_v38 = vsel %vm1471_vm4, 0.0, %v1470_v32 }
  0x22   :  { %v1474_v36 = vadd.f32 %v1470_v32, %v1455_v34  ;;  %v1473_v39 = vadd.f32 %v1472_v38, %v1454_v37 }
  0x24   :  { %1475 = vadd.xlane.f32.xlu0 %v1474_v36 }
  0x2c   :  { %1483 = vadd.xlane.f32.xlu0 %v1473_v39 }
  0x97   :  { %v1476_v40 = vpop.xlane.xlu0 %1475 }
  0x98   :  { %v1477_v41 = vrot.slane %v1476_v40, 4 }
  0x9a   :  { %v1478_v42 = vadd.f32 %v1477_v41, %v1476_v40 }
  0x9c   :  { %v1479_v43 = vrot.slane %v1478_v42, 2 }
  0x9e   :  { %v1480_v47 = vadd.f32 %v1479_v43, %v1478_v42 }
  0x9f   :  { %v1484_v44 = vpop.xlane.xlu0 %1483 }
  0xa0   :  { %v1485_v45 = vrot.slane %v1484_v44, 4  ;;  %v1481_v50 = vrot.slane %v1480_v47, 1 }
  0xa2   :  { %v1486_v46 = vadd.f32 %v1485_v45, %v1484_v44  ;;  %v1482_v53 = vadd.f32 %v1481_v50, %v1480_v47 }
  0xa4   :  { %v1487_v48 = vrot.slane %v1486_v46, 2 }
  0xa6   :  { %v1488_v49 = vadd.f32 %v1487_v48, %v1486_v46 }
  0xa8   :  { %v1489_v51 = vrot.slane %v1488_v49, 1 }
  0xaa   :  { %v1490_v52 = vadd.f32 %v1489_v51, %v1488_v49 }
  0xac   :  { %1662 = vpush %v1490_v52 }
  0xad   :  { %1664 = vpush %v1482_v53 }
  0xdd   :  { %s1663_s23 = spop %1662 }
  0xde   :  { %s1665_s24 = spop %1664 }
  0xdf   :  { %s1493_s25 = smul.f32 1e-10, %s1665_s24 }
  0xe1   :  { %p1494_p0 = scmp.le.f32.partialorder %s1663_s23, %s1493_s25 }
  0xe2   :  { %s1803_s26 = smov (!%p1494_p0), 0  }
  0xe3   :  { %1497 = sbr.rel (%p1494_p0) target bundleno = 885 (0x375), region = 440 }
  0xe8 LB: > { %s1808_s27 = smov 0   ;;  %s1707_s26 = sphi %s1803_s26, %s2012_s26  }
  0xe9 LB: >> { %s397_s28 = smov [#allocation20]  ;;  %v401_v5 = vmov %v1778_v5  ;;  %v404_v6 = vmov %v1780_v6  ;;  %s417_s29 = smov [#allocation21]  ;;  %s1711_s27 = sphi %s1808_s27, %s396_s27  }
  0xea   : >> { %v421_v5 = vmov %v1778_v5  ;;  %v424_v6 = vmov %v1780_v6  ;;  %v405_v54 = vld [vmem:[%s397_s28] sm:$0x3]  ;;  %vm408_vm5 = vcmp.eq.s32.totalorder %v404_v6, %v401_v5  ;;  %s437_s30 = smov [#allocation23]  ;;  %s398_s10 = smov [#allocation24] }
  0xeb   : >> { %vm428_vm6 = vcmp.eq.s32.totalorder %v424_v6, %v421_v5  ;;  %v441_v5 = vmov %v1778_v5  ;;  %v444_v6 = vmov %v1780_v6  ;;  %v409_v55 = vsel %vm408_vm5, %v405_v54, 0.0  ;;  %v425_v56 = vld [vmem:[%s417_s29] sm:$0x3]  ;;  %s418_s11 = smov [#allocation25]  ;;  %s438_s12 = smov [#allocation26] }
  0xec   : >> { %vm448_vm7 = vcmp.eq.s32.totalorder %v444_v6, %v441_v5  ;;  %v410_v57 = vrot.slane %v409_v55, 4  ;;  %v429_v58 = vsel %vm428_vm6, %v425_v56, 0.0  ;;  %v445_v59 = vld [vmem:[%s437_s30] sm:$0x3]  ;;  %s461_s13 = smov [#allocation25]  ;;  %s459_s14 = smov [#allocation24]  ;;  %v550_v5 = vmov %v1778_v5 }
  0xed   : >> { %v430_v60 = vrot.slane %v429_v58, 4  ;;  %v449_v61 = vsel %vm448_vm7, %v445_v59, 0.0  ;;  %s463_s15 = smov [#allocation26]  ;;  %s538_s16 = smov [#allocation27]  ;;  %v553_v6 = vmov %v1780_v6 }
  0xee   : >> { %v411_v62 = vadd.f32 %v410_v57, %v409_v55  ;;  %v450_v63 = vrot.slane %v449_v61, 4  ;;  %s540_s0 = smov [#allocation28]  ;;  %s457_s1 = smov [#allocation29] }
  0xef   : >> { %v431_v0 = vadd.f32 %v430_v60, %v429_v58  ;;  %s458_s2 = smov [#allocation30]  ;;  %s542_s1 = smov %s457_s1 }
  0xf0   : >> { %v412_v1 = vrot.slane %v411_v62, 2  ;;  %v451_v2 = vadd.f32 %v450_v63, %v449_v61  ;;  %s544_s2 = smov %s458_s2  ;;  %s546_s3 = smov [#allocation29] }
  0xf1   : >> { %v432_v3 = vrot.slane %v431_v0, 2  ;;  %s561_s17 = smov [#allocation30]  ;;  %s559_s18 = smov [#allocation31] }
  0xf2   : >> { %v413_v4 = vadd.f32 %v412_v1, %v411_v62  ;;  %v452_v7 = vrot.slane %v451_v2, 2  ;;  %s574_s19 = smov [#allocation32]  ;;  %s576_s20 = smov [#allocation31] }
  0xf3   : >> { %v433_v8 = vadd.f32 %v432_v3, %v431_v0  ;;  %s1828_s21 = smov [#allocation20]  ;;  %s1830_s22 = smov [#allocation21] }
  0xf4   : >> { %v414_v9 = vrot.slane %v413_v4, 1  ;;  %v453_v10 = vadd.f32 %v452_v7, %v451_v2  ;;  %s1832_s23 = smov [#allocation22]  ;;  %s800_s24 = smov [#allocation31] }
  0xf5   : >> { %v434_v11 = vrot.slane %v433_v8, 1  ;;  %s1834_s25 = smov [#allocation12]  ;;  %s1836_s28 = smov [#allocation14] }
  0xf6   : >> { %v415_v12 = vadd.f32 %v414_v9, %v413_v4  ;;  %v454_v13 = vrot.slane %v453_v10, 1  ;;  %s1838_s29 = smov [#allocation23]  ;;  %s1841_s30 = smov [#allocation16] }
  0xf7   : >> { %v435_v14 = vadd.f32 %v434_v11, %v433_v8  ;;  %s396_s27 = sadd.s32 1, %s1711_s27  }
  0xf8   : >> { %416 = vst [vmem:[%s398_s10] sm:$0x1] %v415_v12  ;;  %v455_v15 = vadd.f32 %v454_v13, %v453_v10  ;;  %s578_s10 = smov [#allocation32]  ;;  %p393_p1 = scmp.ge.s32.totalorder %s396_s27, 3  }
  0xf9   : >> { %436 = vst [vmem:[%s418_s11] sm:$0x1] %v435_v14  ;;  %s802_s11 = smov [#allocation32] }
  0xfa   : >> { %456 = vst [vmem:[%s438_s12] sm:$0x1] %v455_v15  ;;  %s1844_s12 = smov [#allocation18] }
  0xff   : >> { %v460_v23 = vld [vmem:[%s459_s14] sm:$0xff]  ;;  %s604_s14 = smov [#allocation29] }
 0x100   : >> { %v1819_v16 = vld [vmem:[%s461_s13] sm:$0xff]  ;;  %v514_v47 = vand.u32 2147483647, %v460_v23  ;;  %s1855_s13 = smov [#allocation12] }
 0x101   : >> { %v466_v17 = vmul.f32 2.0, %v1819_v16  ;;  %v464_v24 = vld [vmem:[%s463_s15] sm:$0xff]  ;;  %v515_v55 = vand.u32 2147483647, %v1819_v16  ;;  %s606_s15 = smov [#allocation30] }
 0x102   : >> { %v465_v27 = vsub.f32 %v464_v24, %v460_v23  ;;  %v516_v48 = vand.u32 2147483647, %v464_v24 }
 0x103   : >> { %1689 = vrcp.f32 %v466_v17  ;;  %v478_v20 = vand.u32 2147483648, %v466_v17  ;;  %vm472_vm8 = vweird.f32 %v466_v17  ;;  %v476_v22 = vand.u32 2147483647, %v466_v17 }
 0x104   : >> { %v517_v50 = vmin.f32 %v514_v47, %v516_v48 }
 0x105   : >> { %v479_v26 = vor.u32 1.1754944e-38, %v478_v20  ;;  %vm477_vm11 = vcmp.eq.f32.partialorder %v476_v22, 8.507059e+37  ;;  %v585_v20 = vld [vmem:[%s1830_s22] sm:$0x3] }
 0x106   : >> { %v518_v56 = vmul.f32 1.1920929e-08, %v517_v50 }
 0x108   : >> { %vm519_vm4 = vcmp.le.f32.partialorder %v515_v55, %v518_v56 }
 0x109   : >> { %v1690_v18 = vpop.eup %1689 }
 0x10a   : >> { %v468_v19 = vmul.f32 %v1690_v18, %v466_v17  ;;  %vm473_vm9 = vweird.f32 %v1690_v18 }
 0x10b   : >> { %vm474_vm10 = vmor %vm472_vm8, %vm473_vm9  ;;  %vm555_vm8 = vcmp.eq.s32.totalorder %v553_v6, %v550_v5  ;;  %v565_v5 = vmov %v1778_v5  ;;  %v568_v6 = vmov %v1780_v6 }
 0x10c   : >> { %v469_v21 = vsub.f32 1.0, %v468_v19  ;;  %vm570_vm9 = vcmp.eq.s32.totalorder %v568_v6, %v565_v5  ;;  %v636_v5 = vmov %v1778_v5 }
 0x10d   : >> { %v677_v5 = vmov %v1778_v5 }
 0x10e   : >> { %v470_v25 = vmul.f32 %v1690_v18, %v469_v21  ;;  %v586_v21 = vld [vmem:[%s1832_s23] sm:$0x3]  ;;  %v663_v5 = vmov %v1778_v5 }
 0x110   : >> { %v471_v28 = vadd.f32 %v1690_v18, %v470_v25 }
 0x112   : >> { %v475_v29 = vsel %vm474_vm10, %v1690_v18, %v471_v28  ;;  %v810_v28 = vld [vmem:[%s1841_s30] sm:$0x3]  ;;  %vm760_vm10 = vcmp.eq.s32.totalorder %v1780_v6, 0 }
 0x113   : >> { %v480_v30 = vsel %vm477_vm11, %v479_v26, %v475_v29  ;;  %v584_v26 = vld [vmem:[%s1828_s21] sm:$0x3]  ;;  %vm772_vm11 = vcmp.eq.s32.totalorder %v1780_v6, 1  ;;  %v639_v6 = vmov %v1780_v6 }
 0x114   : >> { %v481_v31 = vmul.f32 %v480_v30, %v465_v27  ;;  %v587_v27 = vld [vmem:[%s1838_s29] sm:$0x3]  ;;  %v680_v6 = vmov %v1780_v6 }
 0x115   : >> { %v666_v6 = vmov %v1780_v6 }
 0x116   : >> { %v483_v32 = vmul.f32 %v481_v31, %v481_v31  ;;  %vm482_vm14 = vcmp.ge.f32.partialorder %v481_v31, 0.0 }
 0x118   : >> { %v484_v33 = vadd.f32 1.0, %v483_v32 }
 0x11a   : >> { %1691 = vrsqrt.f32 %v484_v33  ;;  %vm492_vm12 = vcmp.eq.f32.partialorder %v484_v33, inf  ;;  %v495_v40 = vand.u32 2147483648, %v484_v33  ;;  %vm494_vm13 = vcmp.eq.f32.partialorder %v484_v33, 0.0 }
 0x120   : >> { %v1692_v34 = vpop.eup %1691 }
 0x121   : >> { %v486_v35 = vmul.f32 %v1692_v34, %v484_v33 }
 0x123   : >> { %v487_v36 = vmul.f32 %v1692_v34, %v486_v35 }
 0x125   : >> { %v488_v37 = vmul.f32 0.5, %v487_v36 }
 0x127   : >> { %v489_v38 = vsub.f32 1.5, %v488_v37 }
 0x129   : >> { %v490_v39 = vmul.f32 %v1692_v34, %v489_v38 }
 0x12b   : >> { %v491_v41 = vmul.f32 %v490_v39, %v484_v33 }
 0x12d   : >> { %v493_v42 = vsel %vm492_vm12, %v484_v33, %v491_v41  ;;  %v811_v33 = vld [vmem:[%s1844_s12] sm:$0x3]  ;;  %vm644_vm12 = vcmp.eq.s32.totalorder %v639_v6, %v636_v5  ;;  %v650_v5 = vmov %v1778_v5  ;;  %v653_v6 = vmov %v1780_v6 }
 0x12e   : >> { %v496_v43 = vsel %vm494_vm13, %v495_v40, %v493_v42  ;;  %vm685_vm13 = vcmp.eq.s32.totalorder %v680_v6, %v677_v5 }
 0x12f   : >> { %v497_v44 = vxor.u32 2147483648, %v496_v43 }
 0x131   : >> { %v498_v45 = vsel %vm482_vm14, %v496_v43, %v497_v44  ;;  %vm670_vm14 = vcmp.eq.s32.totalorder %v666_v6, %v663_v5 }
 0x132   : >> { %v499_v46 = vadd.f32 %v498_v45, %v481_v31 }
 0x134   : >> { %1693 = vrcp.f32 %v499_v46  ;;  %v511_v52 = vand.u32 2147483648, %v499_v46  ;;  %vm505_vm15 = vweird.f32 %v499_v46  ;;  %v509_v54 = vand.u32 2147483647, %v499_v46 }
 0x136   : >> { %v512_v58 = vor.u32 1.1754944e-38, %v511_v52  ;;  %vm510_vm3 = vcmp.eq.f32.partialorder %v509_v54, 8.507059e+37 }
 0x13a   : >> { %v1694_v49 = vpop.eup %1693 }
 0x13b   : >> { %v501_v51 = vmul.f32 %v1694_v49, %v499_v46  ;;  %vm506_vm0 = vweird.f32 %v1694_v49 }
 0x13c   : >> { %vm507_vm1 = vmor %vm505_vm15, %vm506_vm0  ;;  %vm657_vm15 = vcmp.eq.s32.totalorder %v653_v6, %v650_v5  ;;  %vm703_vm0 = vcmp.eq.s32.totalorder %v1778_v5, 1  ;;  %v300_v6 = vmov (%p393_p1), %v1780_v6 }
 0x13d   : >> { %v502_v53 = vsub.f32 1.0, %v501_v51 }
 0x13f   : >> { %v503_v57 = vmul.f32 %v1694_v49, %v502_v53 }
 0x141   : >> { %v504_v59 = vadd.f32 %v1694_v49, %v503_v57 }
 0x143   : >> { %v508_v60 = vsel %vm507_vm1, %v1694_v49, %v504_v59  ;;  %vm699_vm1 = vcmp.eq.s32.totalorder %v1778_v5, 0  ;;  %v297_v5 = vmov (%p393_p1), %v1778_v5 }
 0x144   : >> { %v513_v61 = vsel %vm510_vm3, %v512_v58, %v508_v60  ;;  %vm312_vm3 = vcmp.eq.s32.totalorder (%p393_p1), %v300_v6, %v297_v5  ;;  %v316_v5 = vmov (%p393_p1), %v1778_v5  ;;  %v319_v6 = vmov (%p393_p1), %v1780_v6 }
 0x145   : >> { %v520_v62 = vsel %vm519_vm4, 0.0, %v513_v61  ;;  %v333_v5 = vmov (%p393_p1), %v1778_v5  ;;  %v336_v6 = vmov (%p393_p1), %v1780_v6 }
 0x146   : >> { %v521_v63 = vmul.f32 %v520_v62, %v520_v62  ;;  %v534_v0 = vmul.f32 %v520_v62, %v1819_v16  ;;  %v350_v5 = vmov (%p393_p1), %v1778_v5  ;;  %v353_v6 = vmov (%p393_p1), %v1780_v6 }
 0x147   : > { %vm365_vm4 = vcmp.eq.s32.totalorder (%p393_p1), %v353_v6, %v350_v5 }
 0x148   : >> { %v522_v1 = vadd.f32 1.0, %v521_v63  ;;  %v535_v2 = vsub.f32 %v460_v23, %v534_v0  ;;  %v537_v3 = vadd.f32 %v534_v0, %v464_v24  ;;  %v808_v23 = vld [vmem:[%s1834_s25] sm:$0x3] }
 0x149   : >> { %v809_v24 = vld [vmem:[%s1836_s28] sm:$0x3] }
 0x14a   : >> { %1695 = vrsqrt.f32 %v522_v1  ;;  %539 = vst [vmem:[%s538_s16] sm:$0xff] %v535_v2  ;;  %vm529_vm5 = vweird.f32 %v522_v1  ;;  %s1860_s16 = smov [#allocation22] }
 0x14b   : >> { %541 = vst [vmem:[%s540_s0] sm:$0xff] %v537_v3  ;;  %s1862_s0 = smov [#allocation21] }
 0x150   : >> { %v1696_v4 = vpop.eup %1695 }
 0x151   : >> { %v524_v7 = vmul.f32 %v1696_v4, %v522_v1  ;;  %vm530_vm6 = vweird.f32 %v1696_v4 }
 0x152   : >> { %vm531_vm7 = vmor %vm529_vm5, %vm530_vm6 }
 0x153   : >> { %v525_v8 = vmul.f32 %v1696_v4, %v524_v7 }
 0x155   : >> { %v526_v9 = vmul.f32 0.5, %v525_v8 }
 0x157   : >> { %v527_v10 = vsub.f32 1.5, %v526_v9 }
 0x159   : >> { %v528_v11 = vmul.f32 %v1696_v4, %v527_v10 }
 0x15b   : >> { %v532_v12 = vsel %vm531_vm7, %v1696_v4, %v528_v11 }
 0x15c   : >> { %543 = vst [vmem:[%s542_s1] sm:$0xff] %v532_v12  ;;  %v533_v13 = vmul.f32 %v532_v12, %v520_v62  ;;  %s829_s1 = smov [#allocation16] }
 0x15e   : >> { %545 = vst [vmem:[%s544_s2] sm:$0xff] %v533_v13  ;;  %s1864_s2 = smov [#allocation14] }
 0x163   : >> { %v547_v14 = vld [vmem:[%s546_s3] ss:$0 sm:$0xff]  ;;  %s1869_s3 = smov [#allocation18] }
 0x164   : >> { %v556_v15 = vsel %vm555_vm8, %v547_v14, 0.0  ;;  %v605_v56 = vld [vmem:[%s604_s14] ss:$0 sm:$0xff]  ;;  %s752_s14 = smov [#allocation20] }
 0x165   : >> { %557 = vadd.xlane.f32.xlu0 %v556_v15  ;;  %v562_v16 = vld [vmem:[%s561_s17] ss:$0 sm:$0xff]  ;;  %s1872_s17 = smov [#allocation20] }
 0x166   : >> { %v571_v17 = vsel %vm570_vm9, %v562_v16, 0.0  ;;  %v607_v57 = vld [vmem:[%s606_s15] ss:$0 sm:$0xff]  ;;  %s777_s15 = smov [#allocation23] }
 0x16d   : >> { %572 = vadd.xlane.f32.xlu0 %v571_v17 }
 0x1d8   : >> { %v558_v18 = vpop.xlane.xlu0 %557 }
 0x1d9   : >> { %560 = vst [vmem:[%s559_s18] sm:$0xff] %v558_v18  ;;  %s611_s18 = smov [#allocation23] }
 0x1e0   : >> { %v573_v19 = vpop.xlane.xlu0 %572  ;;  %v577_v22 = vld [vmem:[%s576_s20] sm:$0xff]  ;;  %s674_s20 = smov [#allocation28] }
 0x1e1   : >> { %575 = vst [vmem:[%s574_s19] sm:$0xff] %v573_v19  ;;  %v801_v25 = vld [vmem:[%s800_s24] sm:$0xff]  ;;  %v591_v29 = vmul.f32 %v585_v20, %v577_v22  ;;  %v595_v30 = vmul.f32 %v586_v21, %v577_v22  ;;  %v588_v50 = vmul.f32 %v584_v26, %v577_v22  ;;  %v598_v52 = vmul.f32 %v587_v27, %v577_v22  ;;  %s633_s19 = smov [#allocation27]  ;;  %s647_s24 = smov [#allocation21] }
 0x1e2   : >> { %v812_v34 = vmul.f32 %v808_v23, %v801_v25  ;;  %v815_v35 = vmul.f32 %v809_v24, %v801_v25  ;;  %v819_v42 = vmul.f32 %v810_v28, %v801_v25  ;;  %v822_v46 = vmul.f32 %v811_v33, %v801_v25 }
 0x1e8   : >> { %v579_v31 = vld [vmem:[%s578_s10] sm:$0xff]  ;;  %s689_s10 = smov [#allocation21] }
 0x1e9   : >> { %v803_v32 = vld [vmem:[%s802_s11] sm:$0xff]  ;;  %v592_v36 = vmul.f32 %v587_v27, %v579_v31  ;;  %v594_v37 = vmul.f32 %v584_v26, %v579_v31  ;;  %v589_v43 = vmul.f32 %v586_v21, %v579_v31  ;;  %v597_v47 = vmul.f32 %v585_v20, %v579_v31  ;;  %s1715_s11 = smov 127  }
 0x1ea   : >> { %v813_v38 = vmul.f32 %v810_v28, %v803_v32  ;;  %v816_v39 = vmul.f32 %v811_v33, %v803_v32  ;;  %v818_v40 = vmul.f32 %v808_v23, %v803_v32  ;;  %v821_v41 = vmul.f32 %v809_v24, %v803_v32  ;;  %v640_v26 = vld [vmem:[%s633_s19] ss:$0 sm:$0xff] }
 0x1eb   : >> { %v593_v44 = vsub.f32 %v591_v29, %v592_v36  ;;  %v596_v45 = vadd.f32 %v595_v30, %v594_v37  ;;  %v590_v54 = vsub.f32 %v588_v50, %v589_v43  ;;  %v599_v55 = vadd.f32 %v598_v52, %v597_v47  ;;  %v681_v27 = vld [vmem:[%s674_s20] ss:$0 sm:$0xff] }
 0x1ec   : >> { %v814_v48 = vsub.f32 %v812_v34, %v813_v38  ;;  %v817_v49 = vsub.f32 %v815_v35, %v816_v39  ;;  %v820_v51 = vadd.f32 %v819_v42, %v818_v40  ;;  %v823_v53 = vadd.f32 %v822_v46, %v821_v41 }
 0x1ed   : >> { %601 = vst [vmem:[%s1830_s22] sm:$0x3] %v593_v44  ;;  %s673_s22 = smov [#allocation23] }
 0x1ee   : >> { %602 = vst [vmem:[%s1832_s23] sm:$0x3] %v596_v45  ;;  %s660_s23 = smov [#allocation22] }
 0x1ef   : >> { %824 = vst [vmem:[%s1834_s25] sm:$0x3] %v814_v48  ;;  %s1909_s25 = smov [#allocation20] }
 0x1f0   : >> { %825 = vst [vmem:[%s1836_s28] sm:$0x3] %v817_v49  ;;  %s1911_s28 = smov [#allocation23] }
 0x1f1   : >> { %826 = vst [vmem:[%s1841_s30] sm:$0x3] %v820_v51  ;;  %s1714_s30 = smov 1  }
 0x1f2   : >> { %827 = vst [vmem:[%s1844_s12] sm:$0x3] %v823_v53  ;;  %s1923_s12 = smov [#allocation21] }
 0x1f3   : >> { %600 = vst [vmem:[%s1828_s21] sm:$0x3] %v590_v54  ;;  %s632_s21 = smov [#allocation20] }
 0x1f4   : >> { %603 = vst [vmem:[%s1838_s29] sm:$0x3] %v599_v55  ;;  %v613_v59 = vld [vmem:[%s1862_s0] sm:$0x3]  ;;  %s1913_s29 = smov [#allocation22] }
 0x1f5   : >> { %v614_v58 = vld [vmem:[%s1860_s16] sm:$0x3]  ;;  %v617_v10 = vmul.f32 %v613_v59, %v607_v57  ;;  %v620_v16 = vmul.f32 %v613_v59, %v605_v56 }
 0x1f6   : >> { %v830_v60 = vld [vmem:[%s1855_s13] ss:$0 sm:$0xff]  ;;  %v1637_v62 = vld [vmem:[%s1855_s13 + $0x1] ss:$0 sm:$0xff]  ;;  %v625_v13 = vmul.f32 %v614_v58, %v607_v57  ;;  %v622_v14 = vmul.f32 %v614_v58, %v605_v56 }
 0x1f7   : >> { %v1636_v61 = vld [vmem:[%s1855_s13 - $0x1] sm:$0x2]  ;;  %v1641_v2 = vld [vmem:[%s1864_s2 + $0x1] ss:$0 sm:$0xff] }
 0x1f8   : >> { %v837_v63 = vsel %vm760_vm10, %v830_v60, %v1636_v61  ;;  %v854_v0 = vld [vmem:[%s1864_s2] ss:$0 sm:$0xff]  ;;  %v1639_v4 = vld [vmem:[%s829_s1 + $0x1] sm:$0x1] }
 0x1f9   : >> { %v1640_v1 = vld [vmem:[%s1864_s2 - $0x1] sm:$0x2]  ;;  %840 = vst [vmem:[%s1855_s13] sm:$0x3] %v837_v63  ;;  %v849_v8 = vsel %vm772_vm11, %v1637_v62, %v1639_v4  ;;  %v1643_v9 = vld [vmem:[%s1869_s3 + $0x1] sm:$0x1] }
 0x1fa   : >> { %v841_v3 = vld [vmem:[%s829_s1] ss:$0 sm:$0xff]  ;;  %v861_v7 = vsel %vm760_vm10, %v854_v0, %v1640_v1  ;;  %v873_v12 = vsel %vm772_vm11, %v1641_v2, %v1643_v9 }
 0x1fb   : >> { %1638 = vst [vmem:[%s1855_s13 + $0x1] sm:$0x1] %v841_v3  ;;  %v865_v11 = vld [vmem:[%s1869_s3] ss:$0 sm:$0xff]  ;;  %s753_s13 = smov [#allocation22] }
 0x1fc   : >> { %851 = vst [vmem:[%s829_s1] sm:$0x3] %v849_v8  ;;  %v612_v15 = vld [vmem:[%s1872_s17] sm:$0x3]  ;;  %s320_s1 = smov (%p393_p1), [#allocation21] }
 0x1fd   : >> { %864 = vst [vmem:[%s1864_s2] sm:$0x3] %v861_v7  ;;  %v615_v17 = vld [vmem:[%s611_s18] sm:$0x3]  ;;  %v616_v18 = vmul.f32 %v612_v15, %v605_v56  ;;  %v619_v19 = vmul.f32 %v612_v15, %v607_v57 }
 0x1fe   : >> { %1642 = vst [vmem:[%s1864_s2 + $0x1] sm:$0x1] %v865_v11  ;;  %v626_v20 = vmul.f32 %v615_v17, %v605_v56  ;;  %v623_v21 = vmul.f32 %v615_v17, %v607_v57  ;;  %s337_s2 = smov (%p393_p1), [#allocation22] }
 0x1ff   : >> { %875 = vst [vmem:[%s1869_s3] sm:$0x3] %v873_v12  ;;  %v618_v22 = vsub.f32 %v616_v18, %v617_v10  ;;  %v621_v25 = vadd.f32 %v620_v16, %v619_v19  ;;  %s354_s3 = smov (%p393_p1), [#allocation23] }
 0x200   : >> { %v627_v23 = vadd.f32 %v626_v20, %v625_v13  ;;  %v624_v24 = vsub.f32 %v622_v14, %v623_v21 }
 0x201   : >> { %628 = vst [vmem:[%s1872_s17] sm:$0x3] %v618_v22 }
 0x202   : >> { %631 = vst [vmem:[%s611_s18] sm:$0x3] %v627_v23 }
 0x203   : >> { %630 = vst [vmem:[%s1860_s16] sm:$0x3] %v624_v24  ;;  %s876_s16 = sadd.s32 (%p393_p1), 1, %s1707_s26  }
 0x204   : >> { %629 = vst [vmem:[%s1862_s0] sm:$0x3] %v621_v25  ;;  %s301_s0 = smov (%p393_p1), [#allocation20]  ;;  %p389_p2 = scmp.ge.s32.totalorder (%p393_p1), %s876_s16, 15 }
 0x205   : > { %s2012_s26 = smov (%p393_p1), %s876_s16 }
 0x208   : >> { %v641_v28 = vld [vmem:[%s632_s21] sm:$0x3] }
 0x209   : >> { %v682_v29 = vld [vmem:[%s673_s22] sm:$0x3]  ;;  %v645_v30 = vsel %vm644_vm12, %v640_v26, %v641_v28 }
 0x20a   : >> { %v686_v31 = vsel %vm685_vm13, %v681_v27, %v682_v29  ;;  %v667_v32 = vld [vmem:[%s660_s23] sm:$0x3]  ;;  %646 = vst [vmem:[%s632_s21] sm:$0x3] %v645_v30 }
 0x20b   : >> { %687 = vst [vmem:[%s673_s22] sm:$0x3] %v686_v31  ;;  %v671_v33 = vsel %vm670_vm14, 0.0, %v667_v32  ;;  %v654_v34 = vld [vmem:[%s647_s24] sm:$0x3] }
 0x20c   : >> { %672 = vst [vmem:[%s660_s23] sm:$0x3] %v671_v33  ;;  %v658_v35 = vsel %vm657_vm15, 0.0, %v654_v34 }
 0x20d   : >> { %659 = vst [vmem:[%s647_s24] sm:$0x3] %v658_v35 }
 0x211   : >> { %v694_v36 = vld [vmem:[%s1909_s25] sm:$0x3] }
 0x212   : >> { %v722_v37 = vld [vmem:[%s1911_s28] sm:$0x3]  ;;  %695 = vrot.lane.b32.xlu1 %v694_v36, %s1714_s30 }
 0x213   : >> { %723 = vrot.lane.b32.xlu0 %v722_v37, %s1714_s30  ;;  %v726_v38 = vld [vmem:[%s1913_s29] sm:$0x3] }
 0x214   : >> { %727 = vrot.lane.b32.xlu2 %v726_v38, %s1714_s30  ;;  %v690_v39 = vld [vmem:[%s689_s10] sm:$0x3] }
 0x215   : >> { %v711_v40 = vld [vmem:[%s689_s10] sm:$0x3] }
 0x216   : >> { %v743_v41 = vld [vmem:[%s1911_s28] sm:$0x3] }
 0x217   : >> { %v693_v44 = vld [vmem:[%s1909_s25] sm:$0x3] }
 0x218   : >> { %v725_v55 = vld [vmem:[%s1913_s29] sm:$0x3] }
 0x21a   : >> { %691 = vrot.lane.b32.xlu1 %v690_v39, %s1714_s30 }
 0x21c   : >> { %712 = vrot.lane.b32.xlu2 %v711_v40, %s1715_s11 }
 0x222   : >> { %744 = vrot.lane.b32.xlu1 %v743_v41, %s1715_s11 }
 0x26e   : >> { %v728_v42 = vpop.permute.xlu2 %727 }
 0x26f   : >> { %v732_v51 = vsel %vm699_vm1, %v726_v38, %v728_v42 }
 0x276   : >> { %v713_v43 = vpop.permute.xlu2 %712 }
 0x277   : >> { %v717_v45 = vsel %vm703_vm0, %v693_v44, %v713_v43 }
 0x278   : >> { %719 = vst [vmem:[%s689_s10] sm:$0x3] %v717_v45 }
 0x27f   : >> { %v778_v46 = vld [vmem:[%s1923_s12] ss:$0 sm:$0xff]  ;;  %v1633_v48 = vld [vmem:[%s1923_s12 + $0x1] ss:$0 sm:$0xff] }
 0x280   : >> { %v1632_v47 = vld [vmem:[%s1923_s12 - $0x1] sm:$0x2] }
 0x281   : >> { %v785_v49 = vsel %vm760_vm10, %v778_v46, %v1632_v47 }
 0x282   : >> { %788 = vst [vmem:[%s1923_s12] sm:$0x3] %v785_v49 }
 0x284   : >> { %v696_v50 = vpop.permute.xlu1 %695 }
 0x285   : >> { %v724_v52 = vpop.permute.xlu0 %723  ;;  %v700_v56 = vsel %vm699_vm1, %v694_v36, %v696_v50 }
 0x286   : >> { %v736_v53 = vsel %vm703_vm0, %v724_v52, %v732_v51 }
 0x287   : >> { %v742_v54 = vsel %vm1415_vm2, %v736_v53, 0.0 }
 0x288   : >> { %750 = vst [vmem:[%s1913_s29] sm:$0x3] %v742_v54 }
 0x28c   : >> { %v692_v57 = vpop.permute.xlu1 %691 }
 0x28d   : >> { %v704_v58 = vsel %vm703_vm0, %v692_v57, %v700_v56 }
 0x28e   : >> { %v710_v59 = vsel %vm1415_vm2, %v704_v58, 0.0 }
 0x28f   : >> { %718 = vst [vmem:[%s1909_s25] sm:$0x3] %v710_v59  ;;  %v1631_v61 = vld [vmem:[%s753_s13 + $0x1] sm:$0x1]  ;;  %v765_v4 = vld [vmem:[%s753_s13] ss:$0 sm:$0xff] }
 0x294   : >> { %v745_v60 = vpop.permute.xlu1 %744 }
 0x295   : >> { %v749_v62 = vsel %vm703_vm0, %v725_v55, %v745_v60 }
 0x296   : >> { %v754_v63 = vld [vmem:[%s752_s14] ss:$0 sm:$0xff]  ;;  %v1629_v1 = vld [vmem:[%s752_s14 + $0x1] ss:$0 sm:$0xff]  ;;  %751 = vst [vmem:[%s1911_s28] sm:$0x3] %v749_v62 }
 0x297   : >> { %v1628_v0 = vld [vmem:[%s752_s14 - $0x1] sm:$0x2]  ;;  %v773_v3 = vsel %vm772_vm11, %v1629_v1, %v1631_v61 }
 0x298   : >> { %v761_v2 = vsel %vm760_vm10, %v754_v63, %v1628_v0  ;;  %775 = vst [vmem:[%s753_s13] sm:$0x3] %v773_v3 }
 0x299   : >> { %764 = vst [vmem:[%s752_s14] sm:$0x3] %v761_v2 }
 0x29a   : >> { %1630 = vst [vmem:[%s752_s14 + $0x1] sm:$0x1] %v765_v4 }
 0x29d   : >> { %v789_v7 = vld [vmem:[%s777_s15] ss:$0 sm:$0xff]  ;;  %v1635_v8 = vld [vmem:[%s777_s15 + $0x1] sm:$0x1] }
 0x29e   : >> { %1634 = vst [vmem:[%s1923_s12 + $0x1] sm:$0x1] %v789_v7  ;;  %v797_v9 = vsel %vm772_vm11, %v1633_v48, %v1635_v8  ;;  %395 = sbr.rel (!%p393_p1) target bundleno = 233 (0xe9), region = 435 }
 0x29f   : >> { %799 = vst [vmem:[%s777_s15] sm:$0x3] %v797_v9  ;;  %v343_v14 = vld [vmem:[%s337_s2] sm:$0x3] (%p393_p1) }
 0x2a0   : > { %v344_v18 = vsel (%p393_p1), %vm1415_vm2, %v343_v14, 0.0 }
 0x2a1   : > { %v307_v10 = vld [vmem:[%s301_s0] sm:$0x3] (%p393_p1)  ;;  %v345_v20 = vmul.f32 (%p393_p1), %v344_v18, %v344_v18 }
 0x2a2   : > { %v308_v12 = vsel (%p393_p1), %vm1415_vm2, %v307_v10, 0.0 }
 0x2a3   : > { %v309_v16 = vmul.f32 %v308_v12, %v308_v12 }
 0x2a5   : > { %v326_v11 = vld [vmem:[%s320_s1] sm:$0x3]  ;;  %v313_v23 = vsel %vm312_vm3, 0.0, %v309_v16 }
 0x2a6   : > { %v327_v13 = vsel %vm1415_vm2, %v326_v11, 0.0  ;;  %v360_v15 = vld [vmem:[%s354_s3] sm:$0x3] }
 0x2a7   : > { %v328_v17 = vmul.f32 %v327_v13, %v327_v13  ;;  %v361_v19 = vsel %vm1415_vm2, %v360_v15, 0.0 }
 0x2a8   : > { %v362_v22 = vmul.f32 %v361_v19, %v361_v19 }
 0x2a9   : > { %v330_v21 = vadd.f32 %v328_v17, %v309_v16  ;;  %v329_v25 = vadd.f32 %v328_v17, %v313_v23 }
 0x2aa   : > { %v366_v28 = vsel %vm365_vm4, 0.0, %v362_v22 }
 0x2ab   : > { %v347_v24 = vadd.f32 %v345_v20, %v330_v21  ;;  %v346_v27 = vadd.f32 %v345_v20, %v329_v25 }
 0x2ad   : > { %v368_v26 = vadd.f32 %v362_v22, %v347_v24  ;;  %v367_v29 = vadd.f32 %v366_v28, %v346_v27 }
 0x2af   : > { %369 = vadd.xlane.f32.xlu0 %v368_v26 }
 0x2b7   : > { %377 = vadd.xlane.f32.xlu0 %v367_v29 }
 0x322   : > { %v370_v30 = vpop.xlane.xlu0 %369 }
 0x323   : > { %v371_v31 = vrot.slane %v370_v30, 4 }
 0x325   : > { %v372_v32 = vadd.f32 %v371_v31, %v370_v30 }
 0x327   : > { %v373_v33 = vrot.slane %v372_v32, 2 }
 0x329   : > { %v374_v37 = vadd.f32 %v373_v33, %v372_v32 }
 0x32a   : > { %v378_v34 = vpop.xlane.xlu0 %377 }
 0x32b   : > { %v379_v35 = vrot.slane %v378_v34, 4  ;;  %v375_v40 = vrot.slane %v374_v37, 1 }
 0x32d   : > { %v380_v36 = vadd.f32 %v379_v35, %v378_v34  ;;  %v376_v43 = vadd.f32 %v375_v40, %v374_v37 }
 0x32f   : > { %v381_v38 = vrot.slane %v380_v36, 2 }
 0x331   : > { %v382_v39 = vadd.f32 %v381_v38, %v380_v36 }
 0x333   : > { %v383_v41 = vrot.slane %v382_v39, 1 }
 0x335   : > { %v384_v42 = vadd.f32 %v383_v41, %v382_v39 }
 0x337   : > { %1666 = vpush %v384_v42 }
 0x338   : > { %1668 = vpush %v376_v43 }
 0x368   : > { %s1667_s27 = spop %1666 }
 0x369   : > { %s1669_s17 = spop %1668 }
 0x36a   : > { %s387_s18 = smul.f32 1e-10, %s1669_s17 }
 0x36c   : > { %p388_p3 = scmp.le.f32.partialorder %s1667_s27, %s387_s18 }
 0x36e   : > { %p390_p4 = por %p389_p2, %p388_p3 }
 0x370   :  { %878 = sbr.rel (!%p390_p4) target bundleno = 232 (0xe8), region = 446 }
 0x375 PF:  { %s879_s19 = smov [#allocation20]  ;;  %v883_v5 = vmov %v1778_v5  ;;  %v886_v6 = vmov %v1780_v6  ;;  %v933_v44 = vld [vmem:[#allocation12] sm:$0x3]  ;;  %v939_v45 = vld [vmem:[#allocation14] sm:$0x3]  ;;  %s899_s20 = smov [#allocation23] }
 0x376   :  { %v903_v5 = vmov %v1778_v5  ;;  %v906_v6 = vmov %v1780_v6  ;;  %v887_v46 = vld [vmem:[%s879_s19] sm:$0x3]  ;;  %vm890_vm5 = vcmp.eq.s32.totalorder %v886_v6, %v883_v5  ;;  %936 = vst [vmem:[#allocation13] sm:$0x3] %v933_v44  ;;  %v945_v51 = vld [vmem:[#allocation16] sm:$0x3] }
 0x377   :  { %vm910_vm6 = vcmp.eq.s32.totalorder %v906_v6, %v903_v5  ;;  %v891_v47 = vsel %vm890_vm5, %v887_v46, 0.0  ;;  %v907_v48 = vld [vmem:[%s899_s20] sm:$0x3]  ;;  %942 = vst [vmem:[#allocation15] sm:$0x3] %v939_v45  ;;  %s880_s24 = smov [#allocation8] }
 0x378   :  { %v892_v49 = vrot.slane %v891_v47, 4  ;;  %v911_v50 = vsel %vm910_vm6, %v907_v48, 0.0  ;;  %v951_v52 = vld [vmem:[#allocation18] sm:$0x3]  ;;  %948 = vst [vmem:[#allocation17] sm:$0x3] %v945_v51 }
 0x379   :  { %v912_v53 = vrot.slane %v911_v50, 4  ;;  %954 = vst [vmem:[#allocation19] sm:$0x3] %v951_v52  ;;  %s900_s29 = smov [#allocation10] }
 0x37a   :  { %v893_v54 = vadd.f32 %v892_v49, %v891_v47 }
 0x37b   :  { %v913_v55 = vadd.f32 %v912_v53, %v911_v50 }
 0x37c   :  { %v894_v56 = vrot.slane %v893_v54, 2 }
 0x37d   :  { %v914_v57 = vrot.slane %v913_v55, 2  ;;  %v1125_v58 = vld [vmem:[#allocation13] sm:$0x3] }
 0x37e   :  { %v895_v59 = vadd.f32 %v894_v56, %v893_v54  ;;  %1126 = vst [vmem:[%s2008_s6] sm:$0x3] %v1125_v58  ;;  %v1181_v5 = vld [vmem:[#allocation15] sm:$0x3] }
 0x37f   :  { %v915_v6 = vadd.f32 %v914_v57, %v913_v55  ;;  %1182 = vst [vmem:[%s2009_s7] sm:$0x3] %v1181_v5  ;;  %v1237_v61 = vld [vmem:[#allocation17] sm:$0x3] }
 0x380   :  { %v896_v60 = vrot.slane %v895_v59, 1  ;;  %1238 = vst [vmem:[%s2010_s8] sm:$0x3] %v1237_v61  ;;  %v1293_v63 = vld [vmem:[#allocation19] sm:$0x3] }
 0x381   :  { %v916_v62 = vrot.slane %v915_v6, 1  ;;  %1294 = vst [vmem:[%s2011_s9] sm:$0x3] %v1293_v63 }
 0x382   :  { %v897_v0 = vadd.f32 %v896_v60, %v895_v59 }
 0x383   :  { %v917_v1 = vadd.f32 %v916_v62, %v915_v6 }
 0x384   :  { %898 = vst [vmem:[%s880_s24] sm:$0x1] %v897_v0 }
 0x385   :  { %918 = vst [vmem:[%s900_s29] sm:$0x1] %v917_v1 }
 0x38b   :  { %v921_v2 = vld [vmem:[#allocation8] sm:$0x1] }
 0x38c   :  { %924 = vst [vmem:[#allocation9] sm:$0x1] %v921_v2  ;;  %v927_v3 = vld [vmem:[#allocation10] sm:$0x1] }
 0x38d   :  { %930 = vst [vmem:[#allocation11] sm:$0x1] %v927_v3 }
 0x393   :  { %v1011_v4 = vld [vmem:[#allocation9] sm:$0x1] }
 0x394   :  { %1012 = vst [vmem:[%s2006_s4] sm:$0x1] %v1011_v4  ;;  %v1069_v7 = vld [vmem:[#allocation11] sm:$0x1] }
 0x395   :  { %1070 = vst [vmem:[%s2007_s5] sm:$0x1] %v1069_v7 }

// kernel: reverse.6
= control target key start
LH: loop header
LB: loop body
LE: loop exit
PB: predicated region body
PF: predicated region fallthrough
CT: control target
= control target key end

     0   :  { %v2_v0 = vlaneseq  ;;  %s127_s0 = inlined_call_operand.vmem [shape: f32[3], index: 0, kind: input, shape index: {}]   ;;  %s128_s1 = inlined_call_operand.vmem [shape: f32[3], index: 1, kind: output, shape index: {}]  }
   0x2   :  { %v3_v1 = vsub.s32 2, %v2_v0 }
   0x4   :  { %4 = vset.pattern.permute.xlu0 %v3_v1 }
   0x5   :  { %v45_v2 = vld [vmem:[#allocation1] sm:$0x1]  ;;  %v22_v3 = vld [vmem:[%s127_s0] sm:$0x1]  ;;  %v60_v10 = vshrl.u32 %v2_v0, 7 }
   0x6   :  { %46 = vst [vmem:[#allocation0] sm:$0x1] %v45_v2 }
   0x7   :  { %23 = vst [vmem:[#allocation1 + $0x1] sm:$0x1] %v22_v3  ;;  %vm61_vm0 = vcmp.lt.s32.totalorder %v60_v10, 1 }
   0xd   :  { %v48_v4 = vld [vmem:[#allocation0 + $0x7] ss:$-1 sm:$0xff] }
   0xe   :  { %v49_v5 = vrot.slane %v48_v4, 7  ;;  %v42_v6 = vld [vmem:[#allocation1 + $0x1] sm:$0x1] }
   0xf   :  { %44 = vst [vmem:[#allocation0 + $0x8] sm:$0x1] %v42_v6 }
  0x10   :  { %50 = vperm.xlu0 %4, %v49_v5  }
  0x16   :  { %v55_v7 = vld [vmem:[#allocation0 + $0xf] ss:$-1 sm:$0xff] }
  0x17   :  { %v56_v8 = vrot.slane %v55_v7, 7 }
  0x19   :  { %57 = vperm.xlu0 %4, %v56_v8  }
  0x82   :  { %v51_v9 = vpop.permute.xlu0 %50 }
  0x83   :  { %52 = vst [vmem:[#allocation2] sm:$0xff] %v51_v9 }
  0x8b   :  { %v58_v11 = vpop.permute.xlu0 %57 }
  0x8c   :  { %62 = vst.msk [vmem:[#allocation2] sm:$0xff] %vm61_vm0, %v58_v11 }
  0x93   :  { %v65_v12 = vld [vmem:[#allocation2] sm:$0x1] }
  0x94   :  { %68 = vst [vmem:[#allocation3] sm:$0x1] %v65_v12 }
  0x9b   :  { %v85_v13 = vld [vmem:[#allocation3] sm:$0x1] }
  0x9c   :  { %86 = vst [vmem:[%s128_s1] sm:$0x1] %v85_v13 }

// kernel: custom-call.38
= control target key start
LH: loop header
LB: loop body
LE: loop exit
PB: predicated region body
PF: predicated region fallthrough
CT: control target
= control target key end

     0   :  { %v410_v1 = vmov 0.0   ;;  %s430_s11 = smov 0   ;;  %s515_s0 = inlined_call_operand.vmem [shape: f32[3,3], index: 0, kind: input, shape index: {}]   ;;  %s516_s1 = inlined_call_operand.vmem [shape: f32[3,3], index: 1, kind: output, shape index: {0}]   ;;  %s517_s2 = inlined_call_operand.vmem [shape: f32[3], index: 2, kind: output, shape index: {1}]  }
   0x1   :  { %v20_v0 = vld [vmem:[%s515_s0] sm:$0xf]  ;;  %43 = vst [vmem:[#allocation4] sm:$0x1] %v410_v1 }
   0x2   :  { %21 = vst [vmem:[#allocation1] sm:$0xf] %v20_v0 }
   0x9   :  { %v39_v2 = vld [vmem:[#allocation1] sm:$0xf] }
   0xa   :  { %40 = vst [vmem:[#allocation0] sm:$0xf] %v39_v2 }
  0x11   :  { %v41_v3 = vld [vmem:[#allocation0] sm:$0xff] }
  0x12   :  { %42 = vst [vmem:[#allocation2] sm:$0xff] %v41_v3 }
  0x13 LB: > { %v51_v4 = vlaneseq  ;;  %v439_v6 = vstv %s408_s11  ;;  %s83_s0 = scalar_lea.vmem [#allocation2], %s408_s11  ;;  %s176_s12 = smov [#allocation2]  ;;  %s408_s11 = sphi %s430_s11, %s49_s11  }
  0x14   : > { %s211_s13 = scalar_lea.vmem [#allocation6], %s408_s11  ;;  %s227_s14 = smov [#allocation2] }
  0x15   : > { %v436_v5 = vshrl.u32 %v51_v4, 7  ;;  %s228_s15 = smov [#allocation6] }
  0x17   : > { %vm55_vm0 = vcmp.gt.s32.totalorder %v436_v5, %v439_v6  ;;  %vm56_vm1 = vcmp.lt.s32.totalorder %v436_v5, 3  ;;  %v179_v5 = vmov %v436_v5 }
  0x18   : > { %vm57_vm2 = vmand %vm55_vm0, %vm56_vm1  ;;  %vm183_vm13 = vcmp.gt.s32.totalorder %v179_v5, %v439_v6  ;;  %vm184_vm14 = vcmp.lt.s32.totalorder %v179_v5, 3  ;;  %v231_v5 = vmov %v436_v5 }
  0x19   : > { %v50_v7 = vld [vmem:[#allocation2] sm:$0xff]  ;;  %v449_v20 = vld [vmem:[%s83_s0] ss:$0 sm:$0xff] }
  0x1a   : > { %v58_v8 = vsel %vm57_vm2, %v50_v7, 0.0  ;;  %v85_v23 = vand.u32 2147483647, %v449_v20  ;;  %vm154_vm12 = vcmp.lt.f32.partialorder %v449_v20, 0.0 }
  0x1b   : > { %v59_v9 = vmul.f32 %v58_v8, %v58_v8 }
  0x1c   : > { %v86_v27 = vmax.f32 %v85_v23, 0.0 }
  0x1d   : > { %v60_v10 = vrot.slane %v59_v9, 4 }
  0x1f   : > { %v61_v11 = vadd.f32 %v60_v10, %v59_v9 }
  0x21   : > { %v62_v12 = vrot.slane %v61_v11, 2 }
  0x23   : > { %v63_v13 = vadd.f32 %v62_v12, %v61_v11 }
  0x25   : > { %v64_v14 = vrot.slane %v63_v13, 1 }
  0x27   : > { %v444_v15 = vadd.f32 %v64_v14, %v63_v13 }
  0x29   : > { %392 = vrsqrt.f32 %v444_v15  ;;  %vm73_vm3 = vcmp.eq.f32.partialorder %v444_v15, inf  ;;  %v76_v24 = vand.u32 2147483648, %v444_v15  ;;  %vm75_vm4 = vcmp.eq.f32.partialorder %v444_v15, 0.0 }
  0x2f   : > { %v393_v16 = vpop.eup %392 }
  0x30   : > { %v67_v17 = vmul.f32 %v393_v16, %v444_v15 }
  0x32   : > { %v68_v18 = vmul.f32 %v393_v16, %v67_v17 }
  0x34   : > { %v69_v19 = vmul.f32 0.5, %v68_v18  ;;  %v180_v18 = vld [vmem:[%s176_s12] sm:$0xff] }
  0x36   : > { %v70_v21 = vsub.f32 1.5, %v69_v19 }
  0x38   : > { %v71_v22 = vmul.f32 %v393_v16, %v70_v21 }
  0x3a   : > { %v72_v25 = vmul.f32 %v71_v22, %v444_v15  ;;  %v205_v22 = vand.u32 127, %v51_v4 }
  0x3c   : > { %v74_v26 = vsel %vm73_vm3, %v444_v15, %v72_v25 }
  0x3d   : > { %v77_v28 = vsel %vm75_vm4, %v76_v24, %v74_v26 }
  0x3e   : > { %v87_v29 = vand.u32 2147483647, %v77_v28 }
  0x40   : > { %v88_v30 = vmax.f32 %v86_v27, %v87_v29 }
  0x42   : > { %394 = vrcp.f32 %v88_v30  ;;  %v100_v33 = vand.u32 2147483648, %v88_v30  ;;  %vm94_vm5 = vweird.f32 %v88_v30  ;;  %v98_v35 = vand.u32 2147483647, %v88_v30 }
  0x43   : > { %vm139_vm11 = vcmp.eq.f32.partialorder %v88_v30, 0.0 }
  0x44   : > { %v101_v37 = vor.u32 1.1754944e-38, %v100_v33  ;;  %vm99_vm8 = vcmp.eq.f32.partialorder %v98_v35, 8.507059e+37 }
  0x48   : > { %v395_v31 = vpop.eup %394 }
  0x49   : > { %v90_v32 = vmul.f32 %v395_v31, %v88_v30  ;;  %vm95_vm6 = vweird.f32 %v395_v31 }
  0x4a   : > { %vm96_vm7 = vmor %vm94_vm5, %vm95_vm6 }
  0x4b   : > { %v91_v34 = vsub.f32 1.0, %v90_v32  ;;  %vm185_vm5 = vmand %vm183_vm13, %vm184_vm14 }
  0x4c   : > { %v186_v26 = vsel %vm185_vm5, %v180_v18, 0.0 }
  0x4d   : > { %v92_v36 = vmul.f32 %v395_v31, %v91_v34 }
  0x4f   : > { %v93_v38 = vadd.f32 %v395_v31, %v92_v36 }
  0x51   : > { %v97_v39 = vsel %vm96_vm7, %v395_v31, %v93_v38  ;;  %v224_v38 = vld [vmem:[#allocation4] ss:$0 sm:$0xff] }
  0x52   : > { %v102_v40 = vsel %vm99_vm8, %v101_v37, %v97_v39  ;;  %v411_v37 = vmov 1.0   ;;  %v234_v39 = vld [vmem:[%s227_s14] sm:$0xff]  ;;  %s244_s14 = smov %s227_s14 }
  0x53   : > { %v103_v41 = vmul.f32 %v102_v40, %v85_v23  ;;  %v119_v42 = vmul.f32 0.0, %v102_v40  ;;  %v136_v43 = vmul.f32 %v102_v40, %v87_v29  ;;  %s269_s16 = scalar_lea.vmem %s244_s14, %s408_s11  ;;  %s49_s11 = sadd.s32 1, %s408_s11  }
  0x54   : > { %p46_p0 = scmp.ge.s32.totalorder %s49_s11, 3  }
  0x55   : > { %v104_v44 = vmul.f32 %v103_v41, %v103_v41  ;;  %v120_v45 = vmul.f32 %v119_v42, %v119_v42  ;;  %v137_v46 = vmul.f32 %v136_v43, %v136_v43 }
  0x57   : > { %v121_v47 = vadd.f32 %v120_v45, %v104_v44 }
  0x59   : > { %v138_v48 = vadd.f32 %v137_v46, %v121_v47 }
  0x5b   : > { %396 = vrsqrt.f32 %v138_v48  ;;  %vm147_vm9 = vcmp.eq.f32.partialorder %v138_v48, inf  ;;  %v150_v55 = vand.u32 2147483648, %v138_v48  ;;  %vm149_vm10 = vcmp.eq.f32.partialorder %v138_v48, 0.0 }
  0x61   : > { %v397_v49 = vpop.eup %396 }
  0x62   : > { %v141_v50 = vmul.f32 %v397_v49, %v138_v48 }
  0x64   : > { %v142_v51 = vmul.f32 %v397_v49, %v141_v50 }
  0x66   : > { %v143_v52 = vmul.f32 0.5, %v142_v51 }
  0x68   : > { %v144_v53 = vsub.f32 1.5, %v143_v52  ;;  %v255_v52 = vld [vmem:[%s244_s14] sm:$0xff] }
  0x6a   : > { %v145_v54 = vmul.f32 %v397_v49, %v144_v53 }
  0x6c   : > { %v146_v56 = vmul.f32 %v145_v54, %v138_v48 }
  0x6e   : > { %v148_v57 = vsel %vm147_vm9, %v138_v48, %v146_v56  ;;  %vm481_vm9 = vcmp.eq.s32.totalorder %v205_v22, %v439_v6 }
  0x6f   : > { %v151_v58 = vsel %vm149_vm10, %v150_v55, %v148_v57  ;;  %vm236_vm10 = vcmp.lt.s32.totalorder %v231_v5, 3  ;;  %v248_v5 = vmov %v436_v5 }
  0x70   : > { %v152_v59 = vmul.f32 %v151_v58, %v88_v30 }
  0x72   : > { %v153_v60 = vsel %vm139_vm11, 0.0, %v152_v59  ;;  %vm257_vm11 = vcmp.gt.s32.totalorder %v205_v22, %v439_v6 }
  0x73   : > { %v155_v61 = vxor.u32 2147483648, %v153_v60 }
  0x75   : > { %v156_v62 = vsel %vm154_vm12, %v153_v60, %v155_v61 }
  0x76   : > { %v463_v63 = vsel %vm75_vm4, %v449_v20, %v156_v62  ;;  %398 = vrcp.f32 %v156_v62  ;;  %vm163_vm15 = vweird.f32 %v156_v62  ;;  %v167_v11 = vand.u32 2147483647, %v156_v62 }
  0x77   : > { %v175_v0 = vsub.f32 %v449_v20, %v463_v63  ;;  %v169_v12 = vand.u32 2147483648, %v156_v62  ;;  %v157_v28 = vsub.f32 %v156_v62, %v449_v20 }
  0x78   : > { %vm168_vm8 = vcmp.eq.f32.partialorder %v167_v11, 8.507059e+37 }
  0x79   : > { %400 = vrcp.f32 %v175_v0  ;;  %v198_v9 = vand.u32 2147483648, %v175_v0  ;;  %vm192_vm1 = vweird.f32 %v175_v0  ;;  %v196_v14 = vand.u32 2147483647, %v175_v0 }
  0x7a   : > { %v170_v23 = vor.u32 1.1754944e-38, %v169_v12 }
  0x7b   : > { %v199_v21 = vor.u32 1.1754944e-38, %v198_v9  ;;  %vm197_vm7 = vcmp.eq.f32.partialorder %v196_v14, 8.507059e+37 }
  0x7c   : > { %v399_v1 = vpop.eup %398 }
  0x7d   : > { %v159_v2 = vmul.f32 %v399_v1, %v156_v62  ;;  %vm164_vm0 = vweird.f32 %v399_v1 }
  0x7e   : > { %vm469_vm3 = vmor %vm163_vm15, %vm164_vm0 }
  0x7f   : > { %v401_v3 = vpop.eup %400  ;;  %v160_v7 = vsub.f32 1.0, %v159_v2 }
  0x80   : > { %v188_v8 = vmul.f32 %v401_v3, %v175_v0  ;;  %vm193_vm2 = vweird.f32 %v401_v3 }
  0x81   : > { %v161_v10 = vmul.f32 %v399_v1, %v160_v7  ;;  %vm194_vm6 = vmor %vm192_vm1, %vm193_vm2 }
  0x82   : > { %v189_v13 = vsub.f32 1.0, %v188_v8 }
  0x83   : > { %v162_v16 = vadd.f32 %v399_v1, %v161_v10 }
  0x84   : > { %v190_v19 = vmul.f32 %v401_v3, %v189_v13 }
  0x85   : > { %v166_v25 = vsel %vm469_vm3, %v399_v1, %v162_v16 }
  0x86   : > { %v191_v24 = vadd.f32 %v401_v3, %v190_v19  ;;  %v171_v30 = vsel %vm168_vm8, %v170_v23, %v166_v25 }
  0x87   : > { %v172_v33 = vmul.f32 %v171_v30, %v157_v28 }
  0x88   : > { %v195_v27 = vsel %vm194_vm6, %v401_v3, %v191_v24 }
  0x89   : > { %v200_v29 = vsel %vm197_vm7, %v199_v21, %v195_v27  ;;  %v174_v35 = vsel %vm75_vm4, 0.0, %v172_v33 }
  0x8a   : > { %v201_v31 = vmul.f32 %v200_v29, %v186_v26  ;;  %v217_v20 = vsel %vm481_vm9, %v174_v35, 0.0 }
  0x8c   : > { %v202_v4 = vsel %vm75_vm4, 0.0, %v201_v31  ;;  %vm265_vm4 = vcmp.ge.s32.totalorder %v248_v5, %v439_v6 }
  0x8d   : > { %v207_v34 = vsel %vm481_vm9, %v202_v4, 0.0  ;;  %vm266_vm12 = vmand %vm481_vm9, %vm265_vm4 }
  0x8e   : > { %208 = vadd.xlane.f32.xlu0 %v207_v34 }
  0x96   : > { %218 = vadd.xlane.f32.xlu0 %v217_v20 }
 0x101   : > { %v209_v36 = vpop.xlane.xlu0 %208 }
 0x102   : > { %210 = vst [vmem:[#allocation6] sm:$0xff] %v209_v36 }
 0x103   : > { %212 = vst [vmem:[%s211_s13] sm:$0x1] %v411_v37 }
 0x109   : > { %v219_v40 = vpop.xlane.xlu0 %218 }
 0x10a   : > { %v233_v41 = vld [vmem:[%s228_s15] sm:$0xff]  ;;  %v225_v15 = vsel %vm481_vm9, %v219_v40, %v224_v38  ;;  %s245_s15 = smov %s228_s15 }
 0x10b   : > { %v235_v42 = vmul.f32 %v234_v39, %v233_v41  ;;  %226 = vst [vmem:[#allocation4] sm:$0x1] %v225_v15  ;;  %v253_v51 = vld [vmem:[%s245_s15] sm:$0xff] }
 0x10d   : > { %v237_v43 = vsel %vm236_vm10, %v235_v42, 0.0 }
 0x10e   : > { %v238_v44 = vrot.slane %v237_v43, 4 }
 0x110   : > { %v239_v45 = vadd.f32 %v238_v44, %v237_v43 }
 0x112   : > { %v240_v46 = vrot.slane %v239_v45, 2  ;;  %v285_v6 = vld [vmem:[#allocation4] sm:$0x1] (%p46_p0) }
 0x113   :  { %288 = vst [vmem:[#allocation5] sm:$0x1] (%p46_p0), %v285_v6 }
 0x114   : > { %v241_v47 = vadd.f32 %v240_v46, %v239_v45 }
 0x116   : > { %v242_v48 = vrot.slane %v241_v47, 1 }
 0x118   : > { %v243_v49 = vadd.f32 %v242_v48, %v241_v47 }
 0x11a   : > { %v249_v50 = vmul.f32 %v243_v49, %v219_v40  ;;  %v340_v60 = vld [vmem:[#allocation5] sm:$0x1] (%p46_p0) }
 0x11b   :  { %341 = vst [vmem:[%s517_s2] sm:$0x1] (%p46_p0), %v340_v60 }
 0x11c   : > { %v254_v53 = vmul.f32 %v253_v51, %v249_v50 }
 0x11e   : > { %v258_v54 = vsub.f32 %v255_v52, %v254_v53 }
 0x120   : > { %v259_v55 = vsel %vm257_vm11, %v258_v54, %v255_v52 }
 0x121   : > { %v267_v56 = vsel %vm266_vm12, %v253_v51, %v259_v55 }
 0x122   : > { %268 = vst [vmem:[%s244_s14] sm:$0xff] %v267_v56 }
 0x127   :  { %48 = sbr.rel (!%p46_p0) target bundleno = 19 (0x13), region = 131 }
 0x129   : > { %v270_v57 = vld [vmem:[%s269_s16] ss:$0 sm:$0xff] }
 0x12a   : > { %v275_v58 = vsel %vm481_vm9, %v463_v63, %v270_v57 }
 0x12b   : > { %276 = vst [vmem:[%s269_s16] sm:$0x1] %v275_v58 }
 0x132   :  { %v279_v5 = vld [vmem:[#allocation2] sm:$0xf] }
 0x133   :  { %282 = vst [vmem:[#allocation3] sm:$0xf] %v279_v5 }
 0x13a   :  { %v305_v59 = vld [vmem:[#allocation3] sm:$0xf] }
 0x13b   :  { %306 = vst [vmem:[%s516_s1] sm:$0xf] %v305_v59 }

</bundles_post_ra>
